<compile_context>
chip_gen: v6e
topology: v6e:2x2x1
jax: 0.10.0
libtpu: 0.0.40
codegen_flags: <defaults>
</compile_context>

<pallas_src>
import math
from functools import partial

import jax
import jax.numpy as jnp
from jax import lax
from jax.experimental import pallas as pl
from jax.experimental.pallas import tpu as pltpu

LN_EPS = 1e-5
MATMUL_DTYPE = jnp.bfloat16          # MXU operand dtype; accumulation is always f32
VMEM_LIMIT = 64 * 1024 * 1024        # fine for v5e/v6e (128 MiB phys); lower for v7x
ROW_TILE_CAP = 512                   # row tile for the linear kernels (multiple of 8)


def _cparams(semantics):
    return pltpu.CompilerParams(dimension_semantics=semantics,
                                vmem_limit_bytes=VMEM_LIMIT)


# ----------------------- fused (LayerNorm+)Linear kernel --------------------

def _make_linear_kernel(has_ln, has_bias, gelu, has_residual):
    def kernel(*refs):
        i = 0
        x_ref = refs[i]; i += 1
        if has_ln:
            g_ref, b_ref = refs[i], refs[i + 1]; i += 2
        w_ref = refs[i]; i += 1
        if has_bias:
            bias_ref = refs[i]; i += 1
        if has_residual:
            res_ref = refs[i]; i += 1
        o_ref = refs[i]

        x = x_ref[...]
        if has_ln:
            xf = x.astype(jnp.float32)
            mean = jnp.mean(xf, axis=-1, keepdims=True)
            var = jnp.mean(jnp.square(xf - mean), axis=-1, keepdims=True)
            xf = (xf - mean) * lax.rsqrt(var + LN_EPS)
            xf = xf * g_ref[...].astype(jnp.float32) + b_ref[...].astype(jnp.float32)
            xm = xf.astype(MATMUL_DTYPE)
        else:
            xm = x.astype(MATMUL_DTYPE)
        # bf16 x bf16 -> f32 accumulation on the MXU
        acc = jnp.dot(xm, w_ref[...], preferred_element_type=jnp.float32)
        if has_bias:
            acc = acc + bias_ref[...].astype(jnp.float32)
        if gelu:
            # exact (erf) GELU -- matches torch.nn.GELU default
            acc = 0.5 * acc * (1.0 + lax.erf(acc * (1.0 / math.sqrt(2.0))))
        if has_residual:
            acc = acc + res_ref[...].astype(jnp.float32)
        o_ref[...] = acc.astype(o_ref.dtype)
    return kernel


def fused_linear(x, w, *, gamma=None, beta=None, bias=None, gelu=False,
                 residual=None, out_dtype=None):
    """y = [LN(x)] @ w [+ bias] [GELU] [+ residual], row-tiled over a parallel grid."""
    shape = x.shape
    din = shape[-1]
    dout = w.shape[-1]
    out_dtype = out_dtype if out_dtype is not None else x.dtype
    x2 = x.reshape(-1, din)
    M = x2.shape[0]

    # Row tile: one block for small M (block == full dim is always legal); for large M a
    # 512-row (multiple-of-8) tile with a ragged last block via pl.cdiv.  bf16 weights +
    # tm<=512 keep the double-buffered working set under the 32 MiB scoped default.
    tm = M if M <= ROW_TILE_CAP else ROW_TILE_CAP
    grid = (pl.cdiv(M, tm),)

    args = [x2]
    in_specs = [pl.BlockSpec((tm, din), lambda i: (i, 0))]
    if gamma is not None:
        args += [gamma.reshape(1, din).astype(jnp.float32),
                 beta.reshape(1, din).astype(jnp.float32)]
        in_specs += [pl.BlockSpec((1, din), lambda i: (0, 0)),
                     pl.BlockSpec((1, din), lambda i: (0, 0))]
    args.append(w.astype(MATMUL_DTYPE))
    in_specs.append(pl.BlockSpec((din, dout), lambda i: (0, 0)))
    if bias is not None:
        args.append(bias.reshape(1, dout).astype(jnp.float32))
        in_specs.append(pl.BlockSpec((1, dout), lambda i: (0, 0)))
    if residual is not None:
        args.append(residual.reshape(-1, dout))
        in_specs.append(pl.BlockSpec((tm, dout), lambda i: (i, 0)))

    kernel = _make_linear_kernel(gamma is not None, bias is not None, gelu,
                                 residual is not None)
    out = pl.pallas_call(
        kernel,
        out_shape=jax.ShapeDtypeStruct((M, dout), out_dtype),
        grid=grid,
        in_specs=in_specs,
        out_specs=pl.BlockSpec((tm, dout), lambda i: (i, 0)),
        compiler_params=_cparams(("parallel",)),
    )(*args)
    return out.reshape(shape[:-1] + (dout,))


# ----------------------------- CrossAttention -------------------------------
# Grid = (B,).  Inputs are head-major (q) / head*frame-major (k, v); every dot is a
# single-batch-dim dot_general batched over head*frame; outputs are two full-block
# stores (cls rows, frame rows).

def _cross_attn_kernel(q_ref, k_ref, v_ref, oc_ref, of_ref, *, scale):
    h, nq, hd = q_ref.shape[1], q_ref.shape[2], q_ref.shape[3]
    hf, n_p = k_ref.shape[1], k_ref.shape[2]
    f = hf // h

    q = q_ref[0].astype(MATMUL_DTYPE)                     # (h, Nq, hd)
    k = k_ref[0].astype(MATMUL_DTYPE)                     # (hf, n_p, hd)
    v = v_ref[0].astype(MATMUL_DTYPE)                     # (hf, n_p, hd)

    # Queries are shared across frames: replicate along a new leading dim and fold it
    # into the batch dim (leading-dim reshape only -> no relayout).
    qb = jnp.broadcast_to(q[:, None], (h, f, nq, hd)).reshape(hf, nq, hd)
    sim = lax.dot_general(qb, k, (((2,), (2,)), ((0,), (0,))),
                          preferred_element_type=jnp.float32) * scale    # (hf, Nq, n_p)

    # --- question tokens attend within their frame (rows 1:) ---
    s_f = sim[:, 1:, :]                                   # (hf, n_in, n_p)
    m = jnp.max(s_f, axis=-1, keepdims=True)
    e = jnp.exp(s_f - m)
    p = e * pl.reciprocal(jnp.sum(e, axis=-1, keepdims=True), approx=True)
    out_f = lax.dot_general(p.astype(MATMUL_DTYPE), v, (((2,), (1,)), ((0,), (0,))),
                            preferred_element_type=jnp.float32)          # (hf, n_in, hd)
    of_ref[0] = out_f.astype(of_ref.dtype)

    # --- cls query attends over the whole video sequence (softmax across frames) ---
    s_c = sim[:, 0:1, :]                                  # (hf, 1, n_p)
    m_pf = jnp.max(s_c, axis=-1, keepdims=True)           # (hf, 1, 1)
    m_h = jnp.max(m_pf.reshape(h, f, 1, 1), axis=1)       # (h, 1, 1)
    m_b = jnp.broadcast_to(m_h[:, None], (h, f, 1, 1)).reshape(hf, 1, 1)
    e_c = jnp.exp(s_c - m_b)                              # (hf, 1, n_p)
    d_h = jnp.sum(jnp.sum(e_c, axis=-1, keepdims=True).reshape(h, f, 1, 1), axis=1)
    pv = lax.dot_general(e_c.astype(MATMUL_DTYPE), v, (((2,), (1,)), ((0,), (0,))),
                         preferred_element_type=jnp.float32)             # (hf, 1, hd)
    pv_h = jnp.sum(pv.reshape(h, f, 1, hd), axis=1)       # (h, 1, hd)
    cls_out = pv_h * pl.reciprocal(d_h, approx=True)
    oc_ref[0] = cls_out.astype(oc_ref.dtype)


def cross_attention_pallas(q_h, k_hf, v_hf, scale):
    B, h, nq, hd = q_h.shape
    hf, n_p = k_hf.shape[1], k_hf.shape[2]
    n_in = nq - 1
    kernel = partial(_cross_attn_kernel, scale=scale)
    return pl.pallas_call(
        kernel,
        out_shape=(jax.ShapeDtypeStruct((B, h, 1, hd), MATMUL_DTYPE),
                   jax.ShapeDtypeStruct((B, hf, n_in, hd), MATMUL_DTYPE)),
        grid=(B,),
        in_specs=[pl.BlockSpec((1, h, nq, hd), lambda b: (b, 0, 0, 0)),
                  pl.BlockSpec((1, hf, n_p, hd), lambda b: (b, 0, 0, 0)),
                  pl.BlockSpec((1, hf, n_p, hd), lambda b: (b, 0, 0, 0))],
        out_specs=(pl.BlockSpec((1, h, 1, hd), lambda b: (b, 0, 0, 0)),
                   pl.BlockSpec((1, hf, n_in, hd), lambda b: (b, 0, 0, 0))),
        compiler_params=_cparams(("parallel",)),
    )(q_h, k_hf, v_hf)


# ------------------------------ VarAttention --------------------------------
# Grid = (B,).  cls token q/k/v come in as (1, 3, h, 1, hd), frame tokens as
# (1, 3, h*f, n_in, hd); the [cls_k ; frame_k] key set and the full-sequence cls query
# are handled with two-piece softmaxes (no concatenation, no HBM repeats).

def _var_attn_kernel(cls_ref, fr_ref, bias_ref, oc_ref, of_ref, *, scale):
    h, hd = cls_ref.shape[2], cls_ref.shape[4]
    hf, n_in = fr_ref.shape[2], fr_ref.shape[3]
    f = hf // h

    q_c = cls_ref[0, 0]; k_c = cls_ref[0, 1]; v_c = cls_ref[0, 2]       # (h, 1, hd)
    q_f = fr_ref[0, 0]; k_f = fr_ref[0, 1]; v_f = fr_ref[0, 2]          # (hf, n_in, hd)
    bias = bias_ref[0].astype(jnp.float32)                              # (1, Nq)
    b_c = bias[:, 0:1]                                                  # (1, 1)
    b_k = bias[:, 1:]                                                   # (1, n_in)

    def bcast_f(t):  # (h, 1, hd) -> (hf, 1, hd), leading-dim replicate only
        return jnp.broadcast_to(t[:, None], (h, f, 1, hd)).reshape(hf, 1, hd)

    q_cb = bcast_f(q_c)
    k_cb = bcast_f(k_c)
    v_cb = bcast_f(v_c)

    # --- frame queries: keys = [cls_k ; own-frame keys], masked ---
    s_fc = jnp.sum(q_f.astype(jnp.float32) * k_cb.astype(jnp.float32),
                   axis=-1, keepdims=True) * scale + b_c                # (hf, n_in, 1)
    s_ff = lax.dot_general(q_f, k_f, (((2,), (2,)), ((0,), (0,))),
                           preferred_element_type=jnp.float32) * scale + b_k
    m = jnp.maximum(jnp.max(s_ff, axis=-1, keepdims=True), s_fc)
    e_ff = jnp.exp(s_ff - m)
    e_fc = jnp.exp(s_fc - m)
    denom = jnp.sum(e_ff, axis=-1, keepdims=True) + e_fc
    out_f = lax.dot_general(e_ff.astype(MATMUL_DTYPE), v_f, (((2,), (1,)), ((0,), (0,))),
                            preferred_element_type=jnp.float32)
    out_f = (out_f + e_fc * v_cb.astype(jnp.float32)) * pl.reciprocal(denom, approx=True)
    of_ref[0] = out_f.astype(of_ref.dtype)

    # --- cls query over all bridge tokens (cls + every frame), masked ---
    s_cc = jnp.sum(q_c.astype(jnp.float32) * k_c.astype(jnp.float32),
                   axis=-1, keepdims=True) * scale + b_c                # (h, 1, 1)
    s_cf = lax.dot_general(q_cb, k_f, (((2,), (2,)), ((0,), (0,))),
                           preferred_element_type=jnp.float32) * scale + b_k  # (hf, 1, n_in)
    m_pf = jnp.max(s_cf, axis=-1, keepdims=True)                        # (hf, 1, 1)
    m_all = jnp.maximum(jnp.max(m_pf.reshape(h, f, 1, 1), axis=1), s_cc)
    m_b = jnp.broadcast_to(m_all[:, None], (h, f, 1, 1)).reshape(hf, 1, 1)
    e_cf = jnp.exp(s_cf - m_b)
    e_cc = jnp.exp(s_cc - m_all)
    d = jnp.sum(jnp.sum(e_cf, axis=-1, keepdims=True).reshape(h, f, 1, 1), axis=1) + e_cc
    pv = lax.dot_general(e_cf.astype(MATMUL_DTYPE), v_f, (((2,), (1,)), ((0,), (0,))),
                         preferred_element_type=jnp.float32)            # (hf, 1, hd)
    pv_h = jnp.sum(pv.reshape(h, f, 1, hd), axis=1)                     # (h, 1, hd)
    cls_out = (pv_h + e_cc * v_c.astype(jnp.float32)) * pl.reciprocal(d, approx=True)
    oc_ref[0] = cls_out.astype(oc_ref.dtype)


def var_attention_pallas(cls_qkv, fr_qkv, bias_q, scale):
    B = cls_qkv.shape[0]
    h, hd = cls_qkv.shape[2], cls_qkv.shape[4]
    hf, n_in = fr_qkv.shape[2], fr_qkv.shape[3]
    nq = bias_q.shape[-1]
    kernel = partial(_var_attn_kernel, scale=scale)
    return pl.pallas_call(
        kernel,
        out_shape=(jax.ShapeDtypeStruct((B, h, 1, hd), MATMUL_DTYPE),
                   jax.ShapeDtypeStruct((B, hf, n_in, hd), MATMUL_DTYPE)),
        grid=(B,),
        in_specs=[pl.BlockSpec((1, 3, h, 1, hd), lambda b: (b, 0, 0, 0, 0)),
                  pl.BlockSpec((1, 3, hf, n_in, hd), lambda b: (b, 0, 0, 0, 0)),
                  pl.BlockSpec((1, 1, nq), lambda b: (b, 0, 0))],
        out_specs=(pl.BlockSpec((1, h, 1, hd), lambda b: (b, 0, 0, 0)),
                   pl.BlockSpec((1, hf, n_in, hd), lambda b: (b, 0, 0, 0))),
        compiler_params=_cparams(("parallel",)),
    )(cls_qkv, fr_qkv, bias_q)


# ------------------------------- host glue ----------------------------------

def _merge_heads(oc, of, f):
    """(B,h,1,hd) cls + (B,h*f,n_in,hd) frames -> packed (B, Nb, h*hd)."""
    B, h, _, hd = oc.shape
    n_in = of.shape[2]
    dim = h * hd
    cls_m = oc.reshape(B, 1, dim)
    fr_m = of.reshape(B, h, f, n_in, hd).transpose(0, 2, 3, 1, 4).reshape(B, f * n_in, dim)
    return jnp.concatenate([cls_m, fr_m], axis=1)


def video_bridge_block(p, x_bridge, x, question, mask, layer, space_f, num_heads):
    B, Nx, dim = x.shape
    Nq = question.shape[1]
    h = num_heads
    hd = dim // h
    f = space_f
    n_p = Nx // f
    n_in = Nq - 1
    scale = hd ** (-0.5)

    # --- CrossAttention (norm4 / norm5 fused into the kv / q projections) ---
    kv = fused_linear(x, p["ca_wkv"], gamma=p["norm4_g"], beta=p["norm4_b"],
                      out_dtype=MATMUL_DTYPE)                               # (B, Nx, 2d)
    q = fused_linear(question, p["ca_wq"], gamma=p["norm5_g"], beta=p["norm5_b"],
                     out_dtype=MATMUL_DTYPE)                                # (B, Nq, d)
    q_h = q.reshape(B, Nq, h, hd).transpose(0, 2, 1, 3)                     # (B,h,Nq,hd)
    kv_h = kv.reshape(B, Nx, 2, h, hd)
    k_hf = kv_h[:, :, 0].transpose(0, 2, 1, 3).reshape(B, h * f, n_p, hd)
    v_hf = kv_h[:, :, 1].transpose(0, 2, 1, 3).reshape(B, h * f, n_p, hd)
    oc, of = cross_attention_pallas(q_h, k_hf, v_hf, scale)
    ctx = _merge_heads(oc, of, f)                                           # (B, Nb, d)
    res = x_bridge.astype(jnp.float32) if layer != 0 else None
    bridge_temp = fused_linear(ctx, p["ca_wproj"], bias=p["ca_bproj"],
                               residual=res, out_dtype=jnp.float32)

    # --- VarAttention (norm7 fused into the qkv projection; mask bias per batch) ---
    qkv = fused_linear(bridge_temp, p["va_wqkv"], gamma=p["norm7_g"], beta=p["norm7_b"],
                       out_dtype=MATMUL_DTYPE)                              # (B, Nb, 3d)
    Nb = qkv.shape[1]
    qkv5 = qkv.reshape(B, Nb, 3, h, hd)
    cls_qkv = qkv5[:, 0:1].transpose(0, 2, 3, 1, 4)                         # (B,3,h,1,hd)
    fr_qkv = qkv5[:, 1:].reshape(B, f, n_in, 3, h, hd).transpose(0, 3, 4, 1, 2, 5)
    fr_qkv = fr_qkv.reshape(B, 3, h * f, n_in, hd)
    bias_q = ((1.0 - mask.astype(jnp.float32)) * -10000.0).reshape(B, 1, Nq)
    oc2, of2 = var_attention_pallas(cls_qkv, fr_qkv, bias_q, scale)
    var_ctx = _merge_heads(oc2, of2, f)
    space_bridge_residual = fused_linear(var_ctx, p["va_wproj"], bias=p["va_bproj"],
                                         residual=bridge_temp, out_dtype=jnp.float32)

    # --- MLP (norm6 + fc1 + GELU fused; residual fused into fc2) ---
    h1 = fused_linear(space_bridge_residual, p["mlp_w1"], bias=p["mlp_b1"],
                      gamma=p["norm6_g"], beta=p["norm6_b"], gelu=True,
                      out_dtype=MATMUL_DTYPE)
    out = fused_linear(h1, p["mlp_w2"], bias=p["mlp_b2"],
                       residual=space_bridge_residual, out_dtype=jnp.float32)
    return out


# --------------------------- pure-JAX reference -----------------------------

def reference_forward(p, x_bridge, x, question, mask, layer, f, h):
    def ln(t, g, b):
        mu = jnp.mean(t, -1, keepdims=True)
        var = jnp.mean((t - mu) ** 2, -1, keepdims=True)
        return (t - mu) / jnp.sqrt(var + LN_EPS) * g + b

    def split_heads(t):
        b, n, d = t.shape
        hd = d // h
        return t.reshape(b, n, h, hd).transpose(0, 2, 1, 3).reshape(b * h, n, hd)

    def merge_heads(t, b):
        _, n, hd = t.shape
        return t.reshape(b, h, n, hd).transpose(0, 2, 1, 3).reshape(b, n, h * hd)

    def attn(q, k, v, bias=None):
        sim = jnp.einsum('bid,bjd->bij', q, k)
        if bias is not None:
            sim = sim + bias[:, None, :]
        return jnp.einsum('bij,bjd->bid', jax.nn.softmax(sim, axis=-1), v)

    dim = x.shape[-1]
    scale = (dim // h) ** (-0.5)
    B, Nx, _ = x.shape
    Nq = question.shape[1]
    n_p = Nx // f

    # CrossAttention
    xq = ln(question, p["norm5_g"], p["norm5_b"]) @ p["ca_wq"].astype(jnp.float32)
    kv = ln(x, p["norm4_g"], p["norm4_b"]) @ p["ca_wkv"].astype(jnp.float32)
    k, v = kv[..., :dim], kv[..., dim:]
    q_, k_, v_ = split_heads(xq) * scale, split_heads(k), split_heads(v)
    cls_out = attn(q_[:, :1], k_, v_)
    qr = jnp.repeat(q_[:, 1:], f, axis=0)
    ks = k_.reshape(B * h, f, n_p, -1).reshape(B * h * f, n_p, -1)
    vs = v_.reshape(B * h, f, n_p, -1).reshape(B * h * f, n_p, -1)
    out = attn(qr, ks, vs).reshape(B * h, f * (Nq - 1), -1)
    out = jnp.concatenate([cls_out, out], axis=1)
    cross = merge_heads(out, B) @ p["ca_wproj"].astype(jnp.float32) + p["ca_bproj"]
    bridge_temp = cross if layer == 0 else cross + x_bridge

    # VarAttention
    qkv = ln(bridge_temp, p["norm7_g"], p["norm7_b"]) @ p["va_wqkv"].astype(jnp.float32)
    q, k, v = qkv[..., :dim], qkv[..., dim:2 * dim], qkv[..., 2 * dim:]
    q_, k_, v_ = split_heads(q) * scale, split_heads(k), split_heads(v)
    mask_h = jnp.repeat(mask.astype(jnp.float32), h, axis=0)
    bias = (1.0 - mask_h) * -10000.0
    bias_tile = jnp.concatenate([bias[:, :1], jnp.tile(bias[:, 1:], (1, f))], axis=1)
    cls_out = attn(q_[:, :1], k_, v_, bias_tile)
    n_in = Nq - 1
    qf = q_[:, 1:].reshape(B * h, f, n_in, -1).reshape(B * h * f, n_in, -1)
    kf = k_[:, 1:].reshape(B * h, f, n_in, -1).reshape(B * h * f, n_in, -1)
    vf = v_[:, 1:].reshape(B * h, f, n_in, -1).reshape(B * h * f, n_in, -1)
    kf = jnp.concatenate([jnp.repeat(k_[:, :1], f, axis=0), kf], axis=1)
    vf = jnp.concatenate([jnp.repeat(v_[:, :1], f, axis=0), vf], axis=1)
    bias2 = jnp.repeat(bias, f, axis=0)
    out = attn(qf, kf, vf, bias2).reshape(B * h, f * n_in, -1)
    out = jnp.concatenate([cls_out, out], axis=1)
    var_out = merge_heads(out, B) @ p["va_wproj"].astype(jnp.float32) + p["va_bproj"]
    sbr = bridge_temp + var_out

    # MLP
    h1 = ln(sbr, p["norm6_g"], p["norm6_b"]) @ p["mlp_w1"].astype(jnp.float32) + p["mlp_b1"]
    h1 = 0.5 * h1 * (1.0 + jax.lax.erf(h1 * (1.0 / math.sqrt(2.0))))
    return sbr + h1 @ p["mlp_w2"].astype(jnp.float32) + p["mlp_b2"]


# ---------------------------------- main -------------------------------------

if __name__ == "__main__":
    B, dim, heads = 2, 32, 4
    space_f = 2        # frames
    n_patch = 4        # patches per frame -> video seq = 8
    Nq = 8             # question tokens (incl. cls)
    Nb = 1 + space_f * (Nq - 1)   # bridge seq = 15
    mlp_hidden = int(dim * 4.0)

    key = jax.random.PRNGKey(0)
    ks = iter(jax.random.split(key, 32))

    def wf(shape, s=0.02):            # f32 param (LN params / biases)
        return jax.random.normal(next(ks), shape, jnp.float32) * s

    def wm(shape, s=0.02):            # matmul weight, stored in bf16
        return (jax.random.normal(next(ks), shape, jnp.float32) * s).astype(MATMUL_DTYPE)

    params = {
        # CrossAttention
        "ca_wq": wm((dim, dim)), "ca_wkv": wm((dim, 2 * dim)),
        "ca_wproj": wm((dim, dim)), "ca_bproj": wf((dim,)),
        # VarAttention
        "va_wqkv": wm((dim, 3 * dim)),
        "va_wproj": wm((dim, dim)), "va_bproj": wf((dim,)),
        # Mlp
        "mlp_w1": wm((dim, mlp_hidden)), "mlp_b1": wf((mlp_hidden,)),
        "mlp_w2": wm((mlp_hidden, dim)), "mlp_b2": wf((dim,)),
        # LayerNorms
        "norm4_g": 1.0 + wf((dim,)), "norm4_b": wf((dim,)),
        "norm5_g": 1.0 + wf((dim,)), "norm5_b": wf((dim,)),
        "norm6_g": 1.0 + wf((dim,)), "norm6_b": wf((dim,)),
        "norm7_g": 1.0 + wf((dim,)), "norm7_b": wf((dim,)),
    }

    x = jax.random.normal(next(ks), (B, space_f * n_patch, dim), jnp.float32)
    question = jax.random.normal(next(ks), (B, Nq, dim), jnp.float32)
    x_bridge = jax.random.normal(next(ks), (B, Nb, dim), jnp.float32)
    lengths = jnp.array([6, 4])
    mask = (jnp.arange(Nq)[None, :] < lengths[:, None]).astype(jnp.float32)  # (B, Nq)

    fwd = jax.jit(partial(video_bridge_block, layer=1, space_f=space_f, num_heads=heads))
    out = fwd(params, x_bridge, x, question, mask)
    out = jax.block_until_ready(out)
    assert out.shape == (B, Nb, dim)

    ref = reference_forward(params, x_bridge, x, question, mask,
                            layer=1, f=space_f, h=heads)
    err = float(jnp.max(jnp.abs(out - ref)))
    # bf16 MXU operands + approx reciprocal => small (~1e-3) deviations from the f32 ref.
    assert err < 3e-2, f"kernel/reference mismatch: max abs err = {err}"

    print("KERNEL_OK")
</pallas_src>

<mosaic_0001>
module attributes {stable_mosaic.version = 11 : i64} {
  func.func @kernel(%arg0: i32, %arg1: memref<16x32xf32, #tpu.memory_space<vmem>>, %arg2: memref<1x32xf32, #tpu.memory_space<vmem>>, %arg3: memref<1x32xf32, #tpu.memory_space<vmem>>, %arg4: memref<32x32xbf16, #tpu.memory_space<vmem>>, %arg5: memref<16x32xbf16, #tpu.memory_space<vmem>>) attributes {dimension_semantics = [#tpu.dimension_semantics<parallel>], iteration_bounds = array<i64: 1>, scalar_prefetch = 0 : i64, scratch_operands = 0 : i64, tpu.core_type = #tpu.core_type<tc>, window_params = [{transform_indices = @transform_0, window_bounds = array<i64: 16, 32>}, {pipeline_mode = #tpu.pipeline_mode<synchronous>, transform_indices = @transform_1, window_bounds = array<i64: 1, 32>}, {pipeline_mode = #tpu.pipeline_mode<synchronous>, transform_indices = @transform_2, window_bounds = array<i64: 1, 32>}, {pipeline_mode = #tpu.pipeline_mode<synchronous>, transform_indices = @transform_3, window_bounds = array<i64: 32, 32>}, {transform_indices = @transform_4, window_bounds = array<i64: 16, 32>}]} {
    %c0 = arith.constant 0 : index
    %c0_0 = arith.constant 0 : index
    %0 = vector.load %arg1[%c0, %c0_0] : memref<16x32xf32, #tpu.memory_space<vmem>>, vector<16x32xf32>
    %cst = arith.constant dense<0.000000e+00> : vector<16xf32>
    %1 = vector.multi_reduction <add>, %0, %cst [1] : vector<16x32xf32> to vector<16xf32>
    %2 = vector.shape_cast %1 : vector<16xf32> to vector<16x1xf32>
    %cst_1 = arith.constant 3.200000e+01 : f32
    %3 = vector.broadcast %cst_1 : f32 to vector<16x1xf32>
    %4 = arith.divf %2, %3 : vector<16x1xf32>
    %5 = vector.broadcast %4 : vector<16x1xf32> to vector<16x32xf32>
    %6 = arith.subf %0, %5 : vector<16x32xf32>
    %7 = arith.mulf %6, %6 : vector<16x32xf32>
    %cst_2 = arith.constant dense<0.000000e+00> : vector<16xf32>
    %8 = vector.multi_reduction <add>, %7, %cst_2 [1] : vector<16x32xf32> to vector<16xf32>
    %9 = vector.shape_cast %8 : vector<16xf32> to vector<16x1xf32>
    %cst_3 = arith.constant 3.200000e+01 : f32
    %10 = vector.broadcast %cst_3 : f32 to vector<16x1xf32>
    %11 = arith.divf %9, %10 : vector<16x1xf32>
    %12 = vector.broadcast %4 : vector<16x1xf32> to vector<16x32xf32>
    %13 = arith.subf %0, %12 : vector<16x32xf32>
    %cst_4 = arith.constant 9.99999974E-6 : f32
    %14 = vector.broadcast %cst_4 : f32 to vector<16x1xf32>
    %15 = arith.addf %11, %14 : vector<16x1xf32>
    %16 = math.rsqrt %15 : vector<16x1xf32>
    %17 = vector.broadcast %16 : vector<16x1xf32> to vector<16x32xf32>
    %18 = arith.mulf %13, %17 : vector<16x32xf32>
    %c0_5 = arith.constant 0 : index
    %c0_6 = arith.constant 0 : index
    %19 = vector.load %arg2[%c0_5, %c0_6] : memref<1x32xf32, #tpu.memory_space<vmem>>, vector<1x32xf32>
    %20 = vector.broadcast %19 : vector<1x32xf32> to vector<16x32xf32>
    %21 = arith.mulf %18, %20 : vector<16x32xf32>
    %c0_7 = arith.constant 0 : index
    %c0_8 = arith.constant 0 : index
    %22 = vector.load %arg3[%c0_7, %c0_8] : memref<1x32xf32, #tpu.memory_space<vmem>>, vector<1x32xf32>
    %23 = vector.broadcast %22 : vector<1x32xf32> to vector<16x32xf32>
    %24 = arith.addf %21, %23 : vector<16x32xf32>
    %25 = arith.truncf %24 : vector<16x32xf32> to vector<16x32xbf16>
    %c0_9 = arith.constant 0 : index
    %c0_10 = arith.constant 0 : index
    %26 = vector.load %arg4[%c0_9, %c0_10] : memref<32x32xbf16, #tpu.memory_space<vmem>>, vector<32x32xbf16>
    %cst_11 = arith.constant dense<0.000000e+00> : vector<16x32xf32>
    %27 = tpu.matmul %25, %26, %cst_11 {dimension_numbers = #tpu.dot_dimension_numbers<[1], [0], [0], [1], [0, 0, 1, 1], [], []>} : vector<16x32xbf16>, vector<32x32xbf16>, vector<16x32xf32> -> vector<16x32xf32>
    %28 = arith.truncf %27 : vector<16x32xf32> to vector<16x32xbf16>
    %c0_12 = arith.constant 0 : index
    %c0_13 = arith.constant 0 : index
    %29 = vector.load %arg5[%c0_12, %c0_13] : memref<16x32xbf16, #tpu.memory_space<vmem>>, vector<16x32xbf16>
    tpu.vector_store %arg5[%c0_12, %c0_13], %28 {strides = array<i32>} : memref<16x32xbf16, #tpu.memory_space<vmem>>, vector<16x32xbf16>,
    return
  }
  func.func @transform_0(%arg0: i32) -> (i32, i32) {
    %c0_i32 = arith.constant 0 : i32
    %c0_i32_0 = arith.constant 0 : i32
    return %arg0, %c0_i32 : i32, i32
  }
  func.func @transform_1(%arg0: i32) -> (i32, i32) {
    %c0_i32 = arith.constant 0 : i32
    %c0_i32_0 = arith.constant 0 : i32
    %c0_i32_1 = arith.constant 0 : i32
    return %c0_i32, %c0_i32_0 : i32, i32
  }
  func.func @transform_2(%arg0: i32) -> (i32, i32) {
    %c0_i32 = arith.constant 0 : i32
    %c0_i32_0 = arith.constant 0 : i32
    %c0_i32_1 = arith.constant 0 : i32
    return %c0_i32, %c0_i32_0 : i32, i32
  }
  func.func @transform_3(%arg0: i32) -> (i32, i32) {
    %c0_i32 = arith.constant 0 : i32
    %c0_i32_0 = arith.constant 0 : i32
    %c0_i32_1 = arith.constant 0 : i32
    return %c0_i32, %c0_i32_0 : i32, i32
  }
  func.func @transform_4(%arg0: i32) -> (i32, i32) {
    %c0_i32 = arith.constant 0 : i32
    %c0_i32_0 = arith.constant 0 : i32
    return %arg0, %c0_i32 : i32, i32
  }
}

module attributes {stable_mosaic.version = 11 : i64} {
  func.func @kernel(%arg0: i32, %arg1: memref<16x32xf32, #tpu.memory_space<vmem>>, %arg2: memref<1x32xf32, #tpu.memory_space<vmem>>, %arg3: memref<1x32xf32, #tpu.memory_space<vmem>>, %arg4: memref<32x64xbf16, #tpu.memory_space<vmem>>, %arg5: memref<16x64xbf16, #tpu.memory_space<vmem>>) attributes {dimension_semantics = [#tpu.dimension_semantics<parallel>], iteration_bounds = array<i64: 1>, scalar_prefetch = 0 : i64, scratch_operands = 0 : i64, tpu.core_type = #tpu.core_type<tc>, window_params = [{transform_indices = @transform_0, window_bounds = array<i64: 16, 32>}, {pipeline_mode = #tpu.pipeline_mode<synchronous>, transform_indices = @transform_1, window_bounds = array<i64: 1, 32>}, {pipeline_mode = #tpu.pipeline_mode<synchronous>, transform_indices = @transform_2, window_bounds = array<i64: 1, 32>}, {pipeline_mode = #tpu.pipeline_mode<synchronous>, transform_indices = @transform_3, window_bounds = array<i64: 32, 64>}, {transform_indices = @transform_4, window_bounds = array<i64: 16, 64>}]} {
    %c0 = arith.constant 0 : index
    %c0_0 = arith.constant 0 : index
    %0 = vector.load %arg1[%c0, %c0_0] : memref<16x32xf32, #tpu.memory_space<vmem>>, vector<16x32xf32>
    %cst = arith.constant dense<0.000000e+00> : vector<16xf32>
    %1 = vector.multi_reduction <add>, %0, %cst [1] : vector<16x32xf32> to vector<16xf32>
    %2 = vector.shape_cast %1 : vector<16xf32> to vector<16x1xf32>
    %cst_1 = arith.constant 3.200000e+01 : f32
    %3 = vector.broadcast %cst_1 : f32 to vector<16x1xf32>
    %4 = arith.divf %2, %3 : vector<16x1xf32>
    %5 = vector.broadcast %4 : vector<16x1xf32> to vector<16x32xf32>
    %6 = arith.subf %0, %5 : vector<16x32xf32>
    %7 = arith.mulf %6, %6 : vector<16x32xf32>
    %cst_2 = arith.constant dense<0.000000e+00> : vector<16xf32>
    %8 = vector.multi_reduction <add>, %7, %cst_2 [1] : vector<16x32xf32> to vector<16xf32>
    %9 = vector.shape_cast %8 : vector<16xf32> to vector<16x1xf32>
    %cst_3 = arith.constant 3.200000e+01 : f32
    %10 = vector.broadcast %cst_3 : f32 to vector<16x1xf32>
    %11 = arith.divf %9, %10 : vector<16x1xf32>
    %12 = vector.broadcast %4 : vector<16x1xf32> to vector<16x32xf32>
    %13 = arith.subf %0, %12 : vector<16x32xf32>
    %cst_4 = arith.constant 9.99999974E-6 : f32
    %14 = vector.broadcast %cst_4 : f32 to vector<16x1xf32>
    %15 = arith.addf %11, %14 : vector<16x1xf32>
    %16 = math.rsqrt %15 : vector<16x1xf32>
    %17 = vector.broadcast %16 : vector<16x1xf32> to vector<16x32xf32>
    %18 = arith.mulf %13, %17 : vector<16x32xf32>
    %c0_5 = arith.constant 0 : index
    %c0_6 = arith.constant 0 : index
    %19 = vector.load %arg2[%c0_5, %c0_6] : memref<1x32xf32, #tpu.memory_space<vmem>>, vector<1x32xf32>
    %20 = vector.broadcast %19 : vector<1x32xf32> to vector<16x32xf32>
    %21 = arith.mulf %18, %20 : vector<16x32xf32>
    %c0_7 = arith.constant 0 : index
    %c0_8 = arith.constant 0 : index
    %22 = vector.load %arg3[%c0_7, %c0_8] : memref<1x32xf32, #tpu.memory_space<vmem>>, vector<1x32xf32>
    %23 = vector.broadcast %22 : vector<1x32xf32> to vector<16x32xf32>
    %24 = arith.addf %21, %23 : vector<16x32xf32>
    %25 = arith.truncf %24 : vector<16x32xf32> to vector<16x32xbf16>
    %c0_9 = arith.constant 0 : index
    %c0_10 = arith.constant 0 : index
    %26 = vector.load %arg4[%c0_9, %c0_10] : memref<32x64xbf16, #tpu.memory_space<vmem>>, vector<32x64xbf16>
    %cst_11 = arith.constant dense<0.000000e+00> : vector<16x64xf32>
    %27 = tpu.matmul %25, %26, %cst_11 {dimension_numbers = #tpu.dot_dimension_numbers<[1], [0], [0], [1], [0, 0, 1, 1], [], []>} : vector<16x32xbf16>, vector<32x64xbf16>, vector<16x64xf32> -> vector<16x64xf32>
    %28 = arith.truncf %27 : vector<16x64xf32> to vector<16x64xbf16>
    %c0_12 = arith.constant 0 : index
    %c0_13 = arith.constant 0 : index
    %29 = vector.load %arg5[%c0_12, %c0_13] : memref<16x64xbf16, #tpu.memory_space<vmem>>, vector<16x64xbf16>
    tpu.vector_store %arg5[%c0_12, %c0_13], %28 {strides = array<i32>} : memref<16x64xbf16, #tpu.memory_space<vmem>>, vector<16x64xbf16>,
    return
  }
  func.func @transform_0(%arg0: i32) -> (i32, i32) {
    %c0_i32 = arith.constant 0 : i32
    %c0_i32_0 = arith.constant 0 : i32
    return %arg0, %c0_i32 : i32, i32
  }
  func.func @transform_1(%arg0: i32) -> (i32, i32) {
    %c0_i32 = arith.constant 0 : i32
    %c0_i32_0 = arith.constant 0 : i32
    %c0_i32_1 = arith.constant 0 : i32
    return %c0_i32, %c0_i32_0 : i32, i32
  }
  func.func @transform_2(%arg0: i32) -> (i32, i32) {
    %c0_i32 = arith.constant 0 : i32
    %c0_i32_0 = arith.constant 0 : i32
    %c0_i32_1 = arith.constant 0 : i32
    return %c0_i32, %c0_i32_0 : i32, i32
  }
  func.func @transform_3(%arg0: i32) -> (i32, i32) {
    %c0_i32 = arith.constant 0 : i32
    %c0_i32_0 = arith.constant 0 : i32
    %c0_i32_1 = arith.constant 0 : i32
    return %c0_i32, %c0_i32_0 : i32, i32
  }
  func.func @transform_4(%arg0: i32) -> (i32, i32) {
    %c0_i32 = arith.constant 0 : i32
    %c0_i32_0 = arith.constant 0 : i32
    return %arg0, %c0_i32 : i32, i32
  }
}

module attributes {stable_mosaic.version = 11 : i64} {
  func.func @_cross_attn_kernel(%arg0: i32, %arg1: memref<1x4x8x8xbf16, #tpu.memory_space<vmem>>, %arg2: memref<1x8x4x8xbf16, #tpu.memory_space<vmem>>, %arg3: memref<1x8x4x8xbf16, #tpu.memory_space<vmem>>, %arg4: memref<1x4x1x8xbf16, #tpu.memory_space<vmem>>, %arg5: memref<1x8x7x8xbf16, #tpu.memory_space<vmem>>) attributes {dimension_semantics = [#tpu.dimension_semantics<parallel>], iteration_bounds = array<i64: 2>, scalar_prefetch = 0 : i64, scratch_operands = 0 : i64, tpu.core_type = #tpu.core_type<tc>, window_params = [{transform_indices = @transform_0, window_bounds = array<i64: 1, 4, 8, 8>}, {transform_indices = @transform_1, window_bounds = array<i64: 1, 8, 4, 8>}, {transform_indices = @transform_2, window_bounds = array<i64: 1, 8, 4, 8>}, {transform_indices = @transform_3, window_bounds = array<i64: 1, 4, 1, 8>}, {transform_indices = @transform_4, window_bounds = array<i64: 1, 8, 7, 8>}]} {
    %c0 = arith.constant 0 : index
    %c0_0 = arith.constant 0 : index
    %c0_1 = arith.constant 0 : index
    %c0_2 = arith.constant 0 : index
    %0 = vector.load %arg1[%c0, %c0_0, %c0_1, %c0_2] : memref<1x4x8x8xbf16, #tpu.memory_space<vmem>>, vector<1x4x8x8xbf16>
    %1 = vector.shape_cast %0 : vector<1x4x8x8xbf16> to vector<4x8x8xbf16>
    %c0_3 = arith.constant 0 : index
    %c0_4 = arith.constant 0 : index
    %c0_5 = arith.constant 0 : index
    %c0_6 = arith.constant 0 : index
    %2 = vector.load %arg2[%c0_3, %c0_4, %c0_5, %c0_6] : memref<1x8x4x8xbf16, #tpu.memory_space<vmem>>, vector<1x8x4x8xbf16>
    %3 = vector.shape_cast %2 : vector<1x8x4x8xbf16> to vector<8x4x8xbf16>
    %c0_7 = arith.constant 0 : index
    %c0_8 = arith.constant 0 : index
    %c0_9 = arith.constant 0 : index
    %c0_10 = arith.constant 0 : index
    %4 = vector.load %arg3[%c0_7, %c0_8, %c0_9, %c0_10] : memref<1x8x4x8xbf16, #tpu.memory_space<vmem>>, vector<1x8x4x8xbf16>
    %5 = vector.shape_cast %4 : vector<1x8x4x8xbf16> to vector<8x4x8xbf16>
    %6 = vector.shape_cast %1 : vector<4x8x8xbf16> to vector<4x1x8x8xbf16>
    %7 = vector.shape_cast %6 : vector<4x1x8x8xbf16> to vector<4x1x8x8xbf16>
    %8 = vector.broadcast %7 : vector<4x1x8x8xbf16> to vector<4x2x8x8xbf16>
    %9 = vector.shape_cast %8 : vector<4x2x8x8xbf16> to vector<8x8x8xbf16>
    %cst = arith.constant dense<0.000000e+00> : vector<8x8x4xf32>
    %10 = tpu.matmul %9, %3, %cst {dimension_numbers = #tpu.dot_dimension_numbers<[2], [2], [1], [1], [0, 0, 0, 1, 1, 1], [0], [0]>} : vector<8x8x8xbf16>, vector<8x4x8xbf16>, vector<8x8x4xf32> -> vector<8x8x4xf32>
    %cst_11 = arith.constant 0.353553385 : f32
    %11 = vector.broadcast %cst_11 : f32 to vector<8x8x4xf32>
    %12 = arith.mulf %10, %11 : vector<8x8x4xf32>
    %13 = vector.extract_strided_slice %12 {offsets = [0, 1, 0], sizes = [8, 7, 4], strides = [1, 1, 1]} : vector<8x8x4xf32> to vector<8x7x4xf32>
    %cst_12 = arith.constant dense<0xFF800000> : vector<8x7xf32>
    %14 = vector.multi_reduction <maximumf>, %13, %cst_12 [2] : vector<8x7x4xf32> to vector<8x7xf32>
    %15 = vector.shape_cast %14 : vector<8x7xf32> to vector<8x7x1xf32>
    %16 = vector.broadcast %15 : vector<8x7x1xf32> to vector<8x7x4xf32>
    %17 = arith.subf %13, %16 : vector<8x7x4xf32>
    %18 = math.exp %17 : vector<8x7x4xf32>
    %cst_13 = arith.constant dense<0.000000e+00> : vector<8x7xf32>
    %19 = vector.multi_reduction <add>, %18, %cst_13 [2] : vector<8x7x4xf32> to vector<8x7xf32>
    %20 = vector.shape_cast %19 : vector<8x7xf32> to vector<8x7x1xf32>
    %21 = tpu.reciprocal %20 {approx = true} : vector<8x7x1xf32> -> vector<8x7x1xf32>
    %22 = vector.broadcast %21 : vector<8x7x1xf32> to vector<8x7x4xf32>
    %23 = arith.mulf %18, %22 : vector<8x7x4xf32>
    %24 = arith.truncf %23 : vector<8x7x4xf32> to vector<8x7x4xbf16>
    %cst_14 = arith.constant dense<0.000000e+00> : vector<8x7x8xf32>
    %25 = tpu.matmul %24, %5, %cst_14 {dimension_numbers = #tpu.dot_dimension_numbers<[2], [1], [1], [2], [0, 0, 0, 1, 1, 2], [0], [0]>} : vector<8x7x4xbf16>, vector<8x4x8xbf16>, vector<8x7x8xf32> -> vector<8x7x8xf32>
    %26 = arith.truncf %25 : vector<8x7x8xf32> to vector<8x7x8xbf16>
    %c0_15 = arith.constant 0 : index
    %c0_16 = arith.constant 0 : index
    %c0_17 = arith.constant 0 : index
    %c0_18 = arith.constant 0 : index
    %27 = vector.load %arg5[%c0_15, %c0_16, %c0_17, %c0_18] : memref<1x8x7x8xbf16, #tpu.memory_space<vmem>>, vector<1x8x7x8xbf16>
    %28 = vector.shape_cast %27 : vector<1x8x7x8xbf16> to vector<8x7x8xbf16>
    %29 = vector.shape_cast %26 : vector<8x7x8xbf16> to vector<1x8x7x8xbf16>
    tpu.vector_store %arg5[%c0_15, %c0_16, %c0_17, %c0_18], %29 {strides = array<i32>} : memref<1x8x7x8xbf16, #tpu.memory_space<vmem>>, vector<1x8x7x8xbf16>,
    %30 = vector.extract_strided_slice %12 {offsets = [0, 0, 0], sizes = [8, 1, 4], strides = [1, 1, 1]} : vector<8x8x4xf32> to vector<8x1x4xf32>
    %cst_19 = arith.constant dense<0xFF800000> : vector<8x1xf32>
    %31 = vector.multi_reduction <maximumf>, %30, %cst_19 [2] : vector<8x1x4xf32> to vector<8x1xf32>
    %32 = vector.shape_cast %31 : vector<8x1xf32> to vector<8x1x1xf32>
    %33 = vector.shape_cast %32 : vector<8x1x1xf32> to vector<4x2x1x1xf32>
    %cst_20 = arith.constant dense<0xFF800000> : vector<4x1x1xf32>
    %34 = vector.multi_reduction <maximumf>, %33, %cst_20 [1] : vector<4x2x1x1xf32> to vector<4x1x1xf32>
    %35 = vector.shape_cast %34 : vector<4x1x1xf32> to vector<4x1x1x1xf32>
    %36 = vector.shape_cast %35 : vector<4x1x1x1xf32> to vector<4x1x1x1xf32>
    %37 = vector.broadcast %36 : vector<4x1x1x1xf32> to vector<4x2x1x1xf32>
    %38 = vector.shape_cast %37 : vector<4x2x1x1xf32> to vector<8x1x1xf32>
    %39 = vector.broadcast %38 : vector<8x1x1xf32> to vector<8x1x4xf32>
    %40 = arith.subf %30, %39 : vector<8x1x4xf32>
    %41 = math.exp %40 : vector<8x1x4xf32>
    %cst_21 = arith.constant dense<0.000000e+00> : vector<8x1xf32>
    %42 = vector.multi_reduction <add>, %41, %cst_21 [2] : vector<8x1x4xf32> to vector<8x1xf32>
    %43 = vector.shape_cast %42 : vector<8x1xf32> to vector<8x1x1xf32>
    %44 = vector.shape_cast %43 : vector<8x1x1xf32> to vector<4x2x1x1xf32>
    %cst_22 = arith.constant dense<0.000000e+00> : vector<4x1x1xf32>
    %45 = vector.multi_reduction <add>, %44, %cst_22 [1] : vector<4x2x1x1xf32> to vector<4x1x1xf32>
    %46 = arith.truncf %41 : vector<8x1x4xf32> to vector<8x1x4xbf16>
    %cst_23 = arith.constant dense<0.000000e+00> : vector<8x1x8xf32>
    %47 = tpu.matmul %46, %5, %cst_23 {dimension_numbers = #tpu.dot_dimension_numbers<[2], [1], [1], [2], [0, 0, 0, 1, 1, 2], [0], [0]>} : vector<8x1x4xbf16>, vector<8x4x8xbf16>, vector<8x1x8xf32> -> vector<8x1x8xf32>
    %48 = vector.shape_cast %47 : vector<8x1x8xf32> to vector<4x2x1x8xf32>
    %cst_24 = arith.constant dense<0.000000e+00> : vector<4x1x8xf32>
    %49 = vector.multi_reduction <add>, %48, %cst_24 [1] : vector<4x2x1x8xf32> to vector<4x1x8xf32>
    %50 = tpu.reciprocal %45 {approx = true} : vector<4x1x1xf32> -> vector<4x1x1xf32>
    %51 = vector.broadcast %50 : vector<4x1x1xf32> to vector<4x1x8xf32>
    %52 = arith.mulf %49, %51 : vector<4x1x8xf32>
    %53 = arith.truncf %52 : vector<4x1x8xf32> to vector<4x1x8xbf16>
    %c0_25 = arith.constant 0 : index
    %c0_26 = arith.constant 0 : index
    %c0_27 = arith.constant 0 : index
    %c0_28 = arith.constant 0 : index
    %54 = vector.load %arg4[%c0_25, %c0_26, %c0_27, %c0_28] : memref<1x4x1x8xbf16, #tpu.memory_space<vmem>>, vector<1x4x1x8xbf16>
    %55 = vector.shape_cast %54 : vector<1x4x1x8xbf16> to vector<4x1x8xbf16>
    %56 = vector.shape_cast %53 : vector<4x1x8xbf16> to vector<1x4x1x8xbf16>
    tpu.vector_store %arg4[%c0_25, %c0_26, %c0_27, %c0_28], %56 {strides = array<i32>} : memref<1x4x1x8xbf16, #tpu.memory_space<vmem>>, vector<1x4x1x8xbf16>,
    return
  }
  func.func @transform_0(%arg0: i32) -> (i32, i32, i32, i32) {
    %c0_i32 = arith.constant 0 : i32
    %c0_i32_0 = arith.constant 0 : i32
    %c0_i32_1 = arith.constant 0 : i32
    %c0_i32_2 = arith.constant 0 : i32
    return %arg0, %c0_i32, %c0_i32_0, %c0_i32_1 : i32, i32, i32, i32
  }
  func.func @transform_1(%arg0: i32) -> (i32, i32, i32, i32) {
    %c0_i32 = arith.constant 0 : i32
    %c0_i32_0 = arith.constant 0 : i32
    %c0_i32_1 = arith.constant 0 : i32
    %c0_i32_2 = arith.constant 0 : i32
    return %arg0, %c0_i32, %c0_i32_0, %c0_i32_1 : i32, i32, i32, i32
  }
  func.func @transform_2(%arg0: i32) -> (i32, i32, i32, i32) {
    %c0_i32 = arith.constant 0 : i32
    %c0_i32_0 = arith.constant 0 : i32
    %c0_i32_1 = arith.constant 0 : i32
    %c0_i32_2 = arith.constant 0 : i32
    return %arg0, %c0_i32, %c0_i32_0, %c0_i32_1 : i32, i32, i32, i32
  }
  func.func @transform_3(%arg0: i32) -> (i32, i32, i32, i32) {
    %c0_i32 = arith.constant 0 : i32
    %c0_i32_0 = arith.constant 0 : i32
    %c0_i32_1 = arith.constant 0 : i32
    %c0_i32_2 = arith.constant 0 : i32
    return %arg0, %c0_i32, %c0_i32_0, %c0_i32_1 : i32, i32, i32, i32
  }
  func.func @transform_4(%arg0: i32) -> (i32, i32, i32, i32) {
    %c0_i32 = arith.constant 0 : i32
    %c0_i32_0 = arith.constant 0 : i32
    %c0_i32_1 = arith.constant 0 : i32
    %c0_i32_2 = arith.constant 0 : i32
    return %arg0, %c0_i32, %c0_i32_0, %c0_i32_1 : i32, i32, i32, i32
  }
}

module attributes {stable_mosaic.version = 11 : i64} {
  func.func @kernel(%arg0: i32, %arg1: memref<30x32xbf16, #tpu.memory_space<vmem>>, %arg2: memref<32x32xbf16, #tpu.memory_space<vmem>>, %arg3: memref<1x32xf32, #tpu.memory_space<vmem>>, %arg4: memref<30x32xf32, #tpu.memory_space<vmem>>, %arg5: memref<30x32xf32, #tpu.memory_space<vmem>>) attributes {dimension_semantics = [#tpu.dimension_semantics<parallel>], iteration_bounds = array<i64: 1>, scalar_prefetch = 0 : i64, scratch_operands = 0 : i64, tpu.core_type = #tpu.core_type<tc>, window_params = [{transform_indices = @transform_0, window_bounds = array<i64: 30, 32>}, {pipeline_mode = #tpu.pipeline_mode<synchronous>, transform_indices = @transform_1, window_bounds = array<i64: 32, 32>}, {pipeline_mode = #tpu.pipeline_mode<synchronous>, transform_indices = @transform_2, window_bounds = array<i64: 1, 32>}, {transform_indices = @transform_3, window_bounds = array<i64: 30, 32>}, {transform_indices = @transform_4, window_bounds = array<i64: 30, 32>}]} {
    %c0 = arith.constant 0 : index
    %c0_0 = arith.constant 0 : index
    %0 = vector.load %arg1[%c0, %c0_0] : memref<30x32xbf16, #tpu.memory_space<vmem>>, vector<30x32xbf16>
    %c0_1 = arith.constant 0 : index
    %c0_2 = arith.constant 0 : index
    %1 = vector.load %arg2[%c0_1, %c0_2] : memref<32x32xbf16, #tpu.memory_space<vmem>>, vector<32x32xbf16>
    %cst = arith.constant dense<0.000000e+00> : vector<30x32xf32>
    %2 = tpu.matmul %0, %1, %cst {dimension_numbers = #tpu.dot_dimension_numbers<[1], [0], [0], [1], [0, 0, 1, 1], [], []>} : vector<30x32xbf16>, vector<32x32xbf16>, vector<30x32xf32> -> vector<30x32xf32>
    %c0_3 = arith.constant 0 : index
    %c0_4 = arith.constant 0 : index
    %3 = vector.load %arg3[%c0_3, %c0_4] : memref<1x32xf32, #tpu.memory_space<vmem>>, vector<1x32xf32>
    %4 = vector.broadcast %3 : vector<1x32xf32> to vector<30x32xf32>
    %5 = arith.addf %2, %4 : vector<30x32xf32>
    %c0_5 = arith.constant 0 : index
    %c0_6 = arith.constant 0 : index
    %6 = vector.load %arg4[%c0_5, %c0_6] : memref<30x32xf32, #tpu.memory_space<vmem>>, vector<30x32xf32>
    %7 = arith.addf %5, %6 : vector<30x32xf32>
    %c0_7 = arith.constant 0 : index
    %c0_8 = arith.constant 0 : index
    %8 = vector.load %arg5[%c0_7, %c0_8] : memref<30x32xf32, #tpu.memory_space<vmem>>, vector<30x32xf32>
    tpu.vector_store %arg5[%c0_7, %c0_8], %7 {strides = array<i32>} : memref<30x32xf32, #tpu.memory_space<vmem>>, vector<30x32xf32>,
    return
  }
  func.func @transform_0(%arg0: i32) -> (i32, i32) {
    %c0_i32 = arith.constant 0 : i32
    %c0_i32_0 = arith.constant 0 : i32
    return %arg0, %c0_i32 : i32, i32
  }
  func.func @transform_1(%arg0: i32) -> (i32, i32) {
    %c0_i32 = arith.constant 0 : i32
    %c0_i32_0 = arith.constant 0 : i32
    %c0_i32_1 = arith.constant 0 : i32
    return %c0_i32, %c0_i32_0 : i32, i32
  }
  func.func @transform_2(%arg0: i32) -> (i32, i32) {
    %c0_i32 = arith.constant 0 : i32
    %c0_i32_0 = arith.constant 0 : i32
    %c0_i32_1 = arith.constant 0 : i32
    return %c0_i32, %c0_i32_0 : i32, i32
  }
  func.func @transform_3(%arg0: i32) -> (i32, i32) {
    %c0_i32 = arith.constant 0 : i32
    %c0_i32_0 = arith.constant 0 : i32
    return %arg0, %c0_i32 : i32, i32
  }
  func.func @transform_4(%arg0: i32) -> (i32, i32) {
    %c0_i32 = arith.constant 0 : i32
    %c0_i32_0 = arith.constant 0 : i32
    return %arg0, %c0_i32 : i32, i32
  }
}

module attributes {stable_mosaic.version = 11 : i64} {
  func.func @kernel(%arg0: i32, %arg1: memref<30x32xf32, #tpu.memory_space<vmem>>, %arg2: memref<1x32xf32, #tpu.memory_space<vmem>>, %arg3: memref<1x32xf32, #tpu.memory_space<vmem>>, %arg4: memref<32x96xbf16, #tpu.memory_space<vmem>>, %arg5: memref<30x96xbf16, #tpu.memory_space<vmem>>) attributes {dimension_semantics = [#tpu.dimension_semantics<parallel>], iteration_bounds = array<i64: 1>, scalar_prefetch = 0 : i64, scratch_operands = 0 : i64, tpu.core_type = #tpu.core_type<tc>, window_params = [{transform_indices = @transform_0, window_bounds = array<i64: 30, 32>}, {pipeline_mode = #tpu.pipeline_mode<synchronous>, transform_indices = @transform_1, window_bounds = array<i64: 1, 32>}, {pipeline_mode = #tpu.pipeline_mode<synchronous>, transform_indices = @transform_2, window_bounds = array<i64: 1, 32>}, {pipeline_mode = #tpu.pipeline_mode<synchronous>, transform_indices = @transform_3, window_bounds = array<i64: 32, 96>}, {transform_indices = @transform_4, window_bounds = array<i64: 30, 96>}]} {
    %c0 = arith.constant 0 : index
    %c0_0 = arith.constant 0 : index
    %0 = vector.load %arg1[%c0, %c0_0] : memref<30x32xf32, #tpu.memory_space<vmem>>, vector<30x32xf32>
    %cst = arith.constant dense<0.000000e+00> : vector<30xf32>
    %1 = vector.multi_reduction <add>, %0, %cst [1] : vector<30x32xf32> to vector<30xf32>
    %2 = vector.shape_cast %1 : vector<30xf32> to vector<30x1xf32>
    %cst_1 = arith.constant 3.200000e+01 : f32
    %3 = vector.broadcast %cst_1 : f32 to vector<30x1xf32>
    %4 = arith.divf %2, %3 : vector<30x1xf32>
    %5 = vector.broadcast %4 : vector<30x1xf32> to vector<30x32xf32>
    %6 = arith.subf %0, %5 : vector<30x32xf32>
    %7 = arith.mulf %6, %6 : vector<30x32xf32>
    %cst_2 = arith.constant dense<0.000000e+00> : vector<30xf32>
    %8 = vector.multi_reduction <add>, %7, %cst_2 [1] : vector<30x32xf32> to vector<30xf32>
    %9 = vector.shape_cast %8 : vector<30xf32> to vector<30x1xf32>
    %cst_3 = arith.constant 3.200000e+01 : f32
    %10 = vector.broadcast %cst_3 : f32 to vector<30x1xf32>
    %11 = arith.divf %9, %10 : vector<30x1xf32>
    %12 = vector.broadcast %4 : vector<30x1xf32> to vector<30x32xf32>
    %13 = arith.subf %0, %12 : vector<30x32xf32>
    %cst_4 = arith.constant 9.99999974E-6 : f32
    %14 = vector.broadcast %cst_4 : f32 to vector<30x1xf32>
    %15 = arith.addf %11, %14 : vector<30x1xf32>
    %16 = math.rsqrt %15 : vector<30x1xf32>
    %17 = vector.broadcast %16 : vector<30x1xf32> to vector<30x32xf32>
    %18 = arith.mulf %13, %17 : vector<30x32xf32>
    %c0_5 = arith.constant 0 : index
    %c0_6 = arith.constant 0 : index
    %19 = vector.load %arg2[%c0_5, %c0_6] : memref<1x32xf32, #tpu.memory_space<vmem>>, vector<1x32xf32>
    %20 = vector.broadcast %19 : vector<1x32xf32> to vector<30x32xf32>
    %21 = arith.mulf %18, %20 : vector<30x32xf32>
    %c0_7 = arith.constant 0 : index
    %c0_8 = arith.constant 0 : index
    %22 = vector.load %arg3[%c0_7, %c0_8] : memref<1x32xf32, #tpu.memory_space<vmem>>, vector<1x32xf32>
    %23 = vector.broadcast %22 : vector<1x32xf32> to vector<30x32xf32>
    %24 = arith.addf %21, %23 : vector<30x32xf32>
    %25 = arith.truncf %24 : vector<30x32xf32> to vector<30x32xbf16>
    %c0_9 = arith.constant 0 : index
    %c0_10 = arith.constant 0 : index
    %26 = vector.load %arg4[%c0_9, %c0_10] : memref<32x96xbf16, #tpu.memory_space<vmem>>, vector<32x96xbf16>
    %cst_11 = arith.constant dense<0.000000e+00> : vector<30x96xf32>
    %27 = tpu.matmul %25, %26, %cst_11 {dimension_numbers = #tpu.dot_dimension_numbers<[1], [0], [0], [1], [0, 0, 1, 1], [], []>} : vector<30x32xbf16>, vector<32x96xbf16>, vector<30x96xf32> -> vector<30x96xf32>
    %28 = arith.truncf %27 : vector<30x96xf32> to vector<30x96xbf16>
    %c0_12 = arith.constant 0 : index
    %c0_13 = arith.constant 0 : index
    %29 = vector.load %arg5[%c0_12, %c0_13] : memref<30x96xbf16, #tpu.memory_space<vmem>>, vector<30x96xbf16>
    tpu.vector_store %arg5[%c0_12, %c0_13], %28 {strides = array<i32>} : memref<30x96xbf16, #tpu.memory_space<vmem>>, vector<30x96xbf16>,
    return
  }
  func.func @transform_0(%arg0: i32) -> (i32, i32) {
    %c0_i32 = arith.constant 0 : i32
    %c0_i32_0 = arith.constant 0 : i32
    return %arg0, %c0_i32 : i32, i32
  }
  func.func @transform_1(%arg0: i32) -> (i32, i32) {
    %c0_i32 = arith.constant 0 : i32
    %c0_i32_0 = arith.constant 0 : i32
    %c0_i32_1 = arith.constant 0 : i32
    return %c0_i32, %c0_i32_0 : i32, i32
  }
  func.func @transform_2(%arg0: i32) -> (i32, i32) {
    %c0_i32 = arith.constant 0 : i32
    %c0_i32_0 = arith.constant 0 : i32
    %c0_i32_1 = arith.constant 0 : i32
    return %c0_i32, %c0_i32_0 : i32, i32
  }
  func.func @transform_3(%arg0: i32) -> (i32, i32) {
    %c0_i32 = arith.constant 0 : i32
    %c0_i32_0 = arith.constant 0 : i32
    %c0_i32_1 = arith.constant 0 : i32
    return %c0_i32, %c0_i32_0 : i32, i32
  }
  func.func @transform_4(%arg0: i32) -> (i32, i32) {
    %c0_i32 = arith.constant 0 : i32
    %c0_i32_0 = arith.constant 0 : i32
    return %arg0, %c0_i32 : i32, i32
  }
}

module attributes {stable_mosaic.version = 11 : i64} {
  func.func @kernel(%arg0: i32, %arg1: memref<30x128xbf16, #tpu.memory_space<vmem>>, %arg2: memref<128x32xbf16, #tpu.memory_space<vmem>>, %arg3: memref<1x32xf32, #tpu.memory_space<vmem>>, %arg4: memref<30x32xf32, #tpu.memory_space<vmem>>, %arg5: memref<30x32xf32, #tpu.memory_space<vmem>>) attributes {dimension_semantics = [#tpu.dimension_semantics<parallel>], iteration_bounds = array<i64: 1>, scalar_prefetch = 0 : i64, scratch_operands = 0 : i64, tpu.core_type = #tpu.core_type<tc>, window_params = [{transform_indices = @transform_0, window_bounds = array<i64: 30, 128>}, {pipeline_mode = #tpu.pipeline_mode<synchronous>, transform_indices = @transform_1, window_bounds = array<i64: 128, 32>}, {pipeline_mode = #tpu.pipeline_mode<synchronous>, transform_indices = @transform_2, window_bounds = array<i64: 1, 32>}, {transform_indices = @transform_3, window_bounds = array<i64: 30, 32>}, {transform_indices = @transform_4, window_bounds = array<i64: 30, 32>}]} {
    %c0 = arith.constant 0 : index
    %c0_0 = arith.constant 0 : index
    %0 = vector.load %arg1[%c0, %c0_0] : memref<30x128xbf16, #tpu.memory_space<vmem>>, vector<30x128xbf16>
    %c0_1 = arith.constant 0 : index
    %c0_2 = arith.constant 0 : index
    %1 = vector.load %arg2[%c0_1, %c0_2] : memref<128x32xbf16, #tpu.memory_space<vmem>>, vector<128x32xbf16>
    %cst = arith.constant dense<0.000000e+00> : vector<30x32xf32>
    %2 = tpu.matmul %0, %1, %cst {dimension_numbers = #tpu.dot_dimension_numbers<[1], [0], [0], [1], [0, 0, 1, 1], [], []>} : vector<30x128xbf16>, vector<128x32xbf16>, vector<30x32xf32> -> vector<30x32xf32>
    %c0_3 = arith.constant 0 : index
    %c0_4 = arith.constant 0 : index
    %3 = vector.load %arg3[%c0_3, %c0_4] : memref<1x32xf32, #tpu.memory_space<vmem>>, vector<1x32xf32>
    %4 = vector.broadcast %3 : vector<1x32xf32> to vector<30x32xf32>
    %5 = arith.addf %2, %4 : vector<30x32xf32>
    %c0_5 = arith.constant 0 : index
    %c0_6 = arith.constant 0 : index
    %6 = vector.load %arg4[%c0_5, %c0_6] : memref<30x32xf32, #tpu.memory_space<vmem>>, vector<30x32xf32>
    %7 = arith.addf %5, %6 : vector<30x32xf32>
    %c0_7 = arith.constant 0 : index
    %c0_8 = arith.constant 0 : index
    %8 = vector.load %arg5[%c0_7, %c0_8] : memref<30x32xf32, #tpu.memory_space<vmem>>, vector<30x32xf32>
    tpu.vector_store %arg5[%c0_7, %c0_8], %7 {strides = array<i32>} : memref<30x32xf32, #tpu.memory_space<vmem>>, vector<30x32xf32>,
    return
  }
  func.func @transform_0(%arg0: i32) -> (i32, i32) {
    %c0_i32 = arith.constant 0 : i32
    %c0_i32_0 = arith.constant 0 : i32
    return %arg0, %c0_i32 : i32, i32
  }
  func.func @transform_1(%arg0: i32) -> (i32, i32) {
    %c0_i32 = arith.constant 0 : i32
    %c0_i32_0 = arith.constant 0 : i32
    %c0_i32_1 = arith.constant 0 : i32
    return %c0_i32, %c0_i32_0 : i32, i32
  }
  func.func @transform_2(%arg0: i32) -> (i32, i32) {
    %c0_i32 = arith.constant 0 : i32
    %c0_i32_0 = arith.constant 0 : i32
    %c0_i32_1 = arith.constant 0 : i32
    return %c0_i32, %c0_i32_0 : i32, i32
  }
  func.func @transform_3(%arg0: i32) -> (i32, i32) {
    %c0_i32 = arith.constant 0 : i32
    %c0_i32_0 = arith.constant 0 : i32
    return %arg0, %c0_i32 : i32, i32
  }
  func.func @transform_4(%arg0: i32) -> (i32, i32) {
    %c0_i32 = arith.constant 0 : i32
    %c0_i32_0 = arith.constant 0 : i32
    return %arg0, %c0_i32 : i32, i32
  }
}

module attributes {stable_mosaic.version = 11 : i64} {
  func.func @_var_attn_kernel(%arg0: i32, %arg1: memref<1x3x4x1x8xbf16, #tpu.memory_space<vmem>>, %arg2: memref<1x3x8x7x8xbf16, #tpu.memory_space<vmem>>, %arg3: memref<1x1x8xf32, #tpu.memory_space<vmem>>, %arg4: memref<1x4x1x8xbf16, #tpu.memory_space<vmem>>, %arg5: memref<1x8x7x8xbf16, #tpu.memory_space<vmem>>) attributes {dimension_semantics = [#tpu.dimension_semantics<parallel>], iteration_bounds = array<i64: 2>, scalar_prefetch = 0 : i64, scratch_operands = 0 : i64, tpu.core_type = #tpu.core_type<tc>, window_params = [{transform_indices = @transform_0, window_bounds = array<i64: 1, 3, 4, 1, 8>}, {transform_indices = @transform_1, window_bounds = array<i64: 1, 3, 8, 7, 8>}, {transform_indices = @transform_2, window_bounds = array<i64: 1, 1, 8>}, {transform_indices = @transform_3, window_bounds = array<i64: 1, 4, 1, 8>}, {transform_indices = @transform_4, window_bounds = array<i64: 1, 8, 7, 8>}]} {
    %c0 = arith.constant 0 : index
    %c0_0 = arith.constant 0 : index
    %c0_1 = arith.constant 0 : index
    %c0_2 = arith.constant 0 : index
    %c0_3 = arith.constant 0 : index
    %0 = vector.load %arg1[%c0, %c0_0, %c0_1, %c0_2, %c0_3] : memref<1x3x4x1x8xbf16, #tpu.memory_space<vmem>>, vector<1x1x4x1x8xbf16>
    %1 = vector.shape_cast %0 : vector<1x1x4x1x8xbf16> to vector<4x1x8xbf16>
    %c0_4 = arith.constant 0 : index
    %c1 = arith.constant 1 : index
    %c0_5 = arith.constant 0 : index
    %c0_6 = arith.constant 0 : index
    %c0_7 = arith.constant 0 : index
    %2 = vector.load %arg1[%c0_4, %c1, %c0_5, %c0_6, %c0_7] : memref<1x3x4x1x8xbf16, #tpu.memory_space<vmem>>, vector<1x1x4x1x8xbf16>
    %3 = vector.shape_cast %2 : vector<1x1x4x1x8xbf16> to vector<4x1x8xbf16>
    %c0_8 = arith.constant 0 : index
    %c2 = arith.constant 2 : index
    %c0_9 = arith.constant 0 : index
    %c0_10 = arith.constant 0 : index
    %c0_11 = arith.constant 0 : index
    %4 = vector.load %arg1[%c0_8, %c2, %c0_9, %c0_10, %c0_11] : memref<1x3x4x1x8xbf16, #tpu.memory_space<vmem>>, vector<1x1x4x1x8xbf16>
    %5 = vector.shape_cast %4 : vector<1x1x4x1x8xbf16> to vector<4x1x8xbf16>
    %c0_12 = arith.constant 0 : index
    %c0_13 = arith.constant 0 : index
    %c0_14 = arith.constant 0 : index
    %c0_15 = arith.constant 0 : index
    %c0_16 = arith.constant 0 : index
    %6 = vector.load %arg2[%c0_12, %c0_13, %c0_14, %c0_15, %c0_16] : memref<1x3x8x7x8xbf16, #tpu.memory_space<vmem>>, vector<1x1x8x7x8xbf16>
    %7 = vector.shape_cast %6 : vector<1x1x8x7x8xbf16> to vector<8x7x8xbf16>
    %c0_17 = arith.constant 0 : index
    %c1_18 = arith.constant 1 : index
    %c0_19 = arith.constant 0 : index
    %c0_20 = arith.constant 0 : index
    %c0_21 = arith.constant 0 : index
    %8 = vector.load %arg2[%c0_17, %c1_18, %c0_19, %c0_20, %c0_21] : memref<1x3x8x7x8xbf16, #tpu.memory_space<vmem>>, vector<1x1x8x7x8xbf16>
    %9 = vector.shape_cast %8 : vector<1x1x8x7x8xbf16> to vector<8x7x8xbf16>
    %c0_22 = arith.constant 0 : index
    %c2_23 = arith.constant 2 : index
    %c0_24 = arith.constant 0 : index
    %c0_25 = arith.constant 0 : index
    %c0_26 = arith.constant 0 : index
    %10 = vector.load %arg2[%c0_22, %c2_23, %c0_24, %c0_25, %c0_26] : memref<1x3x8x7x8xbf16, #tpu.memory_space<vmem>>, vector<1x1x8x7x8xbf16>
    %11 = vector.shape_cast %10 : vector<1x1x8x7x8xbf16> to vector<8x7x8xbf16>
    %c0_27 = arith.constant 0 : index
    %c0_28 = arith.constant 0 : index
    %c0_29 = arith.constant 0 : index
    %12 = vector.load %arg3[%c0_27, %c0_28, %c0_29] : memref<1x1x8xf32, #tpu.memory_space<vmem>>, vector<1x1x8xf32>
    %13 = vector.shape_cast %12 : vector<1x1x8xf32> to vector<1x8xf32>
    %14 = vector.extract_strided_slice %13 {offsets = [0, 0], sizes = [1, 1], strides = [1, 1]} : vector<1x8xf32> to vector<1x1xf32>
    %15 = vector.extract_strided_slice %13 {offsets = [0, 1], sizes = [1, 7], strides = [1, 1]} : vector<1x8xf32> to vector<1x7xf32>
    %16 = vector.shape_cast %1 : vector<4x1x8xbf16> to vector<4x1x1x8xbf16>
    %17 = vector.shape_cast %16 : vector<4x1x1x8xbf16> to vector<4x1x1x8xbf16>
    %18 = vector.broadcast %17 : vector<4x1x1x8xbf16> to vector<4x2x1x8xbf16>
    %19 = vector.shape_cast %18 : vector<4x2x1x8xbf16> to vector<8x1x8xbf16>
    %20 = vector.shape_cast %3 : vector<4x1x8xbf16> to vector<4x1x1x8xbf16>
    %21 = vector.shape_cast %20 : vector<4x1x1x8xbf16> to vector<4x1x1x8xbf16>
    %22 = vector.broadcast %21 : vector<4x1x1x8xbf16> to vector<4x2x1x8xbf16>
    %23 = vector.shape_cast %22 : vector<4x2x1x8xbf16> to vector<8x1x8xbf16>
    %24 = vector.shape_cast %5 : vector<4x1x8xbf16> to vector<4x1x1x8xbf16>
    %25 = vector.shape_cast %24 : vector<4x1x1x8xbf16> to vector<4x1x1x8xbf16>
    %26 = vector.broadcast %25 : vector<4x1x1x8xbf16> to vector<4x2x1x8xbf16>
    %27 = vector.shape_cast %26 : vector<4x2x1x8xbf16> to vector<8x1x8xbf16>
    %28 = arith.extf %7 : vector<8x7x8xbf16> to vector<8x7x8xf32>
    %29 = arith.extf %23 : vector<8x1x8xbf16> to vector<8x1x8xf32>
    %30 = vector.broadcast %29 : vector<8x1x8xf32> to vector<8x7x8xf32>
    %31 = arith.mulf %28, %30 : vector<8x7x8xf32>
    %cst = arith.constant dense<0.000000e+00> : vector<8x7xf32>
    %32 = vector.multi_reduction <add>, %31, %cst [2] : vector<8x7x8xf32> to vector<8x7xf32>
    %33 = vector.shape_cast %32 : vector<8x7xf32> to vector<8x7x1xf32>
    %cst_30 = arith.constant 0.353553385 : f32
    %34 = vector.broadcast %cst_30 : f32 to vector<8x7x1xf32>
    %35 = arith.mulf %33, %34 : vector<8x7x1xf32>
    %36 = vector.shape_cast %14 : vector<1x1xf32> to vector<1x1x1xf32>
    %37 = vector.broadcast %36 : vector<1x1x1xf32> to vector<8x7x1xf32>
    %38 = arith.addf %35, %37 : vector<8x7x1xf32>
    %cst_31 = arith.constant dense<0.000000e+00> : vector<8x7x7xf32>
    %39 = tpu.matmul %7, %9, %cst_31 {dimension_numbers = #tpu.dot_dimension_numbers<[2], [2], [1], [1], [0, 0, 0, 1, 1, 1], [0], [0]>} : vector<8x7x8xbf16>, vector<8x7x8xbf16>, vector<8x7x7xf32> -> vector<8x7x7xf32>
    %cst_32 = arith.constant 0.353553385 : f32
    %40 = vector.broadcast %cst_32 : f32 to vector<8x7x7xf32>
    %41 = arith.mulf %39, %40 : vector<8x7x7xf32>
    %42 = vector.shape_cast %15 : vector<1x7xf32> to vector<1x1x7xf32>
    %43 = vector.broadcast %42 : vector<1x1x7xf32> to vector<8x7x7xf32>
    %44 = arith.addf %41, %43 : vector<8x7x7xf32>
    %cst_33 = arith.constant dense<0xFF800000> : vector<8x7xf32>
    %45 = vector.multi_reduction <maximumf>, %44, %cst_33 [2] : vector<8x7x7xf32> to vector<8x7xf32>
    %46 = vector.shape_cast %45 : vector<8x7xf32> to vector<8x7x1xf32>
    %47 = arith.maximumf %46, %38 : vector<8x7x1xf32>
    %48 = vector.broadcast %47 : vector<8x7x1xf32> to vector<8x7x7xf32>
    %49 = arith.subf %44, %48 : vector<8x7x7xf32>
    %50 = math.exp %49 : vector<8x7x7xf32>
    %51 = arith.subf %38, %47 : vector<8x7x1xf32>
    %52 = math.exp %51 : vector<8x7x1xf32>
    %cst_34 = arith.constant dense<0.000000e+00> : vector<8x7xf32>
    %53 = vector.multi_reduction <add>, %50, %cst_34 [2] : vector<8x7x7xf32> to vector<8x7xf32>
    %54 = vector.shape_cast %53 : vector<8x7xf32> to vector<8x7x1xf32>
    %55 = arith.addf %54, %52 : vector<8x7x1xf32>
    %56 = arith.truncf %50 : vector<8x7x7xf32> to vector<8x7x7xbf16>
    %cst_35 = arith.constant dense<0.000000e+00> : vector<8x7x8xf32>
    %57 = tpu.matmul %56, %11, %cst_35 {dimension_numbers = #tpu.dot_dimension_numbers<[2], [1], [1], [2], [0, 0, 0, 1, 1, 2], [0], [0]>} : vector<8x7x7xbf16>, vector<8x7x8xbf16>, vector<8x7x8xf32> -> vector<8x7x8xf32>
    %58 = arith.extf %27 : vector<8x1x8xbf16> to vector<8x1x8xf32>
    %59 = vector.broadcast %52 : vector<8x7x1xf32> to vector<8x7x8xf32>
    %60 = vector.broadcast %58 : vector<8x1x8xf32> to vector<8x7x8xf32>
    %61 = arith.mulf %59, %60 : vector<8x7x8xf32>
    %62 = arith.addf %57, %61 : vector<8x7x8xf32>
    %63 = tpu.reciprocal %55 {approx = true} : vector<8x7x1xf32> -> vector<8x7x1xf32>
    %64 = vector.broadcast %63 : vector<8x7x1xf32> to vector<8x7x8xf32>
    %65 = arith.mulf %62, %64 : vector<8x7x8xf32>
    %66 = arith.truncf %65 : vector<8x7x8xf32> to vector<8x7x8xbf16>
    %c0_36 = arith.constant 0 : index
    %c0_37 = arith.constant 0 : index
    %c0_38 = arith.constant 0 : index
    %c0_39 = arith.constant 0 : index
    %67 = vector.load %arg5[%c0_36, %c0_37, %c0_38, %c0_39] : memref<1x8x7x8xbf16, #tpu.memory_space<vmem>>, vector<1x8x7x8xbf16>
    %68 = vector.shape_cast %67 : vector<1x8x7x8xbf16> to vector<8x7x8xbf16>
    %69 = vector.shape_cast %66 : vector<8x7x8xbf16> to vector<1x8x7x8xbf16>
    tpu.vector_store %arg5[%c0_36, %c0_37, %c0_38, %c0_39], %69 {strides = array<i32>} : memref<1x8x7x8xbf16, #tpu.memory_space<vmem>>, vector<1x8x7x8xbf16>,
    %70 = arith.extf %1 : vector<4x1x8xbf16> to vector<4x1x8xf32>
    %71 = arith.extf %3 : vector<4x1x8xbf16> to vector<4x1x8xf32>
    %72 = arith.mulf %70, %71 : vector<4x1x8xf32>
    %cst_40 = arith.constant dense<0.000000e+00> : vector<4x1xf32>
    %73 = vector.multi_reduction <add>, %72, %cst_40 [2] : vector<4x1x8xf32> to vector<4x1xf32>
    %74 = vector.shape_cast %73 : vector<4x1xf32> to vector<4x1x1xf32>
    %cst_41 = arith.constant 0.353553385 : f32
    %75 = vector.broadcast %cst_41 : f32 to vector<4x1x1xf32>
    %76 = arith.mulf %74, %75 : vector<4x1x1xf32>
    %77 = vector.shape_cast %14 : vector<1x1xf32> to vector<1x1x1xf32>
    %78 = vector.broadcast %77 : vector<1x1x1xf32> to vector<4x1x1xf32>
    %79 = arith.addf %76, %78 : vector<4x1x1xf32>
    %cst_42 = arith.constant dense<0.000000e+00> : vector<8x1x7xf32>
    %80 = tpu.matmul %19, %9, %cst_42 {dimension_numbers = #tpu.dot_dimension_numbers<[2], [2], [1], [1], [0, 0, 0, 1, 1, 1], [0], [0]>} : vector<8x1x8xbf16>, vector<8x7x8xbf16>, vector<8x1x7xf32> -> vector<8x1x7xf32>
    %cst_43 = arith.constant 0.353553385 : f32
    %81 = vector.broadcast %cst_43 : f32 to vector<8x1x7xf32>
    %82 = arith.mulf %80, %81 : vector<8x1x7xf32>
    %83 = vector.shape_cast %15 : vector<1x7xf32> to vector<1x1x7xf32>
    %84 = vector.broadcast %83 : vector<1x1x7xf32> to vector<8x1x7xf32>
    %85 = arith.addf %82, %84 : vector<8x1x7xf32>
    %cst_44 = arith.constant dense<0xFF800000> : vector<8x1xf32>
    %86 = vector.multi_reduction <maximumf>, %85, %cst_44 [2] : vector<8x1x7xf32> to vector<8x1xf32>
    %87 = vector.shape_cast %86 : vector<8x1xf32> to vector<8x1x1xf32>
    %88 = vector.shape_cast %87 : vector<8x1x1xf32> to vector<4x2x1x1xf32>
    %cst_45 = arith.constant dense<0xFF800000> : vector<4x1x1xf32>
    %89 = vector.multi_reduction <maximumf>, %88, %cst_45 [1] : vector<4x2x1x1xf32> to vector<4x1x1xf32>
    %90 = arith.maximumf %89, %79 : vector<4x1x1xf32>
    %91 = vector.shape_cast %90 : vector<4x1x1xf32> to vector<4x1x1x1xf32>
    %92 = vector.shape_cast %91 : vector<4x1x1x1xf32> to vector<4x1x1x1xf32>
    %93 = vector.broadcast %92 : vector<4x1x1x1xf32> to vector<4x2x1x1xf32>
    %94 = vector.shape_cast %93 : vector<4x2x1x1xf32> to vector<8x1x1xf32>
    %95 = vector.broadcast %94 : vector<8x1x1xf32> to vector<8x1x7xf32>
    %96 = arith.subf %85, %95 : vector<8x1x7xf32>
    %97 = math.exp %96 : vector<8x1x7xf32>
    %98 = arith.subf %79, %90 : vector<4x1x1xf32>
    %99 = math.exp %98 : vector<4x1x1xf32>
    %cst_46 = arith.constant dense<0.000000e+00> : vector<8x1xf32>
    %100 = vector.multi_reduction <add>, %97, %cst_46 [2] : vector<8x1x7xf32> to vector<8x1xf32>
    %101 = vector.shape_cast %100 : vector<8x1xf32> to vector<8x1x1xf32>
    %102 = vector.shape_cast %101 : vector<8x1x1xf32> to vector<4x2x1x1xf32>
    %cst_47 = arith.constant dense<0.000000e+00> : vector<4x1x1xf32>
    %103 = vector.multi_reduction <add>, %102, %cst_47 [1] : vector<4x2x1x1xf32> to vector<4x1x1xf32>
    %104 = arith.addf %103, %99 : vector<4x1x1xf32>
    %105 = arith.truncf %97 : vector<8x1x7xf32> to vector<8x1x7xbf16>
    %cst_48 = arith.constant dense<0.000000e+00> : vector<8x1x8xf32>
    %106 = tpu.matmul %105, %11, %cst_48 {dimension_numbers = #tpu.dot_dimension_numbers<[2], [1], [1], [2], [0, 0, 0, 1, 1, 2], [0], [0]>} : vector<8x1x7xbf16>, vector<8x7x8xbf16>, vector<8x1x8xf32> -> vector<8x1x8xf32>
    %107 = vector.shape_cast %106 : vector<8x1x8xf32> to vector<4x2x1x8xf32>
    %cst_49 = arith.constant dense<0.000000e+00> : vector<4x1x8xf32>
    %108 = vector.multi_reduction <add>, %107, %cst_49 [1] : vector<4x2x1x8xf32> to vector<4x1x8xf32>
    %109 = arith.extf %5 : vector<4x1x8xbf16> to vector<4x1x8xf32>
    %110 = vector.broadcast %99 : vector<4x1x1xf32> to vector<4x1x8xf32>
    %111 = arith.mulf %110, %109 : vector<4x1x8xf32>
    %112 = arith.addf %108, %111 : vector<4x1x8xf32>
    %113 = tpu.reciprocal %104 {approx = true} : vector<4x1x1xf32> -> vector<4x1x1xf32>
    %114 = vector.broadcast %113 : vector<4x1x1xf32> to vector<4x1x8xf32>
    %115 = arith.mulf %112, %114 : vector<4x1x8xf32>
    %116 = arith.truncf %115 : vector<4x1x8xf32> to vector<4x1x8xbf16>
    %c0_50 = arith.constant 0 : index
    %c0_51 = arith.constant 0 : index
    %c0_52 = arith.constant 0 : index
    %c0_53 = arith.constant 0 : index
    %117 = vector.load %arg4[%c0_50, %c0_51, %c0_52, %c0_53] : memref<1x4x1x8xbf16, #tpu.memory_space<vmem>>, vector<1x4x1x8xbf16>
    %118 = vector.shape_cast %117 : vector<1x4x1x8xbf16> to vector<4x1x8xbf16>
    %119 = vector.shape_cast %116 : vector<4x1x8xbf16> to vector<1x4x1x8xbf16>
    tpu.vector_store %arg4[%c0_50, %c0_51, %c0_52, %c0_53], %119 {strides = array<i32>} : memref<1x4x1x8xbf16, #tpu.memory_space<vmem>>, vector<1x4x1x8xbf16>,
    return
  }
  func.func @transform_0(%arg0: i32) -> (i32, i32, i32, i32, i32) {
    %c0_i32 = arith.constant 0 : i32
    %c0_i32_0 = arith.constant 0 : i32
    %c0_i32_1 = arith.constant 0 : i32
    %c0_i32_2 = arith.constant 0 : i32
    %c0_i32_3 = arith.constant 0 : i32
    return %arg0, %c0_i32, %c0_i32_0, %c0_i32_1, %c0_i32_2 : i32, i32, i32, i32, i32
  }
  func.func @transform_1(%arg0: i32) -> (i32, i32, i32, i32, i32) {
    %c0_i32 = arith.constant 0 : i32
    %c0_i32_0 = arith.constant 0 : i32
    %c0_i32_1 = arith.constant 0 : i32
    %c0_i32_2 = arith.constant 0 : i32
    %c0_i32_3 = arith.constant 0 : i32
    return %arg0, %c0_i32, %c0_i32_0, %c0_i32_1, %c0_i32_2 : i32, i32, i32, i32, i32
  }
  func.func @transform_2(%arg0: i32) -> (i32, i32, i32) {
    %c0_i32 = arith.constant 0 : i32
    %c0_i32_0 = arith.constant 0 : i32
    %c0_i32_1 = arith.constant 0 : i32
    return %arg0, %c0_i32, %c0_i32_0 : i32, i32, i32
  }
  func.func @transform_3(%arg0: i32) -> (i32, i32, i32, i32) {
    %c0_i32 = arith.constant 0 : i32
    %c0_i32_0 = arith.constant 0 : i32
    %c0_i32_1 = arith.constant 0 : i32
    %c0_i32_2 = arith.constant 0 : i32
    return %arg0, %c0_i32, %c0_i32_0, %c0_i32_1 : i32, i32, i32, i32
  }
  func.func @transform_4(%arg0: i32) -> (i32, i32, i32, i32) {
    %c0_i32 = arith.constant 0 : i32
    %c0_i32_0 = arith.constant 0 : i32
    %c0_i32_1 = arith.constant 0 : i32
    %c0_i32_2 = arith.constant 0 : i32
    return %arg0, %c0_i32, %c0_i32_0, %c0_i32_1 : i32, i32, i32, i32
  }
}

module attributes {stable_mosaic.version = 11 : i64} {
  func.func @kernel(%arg0: i32, %arg1: memref<30x32xf32, #tpu.memory_space<vmem>>, %arg2: memref<1x32xf32, #tpu.memory_space<vmem>>, %arg3: memref<1x32xf32, #tpu.memory_space<vmem>>, %arg4: memref<32x128xbf16, #tpu.memory_space<vmem>>, %arg5: memref<1x128xf32, #tpu.memory_space<vmem>>, %arg6: memref<30x128xbf16, #tpu.memory_space<vmem>>) attributes {dimension_semantics = [#tpu.dimension_semantics<parallel>], iteration_bounds = array<i64: 1>, scalar_prefetch = 0 : i64, scratch_operands = 0 : i64, tpu.core_type = #tpu.core_type<tc>, window_params = [{transform_indices = @transform_0, window_bounds = array<i64: 30, 32>}, {pipeline_mode = #tpu.pipeline_mode<synchronous>, transform_indices = @transform_1, window_bounds = array<i64: 1, 32>}, {pipeline_mode = #tpu.pipeline_mode<synchronous>, transform_indices = @transform_2, window_bounds = array<i64: 1, 32>}, {pipeline_mode = #tpu.pipeline_mode<synchronous>, transform_indices = @transform_3, window_bounds = array<i64: 32, 128>}, {pipeline_mode = #tpu.pipeline_mode<synchronous>, transform_indices = @transform_4, window_bounds = array<i64: 1, 128>}, {transform_indices = @transform_5, window_bounds = array<i64: 30, 128>}]} {
    %c0 = arith.constant 0 : index
    %c0_0 = arith.constant 0 : index
    %0 = vector.load %arg1[%c0, %c0_0] : memref<30x32xf32, #tpu.memory_space<vmem>>, vector<30x32xf32>
    %cst = arith.constant dense<0.000000e+00> : vector<30xf32>
    %1 = vector.multi_reduction <add>, %0, %cst [1] : vector<30x32xf32> to vector<30xf32>
    %2 = vector.shape_cast %1 : vector<30xf32> to vector<30x1xf32>
    %cst_1 = arith.constant 3.200000e+01 : f32
    %3 = vector.broadcast %cst_1 : f32 to vector<30x1xf32>
    %4 = arith.divf %2, %3 : vector<30x1xf32>
    %5 = vector.broadcast %4 : vector<30x1xf32> to vector<30x32xf32>
    %6 = arith.subf %0, %5 : vector<30x32xf32>
    %7 = arith.mulf %6, %6 : vector<30x32xf32>
    %cst_2 = arith.constant dense<0.000000e+00> : vector<30xf32>
    %8 = vector.multi_reduction <add>, %7, %cst_2 [1] : vector<30x32xf32> to vector<30xf32>
    %9 = vector.shape_cast %8 : vector<30xf32> to vector<30x1xf32>
    %cst_3 = arith.constant 3.200000e+01 : f32
    %10 = vector.broadcast %cst_3 : f32 to vector<30x1xf32>
    %11 = arith.divf %9, %10 : vector<30x1xf32>
    %12 = vector.broadcast %4 : vector<30x1xf32> to vector<30x32xf32>
    %13 = arith.subf %0, %12 : vector<30x32xf32>
    %cst_4 = arith.constant 9.99999974E-6 : f32
    %14 = vector.broadcast %cst_4 : f32 to vector<30x1xf32>
    %15 = arith.addf %11, %14 : vector<30x1xf32>
    %16 = math.rsqrt %15 : vector<30x1xf32>
    %17 = vector.broadcast %16 : vector<30x1xf32> to vector<30x32xf32>
    %18 = arith.mulf %13, %17 : vector<30x32xf32>
    %c0_5 = arith.constant 0 : index
    %c0_6 = arith.constant 0 : index
    %19 = vector.load %arg2[%c0_5, %c0_6] : memref<1x32xf32, #tpu.memory_space<vmem>>, vector<1x32xf32>
    %20 = vector.broadcast %19 : vector<1x32xf32> to vector<30x32xf32>
    %21 = arith.mulf %18, %20 : vector<30x32xf32>
    %c0_7 = arith.constant 0 : index
    %c0_8 = arith.constant 0 : index
    %22 = vector.load %arg3[%c0_7, %c0_8] : memref<1x32xf32, #tpu.memory_space<vmem>>, vector<1x32xf32>
    %23 = vector.broadcast %22 : vector<1x32xf32> to vector<30x32xf32>
    %24 = arith.addf %21, %23 : vector<30x32xf32>
    %25 = arith.truncf %24 : vector<30x32xf32> to vector<30x32xbf16>
    %c0_9 = arith.constant 0 : index
    %c0_10 = arith.constant 0 : index
    %26 = vector.load %arg4[%c0_9, %c0_10] : memref<32x128xbf16, #tpu.memory_space<vmem>>, vector<32x128xbf16>
    %cst_11 = arith.constant dense<0.000000e+00> : vector<30x128xf32>
    %27 = tpu.matmul %25, %26, %cst_11 {dimension_numbers = #tpu.dot_dimension_numbers<[1], [0], [0], [1], [0, 0, 1, 1], [], []>} : vector<30x32xbf16>, vector<32x128xbf16>, vector<30x128xf32> -> vector<30x128xf32>
    %c0_12 = arith.constant 0 : index
    %c0_13 = arith.constant 0 : index
    %28 = vector.load %arg5[%c0_12, %c0_13] : memref<1x128xf32, #tpu.memory_space<vmem>>, vector<1x128xf32>
    %29 = vector.broadcast %28 : vector<1x128xf32> to vector<30x128xf32>
    %30 = arith.addf %27, %29 : vector<30x128xf32>
    %cst_14 = arith.constant 5.000000e-01 : f32
    %31 = vector.broadcast %cst_14 : f32 to vector<30x128xf32>
    %32 = arith.mulf %31, %30 : vector<30x128xf32>
    %cst_15 = arith.constant 0.707106769 : f32
    %33 = vector.broadcast %cst_15 : f32 to vector<30x128xf32>
    %34 = arith.mulf %30, %33 : vector<30x128xf32>
    %35 = math.erf %34 : vector<30x128xf32>
    %cst_16 = arith.constant 1.000000e+00 : f32
    %36 = vector.broadcast %cst_16 : f32 to vector<30x128xf32>
    %37 = arith.addf %36, %35 : vector<30x128xf32>
    %38 = arith.mulf %32, %37 : vector<30x128xf32>
    %39 = arith.truncf %38 : vector<30x128xf32> to vector<30x128xbf16>
    %c0_17 = arith.constant 0 : index
    %c0_18 = arith.constant 0 : index
    %40 = vector.load %arg6[%c0_17, %c0_18] : memref<30x128xbf16, #tpu.memory_space<vmem>>, vector<30x128xbf16>
    tpu.vector_store %arg6[%c0_17, %c0_18], %39 {strides = array<i32>} : memref<30x128xbf16, #tpu.memory_space<vmem>>, vector<30x128xbf16>,
    return
  }
  func.func @transform_0(%arg0: i32) -> (i32, i32) {
    %c0_i32 = arith.constant 0 : i32
    %c0_i32_0 = arith.constant 0 : i32
    return %arg0, %c0_i32 : i32, i32
  }
  func.func @transform_1(%arg0: i32) -> (i32, i32) {
    %c0_i32 = arith.constant 0 : i32
    %c0_i32_0 = arith.constant 0 : i32
    %c0_i32_1 = arith.constant 0 : i32
    return %c0_i32, %c0_i32_0 : i32, i32
  }
  func.func @transform_2(%arg0: i32) -> (i32, i32) {
    %c0_i32 = arith.constant 0 : i32
    %c0_i32_0 = arith.constant 0 : i32
    %c0_i32_1 = arith.constant 0 : i32
    return %c0_i32, %c0_i32_0 : i32, i32
  }
  func.func @transform_3(%arg0: i32) -> (i32, i32) {
    %c0_i32 = arith.constant 0 : i32
    %c0_i32_0 = arith.constant 0 : i32
    %c0_i32_1 = arith.constant 0 : i32
    return %c0_i32, %c0_i32_0 : i32, i32
  }
  func.func @transform_4(%arg0: i32) -> (i32, i32) {
    %c0_i32 = arith.constant 0 : i32
    %c0_i32_0 = arith.constant 0 : i32
    %c0_i32_1 = arith.constant 0 : i32
    return %c0_i32, %c0_i32_0 : i32, i32
  }
  func.func @transform_5(%arg0: i32) -> (i32, i32) {
    %c0_i32 = arith.constant 0 : i32
    %c0_i32_0 = arith.constant 0 : i32
    return %arg0, %c0_i32 : i32, i32
  }
}

</mosaic_0001>

<bundles_post_ra>
// kernel: video_bridge_block.9
= control target key start
LH: loop header
LB: loop body
LE: loop exit
PB: predicated region body
PF: predicated region fallthrough
CT: control target
= control target key end

     0   :  { %vm20_vm0 = vcmask 261120   ;;  %v170_v14 = vmov 0.0   ;;  %vm171_vm1 = vmmov 0   ;;  %vm135_vm2 = vcmask 519168   ;;  %s226_s0 = inlined_call_operand.vmem [shape: f32[16,32], index: 0, kind: input, shape index: {}]   ;;  %s227_s3 = inlined_call_operand.vmem [shape: bf16[32,64], index: 3, kind: input, shape index: {}]   ;;  %s228_s1 = inlined_call_operand.vmem [shape: f32[1,32], index: 1, kind: input, shape index: {}]   ;;  %s229_s2 = inlined_call_operand.vmem [shape: f32[1,32], index: 2, kind: input, shape index: {}]   ;;  %s230_s4 = inlined_call_operand.vmem [shape: bf16[16,64], index: 4, kind: output, shape index: {}]  }
   0x1   :  { %v18_v0 = vld [vmem:[%s226_s0] sm:$0xff]  ;;  %v19_v1 = vld [vmem:[%s226_s0 + $0x8] sm:$0xff]  ;;  %154 = vmatprep.subr.bf16.mxu0 %v170_v14  ;;  %158 = vmatprep.mubr.msk.bf16.mxu0 %vm171_vm1, %v170_v14 }
   0x2   :  { %v21_v2 = vsel %vm20_vm0, %v18_v0, 0.0  ;;  %v24_v3 = vsel %vm20_vm0, %v19_v1, 0.0  ;;  %v164_v15 = vld [vmem:[%s227_s3 + $0x8] sm:$0xff]   ;;  %v165_v16 = vld [vmem:[%s227_s3] sm:$0xff]  }
   0x3   :  { %22 = vadd.xlane.f32.xlu0 %v21_v2  ;;  %155 = vmatpush3.bf16.msra.mxu0 %v164_v15  ;;  %v142_v25 = vld [vmem:[%s228_s1] ss:$0 sm:$0xff] }
   0x4   :  { %156 = vmatprep.subr.bf16.mxu0 %v170_v14  ;;  %v143_v29 = vld [vmem:[%s229_s2] ss:$0 sm:$0xff] }
   0x7   :  { %25 = vadd.xlane.f32.xlu0 %v24_v3  ;;  %157 = vmatpush3.bf16.msra.mxu0 %v165_v16 }
  0x8c   :  { %v23_v4 = vpop.xlane.xlu0 %22 }
  0x8d   :  { %v28_v5 = vmul.f32 0.03125, %v23_v4 }
  0x8f   :  { %v30_v6 = vsub.f32 %v18_v0, %v28_v5 }
  0x90   :  { %v26_v7 = vpop.xlane.xlu0 %25 }
  0x91   :  { %v29_v8 = vmul.f32 0.03125, %v26_v7  ;;  %v32_v9 = vmul.f32 %v30_v6, %v30_v6 }
  0x93   :  { %v31_v10 = vsub.f32 %v19_v1, %v29_v8  ;;  %v34_v11 = vsel %vm20_vm0, %v32_v9, 0.0 }
  0x94   :  { %35 = vadd.xlane.f32.xlu1 %v34_v11 }
  0x95   :  { %v33_v12 = vmul.f32 %v31_v10, %v31_v10 }
  0x97   :  { %v37_v13 = vsel %vm20_vm0, %v33_v12, 0.0 }
  0x98   :  { %38 = vadd.xlane.f32.xlu1 %v37_v13 }
 0x11d   :  { %v36_v17 = vpop.xlane.xlu1 %35 }
 0x11e   :  { %v40_v18 = vmul.f32 0.03125, %v36_v17 }
 0x120   :  { %v42_v19 = vadd.f32 1e-05, %v40_v18 }
 0x121   :  { %v39_v20 = vpop.xlane.xlu1 %38 }
 0x122   :  { %166 = vrsqrt.f32 %v42_v19  ;;  %v41_v21 = vmul.f32 0.03125, %v39_v20 }
 0x124   :  { %v43_v22 = vadd.f32 1e-05, %v41_v21 }
 0x126   :  { %168 = vrsqrt.f32 %v43_v22 }
 0x12f   :  { %v167_v23 = vpop.eup %166 }
 0x130   :  { %v46_v24 = vmul.f32 %v167_v23, %v30_v6 }
 0x132   :  { %v55_v28 = vmul.f32 %v142_v25, %v46_v24 }
 0x133   :  { %v169_v26 = vpop.eup %168 }
 0x134   :  { %v47_v27 = vmul.f32 %v169_v26, %v31_v10  ;;  %v64_v31 = vadd.f32 %v143_v29, %v55_v28 }
 0x136   :  { %v56_v30 = vmul.f32 %v142_v25, %v47_v27 }
 0x138   :  { %v65_v32 = vadd.f32 %v143_v29, %v56_v30 }
 0x13a   :  { %v66_v33 = vpack.c.bf16 %v65_v32, %v64_v31 }
 0x13c   :  { %159 = vmatmul.mubr.msk.bf16.vlgmr.msra.gmra.mxu0 %vm20_vm0, %v66_v33 }
 0x1fc   :  { %v120_v34 = vpop.f32.mrf.mxu0 }
 0x1fd   :  { %v149_v35 = vpack.c.bf16 %v120_v34, %v120_v34 }
 0x1fe   :  { %v160_v36 = vpop.f32.mrf.mxu0 }
 0x1ff   :  { %136 = vst.msk [vmem:[%s230_s4] sm:$0xf] %vm135_vm2, %v149_v35 }
 0x200   :  { %v123_v37 = vpop.f32.mrf.mxu0 }
 0x201   :  { %v150_v38 = vpack.c.bf16 %v123_v37, %v123_v37 }
 0x202   :  { %v161_v39 = vpop.f32.mrf.mxu0 }
 0x203   :  { %137 = vst.msk [vmem:[%s230_s4 + $0x4] sm:$0xf] %vm135_vm2, %v150_v38 }

// kernel: video_bridge_block.10
= control target key start
LH: loop header
LB: loop body
LE: loop exit
PB: predicated region body
PF: predicated region fallthrough
CT: control target
= control target key end

     0   :  { %vm20_vm0 = vcmask 261120   ;;  %v170_v14 = vmov 0.0   ;;  %vm171_vm1 = vmmov 0   ;;  %vm135_vm2 = vcmask 257024   ;;  %s226_s0 = inlined_call_operand.vmem [shape: f32[16,32], index: 0, kind: input, shape index: {}]   ;;  %s227_s3 = inlined_call_operand.vmem [shape: bf16[32,32], index: 3, kind: input, shape index: {}]   ;;  %s228_s1 = inlined_call_operand.vmem [shape: f32[1,32], index: 1, kind: input, shape index: {}]   ;;  %s229_s2 = inlined_call_operand.vmem [shape: f32[1,32], index: 2, kind: input, shape index: {}]   ;;  %s230_s4 = inlined_call_operand.vmem [shape: bf16[16,32], index: 4, kind: output, shape index: {}]  }
   0x1   :  { %v18_v0 = vld [vmem:[%s226_s0] sm:$0xff]  ;;  %v19_v1 = vld [vmem:[%s226_s0 + $0x8] sm:$0xff]  ;;  %154 = vmatprep.subr.bf16.mxu0 %v170_v14  ;;  %158 = vmatprep.mubr.msk.bf16.mxu0 %vm171_vm1, %v170_v14 }
   0x2   :  { %v21_v2 = vsel %vm20_vm0, %v18_v0, 0.0  ;;  %v24_v3 = vsel %vm20_vm0, %v19_v1, 0.0  ;;  %v164_v15 = vld [vmem:[%s227_s3 + $0x8] sm:$0xff]   ;;  %v165_v16 = vld [vmem:[%s227_s3] sm:$0xff]  }
   0x3   :  { %22 = vadd.xlane.f32.xlu0 %v21_v2  ;;  %155 = vmatpush3.bf16.msra.mxu0 %v164_v15  ;;  %v142_v25 = vld [vmem:[%s228_s1] ss:$0 sm:$0xff] }
   0x4   :  { %156 = vmatprep.subr.bf16.mxu0 %v170_v14  ;;  %v143_v29 = vld [vmem:[%s229_s2] ss:$0 sm:$0xff] }
   0x7   :  { %25 = vadd.xlane.f32.xlu0 %v24_v3  ;;  %157 = vmatpush3.bf16.msra.mxu0 %v165_v16 }
  0x8c   :  { %v23_v4 = vpop.xlane.xlu0 %22 }
  0x8d   :  { %v28_v5 = vmul.f32 0.03125, %v23_v4 }
  0x8f   :  { %v30_v6 = vsub.f32 %v18_v0, %v28_v5 }
  0x90   :  { %v26_v7 = vpop.xlane.xlu0 %25 }
  0x91   :  { %v29_v8 = vmul.f32 0.03125, %v26_v7  ;;  %v32_v9 = vmul.f32 %v30_v6, %v30_v6 }
  0x93   :  { %v31_v10 = vsub.f32 %v19_v1, %v29_v8  ;;  %v34_v11 = vsel %vm20_vm0, %v32_v9, 0.0 }
  0x94   :  { %35 = vadd.xlane.f32.xlu1 %v34_v11 }
  0x95   :  { %v33_v12 = vmul.f32 %v31_v10, %v31_v10 }
  0x97   :  { %v37_v13 = vsel %vm20_vm0, %v33_v12, 0.0 }
  0x98   :  { %38 = vadd.xlane.f32.xlu1 %v37_v13 }
 0x11d   :  { %v36_v17 = vpop.xlane.xlu1 %35 }
 0x11e   :  { %v40_v18 = vmul.f32 0.03125, %v36_v17 }
 0x120   :  { %v42_v19 = vadd.f32 1e-05, %v40_v18 }
 0x121   :  { %v39_v20 = vpop.xlane.xlu1 %38 }
 0x122   :  { %166 = vrsqrt.f32 %v42_v19  ;;  %v41_v21 = vmul.f32 0.03125, %v39_v20 }
 0x124   :  { %v43_v22 = vadd.f32 1e-05, %v41_v21 }
 0x126   :  { %168 = vrsqrt.f32 %v43_v22 }
 0x12f   :  { %v167_v23 = vpop.eup %166 }
 0x130   :  { %v46_v24 = vmul.f32 %v167_v23, %v30_v6 }
 0x132   :  { %v55_v28 = vmul.f32 %v142_v25, %v46_v24 }
 0x133   :  { %v169_v26 = vpop.eup %168 }
 0x134   :  { %v47_v27 = vmul.f32 %v169_v26, %v31_v10  ;;  %v64_v31 = vadd.f32 %v143_v29, %v55_v28 }
 0x136   :  { %v56_v30 = vmul.f32 %v142_v25, %v47_v27 }
 0x138   :  { %v65_v32 = vadd.f32 %v143_v29, %v56_v30 }
 0x13a   :  { %v66_v33 = vpack.c.bf16 %v65_v32, %v64_v31 }
 0x13c   :  { %159 = vmatmul.mubr.msk.bf16.vlgmr.msra.gmra.mxu0 %vm20_vm0, %v66_v33 }
 0x1fc   :  { %v120_v34 = vpop.f32.mrf.mxu0 }
 0x1fd   :  { %v149_v35 = vpack.c.bf16 %v120_v34, %v120_v34 }
 0x1fe   :  { %v160_v36 = vpop.f32.mrf.mxu0 }
 0x1ff   :  { %136 = vst.msk [vmem:[%s230_s4] sm:$0xf] %vm135_vm2, %v149_v35 }
 0x200   :  { %v123_v37 = vpop.f32.mrf.mxu0 }
 0x201   :  { %v150_v38 = vpack.c.bf16 %v123_v37, %v123_v37 }
 0x202   :  { %v161_v39 = vpop.f32.mrf.mxu0 }
 0x203   :  { %137 = vst.msk [vmem:[%s230_s4 + $0x4] sm:$0xf] %vm135_vm2, %v150_v38 }

// kernel: video_bridge_block.12
= control target key start
LH: loop header
LB: loop body
LE: loop exit
PB: predicated region body
PF: predicated region fallthrough
CT: control target
= control target key end

     0   :  { %vm55_vm0 = vcmask 261120   ;;  %vm122_vm1 = vcmask 259072   ;;  %s220_s1 = inlined_call_operand.vmem [shape: bf16[32,32], index: 1, kind: input, shape index: {}]   ;;  %s221_s0 = inlined_call_operand.vmem [shape: bf16[30,32], index: 0, kind: input, shape index: {}]   ;;  %s222_s2 = inlined_call_operand.vmem [shape: f32[1,32], index: 2, kind: input, shape index: {}]   ;;  %s223_s3 = inlined_call_operand.vmem [shape: f32[30,32], index: 3, kind: input, shape index: {}]   ;;  %s224_s4 = inlined_call_operand.vmem [shape: f32[30,32], index: 4, kind: output, shape index: {}]  }
   0x1   :  { %v147_v0 = vld [vmem:[%s220_s1 + $0x8] sm:$0xff]   ;;  %v148_v1 = vld [vmem:[%s220_s1] sm:$0xff]   ;;  %v113_v6 = vld [vmem:[%s223_s3 + $0x10] sm:$0xff] }
   0x2   :  { %139 = vmatprep.subr.bf16.mxu0 %v147_v0  ;;  %v149_v2 = vld [vmem:[%s221_s0] sm:$0xff]   ;;  %v150_v3 = vld [vmem:[%s221_s0 + $0x8] sm:$0x7f]   ;;  %v114_v13 = vld [vmem:[%s223_s3 + $0x18] sm:$0x3f] }
   0x3   :  { %140 = vmatpush3.bf16.msra.mxu0 %v147_v0  ;;  %143 = vmatprep.mubr.msk.bf16.mxu0 %vm55_vm0, %v149_v2  ;;  %v128_v4 = vld [vmem:[%s222_s2] ss:$0 sm:$0xff]  ;;  %v112_v17 = vld [vmem:[%s223_s3 + $0x8] sm:$0xff] }
   0x4   :  { %141 = vmatprep.subr.bf16.mxu0 %v148_v1  ;;  %v111_v9 = vld [vmem:[%s223_s3] sm:$0xff] }
   0x7   :  { %142 = vmatpush3.bf16.msra.mxu0 %v148_v1 }
   0xa   :  { %144 = vmatmul.mubr.msk.bf16.vlgmr.msra.gmra.mxu0 %vm55_vm0, %v150_v3 }
  0xca   :  { %v145_v5 = vpop.f32.mrf.mxu0 }
  0xcb   :  { %v105_v7 = vadd.f32 %v145_v5, %v128_v4 }
  0xcc   :  { %v96_v8 = vpop.f32.mrf.mxu0 }
  0xcd   :  { %v117_v10 = vadd.f32 %v113_v6, %v105_v7  ;;  %v97_v11 = vadd.f32 %v128_v4, %v96_v8 }
  0xce   :  { %v146_v12 = vpop.f32.mrf.mxu0 }
  0xcf   :  { %121 = vst.msk [vmem:[%s224_s4 + $0x10] sm:$0xff] %vm55_vm0, %v117_v10  ;;  %v115_v14 = vadd.f32 %v111_v9, %v97_v11  ;;  %v108_v15 = vadd.f32 %v146_v12, %v128_v4 }
  0xd0   :  { %v99_v16 = vpop.f32.mrf.mxu0 }
  0xd1   :  { %119 = vst.msk [vmem:[%s224_s4] sm:$0xff] %vm55_vm0, %v115_v14  ;;  %v118_v18 = vadd.f32 %v114_v13, %v108_v15  ;;  %v100_v19 = vadd.f32 %v128_v4, %v99_v16 }
  0xd3   :  { %123 = vst.msk [vmem:[%s224_s4 + $0x18] sm:$0x3f] %vm122_vm1, %v118_v18  ;;  %v116_v20 = vadd.f32 %v112_v17, %v100_v19 }
  0xd5   :  { %120 = vst.msk [vmem:[%s224_s4 + $0x8] sm:$0xff] %vm55_vm0, %v116_v20 }

// kernel: video_bridge_block.13
= control target key start
LH: loop header
LB: loop body
LE: loop exit
PB: predicated region body
PF: predicated region fallthrough
CT: control target
= control target key end

     0   :  { %vm22_vm0 = vcmask 261120   ;;  %vm32_vm1 = vcmask 259072   ;;  %vm188_vm2 = vcmask 781312   ;;  %vm192_vm3 = vcmask 780288   ;;  %s305_s0 = inlined_call_operand.vmem [shape: f32[30,32], index: 0, kind: input, shape index: {}]   ;;  %s306_s3 = inlined_call_operand.vmem [shape: bf16[32,96], index: 3, kind: input, shape index: {}]   ;;  %s307_s1 = inlined_call_operand.vmem [shape: f32[1,32], index: 1, kind: input, shape index: {}]   ;;  %s308_s2 = inlined_call_operand.vmem [shape: f32[1,32], index: 2, kind: input, shape index: {}]   ;;  %s309_s4 = inlined_call_operand.vmem [shape: bf16[30,96], index: 4, kind: output, shape index: {}]  }
   0x1   :  { %v18_v0 = vld [vmem:[%s305_s0] sm:$0xff]  ;;  %v20_v1 = vld [vmem:[%s305_s0 + $0x10] sm:$0xff]  ;;  %v19_v2 = vld [vmem:[%s305_s0 + $0x8] sm:$0xff] }
   0x2   :  { %v23_v3 = vsel %vm22_vm0, %v18_v0, 0.0  ;;  %v29_v4 = vsel %vm22_vm0, %v20_v1, 0.0  ;;  %v21_v5 = vld [vmem:[%s305_s0 + $0x18] sm:$0x3f]  ;;  %v26_v6 = vsel %vm22_vm0, %v19_v2, 0.0  ;;  %v224_v28 = vld [vmem:[%s306_s3 + $0x8] sm:$0xff]  }
   0x3   :  { %24 = vadd.xlane.f32.xlu0 %v23_v3  ;;  %30 = vadd.xlane.f32.xlu1 %v29_v4  ;;  %v33_v7 = vsel %vm32_vm1, %v21_v5, 0.0  ;;  %v225_v29 = vld [vmem:[%s306_s3] sm:$0xff]  }
   0x4   :  { %216 = vmatprep.subr.bf16.mxu0 %v224_v28  ;;  %v198_v44 = vld [vmem:[%s307_s1] ss:$0 sm:$0xff] }
   0x5   :  { %217 = vmatpush3.bf16.msra.mxu0 %v224_v28  ;;  %v199_v49 = vld [vmem:[%s308_s2] ss:$0 sm:$0xff] }
   0x6   :  { %218 = vmatprep.subr.bf16.mxu0 %v225_v29 }
   0x7   :  { %27 = vadd.xlane.f32.xlu0 %v26_v6  ;;  %34 = vadd.xlane.f32.xlu1 %v33_v7 }
   0x9   :  { %219 = vmatpush3.bf16.msra.mxu0 %v225_v29 }
  0x8c   :  { %v25_v8 = vpop.xlane.xlu0 %24  ;;  %v31_v9 = vpop.xlane.xlu1 %30 }
  0x8d   :  { %v37_v10 = vmul.f32 0.03125, %v25_v8  ;;  %v39_v11 = vmul.f32 0.03125, %v31_v9 }
  0x8f   :  { %v41_v12 = vsub.f32 %v18_v0, %v37_v10  ;;  %v43_v13 = vsub.f32 %v20_v1, %v39_v11 }
  0x90   :  { %v28_v14 = vpop.xlane.xlu0 %27  ;;  %v35_v15 = vpop.xlane.xlu1 %34 }
  0x91   :  { %v38_v16 = vmul.f32 0.03125, %v28_v14  ;;  %v40_v17 = vmul.f32 0.03125, %v35_v15  ;;  %v45_v18 = vmul.f32 %v41_v12, %v41_v12  ;;  %v47_v19 = vmul.f32 %v43_v13, %v43_v13 }
  0x93   :  { %v42_v20 = vsub.f32 %v19_v2, %v38_v16  ;;  %v44_v21 = vsub.f32 %v21_v5, %v40_v17  ;;  %v49_v22 = vsel %vm22_vm0, %v45_v18, 0.0  ;;  %v55_v23 = vsel %vm22_vm0, %v47_v19, 0.0 }
  0x94   :  { %50 = vadd.xlane.f32.xlu0 %v49_v22 }
  0x95   :  { %v46_v24 = vmul.f32 %v42_v20, %v42_v20  ;;  %v48_v25 = vmul.f32 %v44_v21, %v44_v21 }
  0x97   :  { %v52_v26 = vsel %vm22_vm0, %v46_v24, 0.0  ;;  %v58_v27 = vsel %vm32_vm1, %v48_v25, 0.0 }
  0x98   :  { %56 = vadd.xlane.f32.xlu0 %v55_v23  ;;  %53 = vadd.xlane.f32.xlu1 %v52_v26 }
  0x9c   :  { %59 = vadd.xlane.f32.xlu1 %v58_v27 }
 0x11d   :  { %v51_v30 = vpop.xlane.xlu0 %50 }
 0x11e   :  { %v61_v31 = vmul.f32 0.03125, %v51_v30 }
 0x120   :  { %v65_v32 = vadd.f32 1e-05, %v61_v31 }
 0x121   :  { %v54_v33 = vpop.xlane.xlu1 %53  ;;  %v57_v34 = vpop.xlane.xlu0 %56 }
 0x122   :  { %226 = vrsqrt.f32 %v65_v32  ;;  %v62_v35 = vmul.f32 0.03125, %v54_v33  ;;  %v63_v36 = vmul.f32 0.03125, %v57_v34 }
 0x124   :  { %v66_v37 = vadd.f32 1e-05, %v62_v35  ;;  %v67_v38 = vadd.f32 1e-05, %v63_v36 }
 0x125   :  { %v60_v39 = vpop.xlane.xlu1 %59 }
 0x126   :  { %228 = vrsqrt.f32 %v66_v37  ;;  %v64_v40 = vmul.f32 0.03125, %v60_v39 }
 0x127   :  { %230 = vrsqrt.f32 %v67_v38 }
 0x128   :  { %v68_v41 = vadd.f32 1e-05, %v64_v40 }
 0x12a   :  { %232 = vrsqrt.f32 %v68_v41 }
 0x12f   :  { %v227_v42 = vpop.eup %226 }
 0x130   :  { %v73_v43 = vmul.f32 %v227_v42, %v41_v12 }
 0x132   :  { %v84_v48 = vmul.f32 %v198_v44, %v73_v43 }
 0x133   :  { %v229_v45 = vpop.eup %228 }
 0x134   :  { %v231_v46 = vpop.eup %230  ;;  %v74_v47 = vmul.f32 %v229_v45, %v42_v20  ;;  %v95_v53 = vadd.f32 %v199_v49, %v84_v48 }
 0x135   :  { %v75_v50 = vmul.f32 %v231_v46, %v43_v13 }
 0x136   :  { %v85_v51 = vmul.f32 %v198_v44, %v74_v47 }
 0x137   :  { %v233_v52 = vpop.eup %232  ;;  %v86_v56 = vmul.f32 %v198_v44, %v75_v50 }
 0x138   :  { %v96_v54 = vadd.f32 %v199_v49, %v85_v51  ;;  %v76_v55 = vmul.f32 %v233_v52, %v44_v21 }
 0x139   :  { %v97_v59 = vadd.f32 %v199_v49, %v86_v56 }
 0x13a   :  { %v99_v57 = vpack.c.bf16 %v96_v54, %v95_v53  ;;  %v87_v58 = vmul.f32 %v198_v44, %v76_v55 }
 0x13c   :  { %220 = vmatprep.mubr.msk.bf16.mxu0 %vm22_vm0, %v99_v57  ;;  %v98_v60 = vadd.f32 %v199_v49, %v87_v58 }
 0x13e   :  { %v100_v61 = vpack.c.bf16 %v98_v60, %v97_v59 }
 0x140   :  { %221 = vmatmul.mubr.msk.bf16.vlgmr.msra.gmra.mxu0 %vm22_vm0, %v100_v61 }
 0x200   :  { %v222_v62 = vpop.f32.mrf.mxu0 }
 0x201   :  { %v210_v63 = vpack.c.bf16 %v222_v62, %v222_v62 }
 0x202   :  { %v157_v0 = vpop.f32.mrf.mxu0 }
 0x203   :  { %191 = vst.msk [vmem:[%s309_s4 + $0x8] sm:$0xf] %vm188_vm2, %v210_v63  ;;  %v208_v1 = vpack.c.bf16 %v157_v0, %v157_v0 }
 0x204   :  { %v223_v2 = vpop.f32.mrf.mxu0 }
 0x205   :  { %189 = vst.msk [vmem:[%s309_s4] sm:$0xf] %vm188_vm2, %v208_v1  ;;  %v211_v3 = vpack.c.bf16 %v223_v2, %v223_v2 }
 0x206   :  { %v160_v4 = vpop.f32.mrf.mxu0 }
 0x207   :  { %193 = vst.msk [vmem:[%s309_s4 + $0xc] sm:$0x7] %vm192_vm3, %v211_v3  ;;  %v209_v5 = vpack.c.bf16 %v160_v4, %v160_v4 }
 0x209   :  { %190 = vst.msk [vmem:[%s309_s4 + $0x4] sm:$0xf] %vm188_vm2, %v209_v5 }

// kernel: video_bridge_block.11
= control target key start
LH: loop header
LB: loop body
LE: loop exit
PB: predicated region body
PF: predicated region fallthrough
CT: control target
= control target key end

     0   :  { %s2130_s15 = smov 0   ;;  %s2533_s0 = inlined_call_operand.vmem [shape: bf16[2,4,8,8], index: 0, kind: input, shape index: {}]   ;;  %s2534_s1 = inlined_call_operand.vmem [shape: bf16[2,8,4,8], index: 1, kind: input, shape index: {}]   ;;  %s2535_s2 = inlined_call_operand.vmem [shape: bf16[2,8,4,8], index: 2, kind: input, shape index: {}]   ;;  %s2536_s3 = inlined_call_operand.vmem [shape: bf16[2,4,1,8], index: 3, kind: output, shape index: {0}]   ;;  %s2537_s4 = inlined_call_operand.vmem [shape: bf16[2,8,7,8], index: 4, kind: output, shape index: {1}]  }
   0x1 LB: > { %s1793_s16 = sadd.s32 4294967295, %s2101_s15   ;;  %p1797_p0 = scmp.ge.s32.totalorder %s2101_s15, 1  ;;  %s2101_s15 = sphi %s2130_s15, %s15_s15  }
   0x2   : > { %p185_p1 = scmp.lt.s32.totalorder %s2101_s15, 3 }
   0x4   : > { %p186_p2 = pnand %p1797_p0, %p185_p1 }
   0x5   : > { %p225_p3 = scmp.lt.s32.totalorder (!%p186_p2), %s1793_s16, 1 }
   0x6   : > { %189 = sbr.rel (%p186_p2) target bundleno = 801 (0x321), region = 32 }
   0xb   : > { %v2103_v0 = vmov 0.0   ;;  %s2543_s16 = smov (!%p225_p3, %s1793_s16), 1  ;;  %vm2104_vm0 = vmmov 0   ;;  %vm270_vm1 = vcmask 64512   ;;  %vm635_vm2 = vcmask 31745  }
   0xc   : > { %1885 = vmatprep.subr.bf16.mxu0 %v2103_v0  ;;  %1891 = vmatprep.subr.bf16.mxu1 %v2103_v0  ;;  %s2147_s17 = sshll.u32 %s2543_s16, 4  ;;  %vm1193_vm3 = vcmask 24576   ;;  %vm743_vm4 = vcmask 1041408   ;;  %vm739_vm5 = vcmask 31744   ;;  %vm1218_vm6 = vcmask 1040384   ;;  %s1836_s27 = sshll.u32 %s2543_s16, 5 }
   0xd   : > { %1887 = vmatprep.mubr.msk.bf16.mxu0 %vm2104_vm0, %v2103_v0  ;;  %1893 = vmatprep.mubr.msk.bf16.mxu1 %vm2104_vm0, %v2103_v0  ;;  %s2153_s20 = scalar_lea.vmem %s2534_s1, %s2147_s17  ;;  %s2163_s23 = scalar_lea.vmem %s2533_s0, %s2147_s17  ;;  %vm1166_vm7 = vcmask 60416   ;;  %vm1167_vm8 = vsmask.f32 3328  ;;  %vm1643_vm10 = vcmask 57344   ;;  %vm1669_vm11 = vsmask.f32 256 }
   0xe   : > { %v254_v1 = vld [vmem:[%s2153_s20] sm:$0x3]  ;;  %v255_v2 = vld [vmem:[%s2153_s20 + $0x2] sm:$0x3]  ;;  %v256_v5 = vld [vmem:[%s2153_s20 + $0x4] sm:$0x3]  ;;  %s2293_s26 = scalar_lea.vmem %s2535_s2, %s2147_s17  ;;  %s2449_s30 = scalar_lea.vmem %s2537_s4, %s1836_s27 }
   0xf   : > { %v275_v3 = vsel %vm270_vm1, %v254_v1, 0  ;;  %v318_v4 = vsel %vm270_vm1, %v255_v2, 0  ;;  %v257_v6 = vld [vmem:[%s2153_s20 + $0x6] sm:$0x3]  ;;  %v250_v7 = vld [vmem:[%s2163_s23] sm:$0xf]  ;;  %vm2451_vm9 = vmand %vm1166_vm7, %vm1167_vm8 }
  0x10   : > { %1886 = vmatpush3.bf16.xpose.msra.mxu0 %v275_v3  ;;  %1892 = vmatpush3.bf16.xpose.msra.mxu1 %v318_v4  ;;  %v364_v8 = vsel %vm270_vm1, %v256_v5, 0  ;;  %v407_v9 = vsel %vm270_vm1, %v257_v6, 0  ;;  %v258_v10 = vld [vmem:[%s2153_s20 + $0x8] sm:$0x3]  ;;  %v259_v11 = vld [vmem:[%s2153_s20 + $0xa] sm:$0x3]  ;;  %vm2502_vm12 = vmand %vm1643_vm10, %vm1669_vm11 }
  0x11   : > { %1897 = vmatprep.subr.bf16.mxu0 %v2103_v0  ;;  %1903 = vmatprep.subr.bf16.mxu1 %v2103_v0  ;;  %v251_v12 = vld [vmem:[%s2163_s23 + $0x4] sm:$0xf]  ;;  %v453_v13 = vsel %vm270_vm1, %v258_v10, 0  ;;  %v496_v14 = vsel %vm270_vm1, %v259_v11, 0  ;;  %v260_v15 = vld [vmem:[%s2153_s20 + $0xc] sm:$0x3] }
  0x12   : > { %v261_v16 = vld [vmem:[%s2153_s20 + $0xe] sm:$0x3]  ;;  %v252_v17 = vld [vmem:[%s2163_s23 + $0x8] sm:$0xf]  ;;  %v542_v18 = vsel %vm270_vm1, %v260_v15, 0  ;;  %s1804_s5 = sshll.u32 %s2543_s16, 2 }
  0x13   : > { %v585_v19 = vsel %vm270_vm1, %v261_v16, 0  ;;  %v253_v20 = vld [vmem:[%s2163_s23 + $0xc] sm:$0xf]  ;;  %s2499_s8 = scalar_lea.vmem %s2536_s3, %s1804_s5 }
  0x17   : > { %1888 = vmatmul.mubr.msk.bf16.vlgmr.msra.gmra.mxu0 %vm270_vm1, %v250_v7  ;;  %1894 = vmatmul.mubr.msk.bf16.vlgmr.msra.gmra.mxu1 %vm270_vm1, %v250_v7 }
  0x18   : > { %1898 = vmatpush3.bf16.xpose.msra.mxu0 %v364_v8  ;;  %1904 = vmatpush3.bf16.xpose.msra.mxu1 %v407_v9 }
  0x19   : > { %1899 = vmatprep.mubr.msk.bf16.mxu0 %vm2104_vm0, %v2103_v0  ;;  %1905 = vmatprep.mubr.msk.bf16.mxu1 %vm2104_vm0, %v2103_v0 }
  0x1a   : > { %1909 = vmatprep.subr.bf16.mxu0 %v2103_v0  ;;  %1915 = vmatprep.subr.bf16.mxu1 %v2103_v0 }
  0x1f   : > { %1900 = vmatmul.mubr.msk.bf16.vlgmr.msra.gmra.mxu0 %vm270_vm1, %v251_v12  ;;  %1906 = vmatmul.mubr.msk.bf16.vlgmr.msra.gmra.mxu1 %vm270_vm1, %v251_v12 }
  0x20   : > { %1910 = vmatpush3.bf16.xpose.msra.mxu0 %v453_v13  ;;  %1916 = vmatpush3.bf16.xpose.msra.mxu1 %v496_v14 }
  0x21   : > { %1911 = vmatprep.mubr.msk.bf16.mxu0 %vm2104_vm0, %v2103_v0  ;;  %1917 = vmatprep.mubr.msk.bf16.mxu1 %vm2104_vm0, %v2103_v0 }
  0x22   : > { %1921 = vmatprep.subr.bf16.mxu0 %v2103_v0  ;;  %1927 = vmatprep.subr.bf16.mxu1 %v2103_v0 }
  0x27   : > { %1912 = vmatmul.mubr.msk.bf16.vlgmr.msra.gmra.mxu0 %vm270_vm1, %v252_v17  ;;  %1918 = vmatmul.mubr.msk.bf16.vlgmr.msra.gmra.mxu1 %vm270_vm1, %v252_v17 }
  0x28   : > { %1922 = vmatpush3.bf16.xpose.msra.mxu0 %v542_v18  ;;  %1928 = vmatpush3.bf16.xpose.msra.mxu1 %v585_v19 }
  0x29   : > { %1923 = vmatprep.mubr.msk.bf16.mxu0 %vm2104_vm0, %v2103_v0  ;;  %1929 = vmatprep.mubr.msk.bf16.mxu1 %vm2104_vm0, %v2103_v0 }
  0x2a   : > { %1933 = vmatprep.subr.bf16.mxu0 %v2103_v0  ;;  %1939 = vmatprep.subr.bf16.mxu1 %v2103_v0 }
  0x2f   : > { %1924 = vmatmul.mubr.msk.bf16.vlgmr.msra.gmra.mxu0 %vm270_vm1, %v253_v20  ;;  %1930 = vmatmul.mubr.msk.bf16.vlgmr.msra.gmra.mxu1 %vm270_vm1, %v253_v20 }
  0x30   : > { %1935 = vmatprep.mubr.msk.bf16.mxu0 %vm2104_vm0, %v2103_v0  ;;  %1941 = vmatprep.mubr.msk.bf16.mxu1 %vm2104_vm0, %v2103_v0 }
  0xd7   : > { %v311_v21 = vpop.f32.mrf.mxu0  ;;  %v354_v22 = vpop.f32.mrf.mxu1 }
  0xd8   : > { %v2213_v23 = vmul.f32 0.35355338, %v311_v21  ;;  %v2215_v24 = vmul.f32 0.35355338, %v354_v22 }
  0xd9   : > { %v1889_v25 = vpop.f32.mrf.mxu0  ;;  %v1895_v26 = vpop.f32.mrf.mxu1 }
  0xda   : > { %v636_v27 = vsel %vm635_vm2, %v2213_v23, -inf  ;;  %v639_v30 = vsel %vm635_vm2, %v2215_v24, -inf }
  0xdb   : > { %v357_v28 = vpop.f32.mrf.mxu1  ;;  %637 = vmax.xlane.f32.xlu0 %v636_v27  ;;  %v314_v29 = vpop.f32.mrf.mxu0 }
  0xdd   : > { %v1890_v31 = vpop.f32.mrf.mxu0  ;;  %v1896_v32 = vpop.f32.mrf.mxu1 }
  0xdf   : > { %v443_v33 = vpop.f32.mrf.mxu1  ;;  %640 = vmax.xlane.f32.xlu0 %v639_v30  ;;  %v400_v34 = vpop.f32.mrf.mxu0 }
  0xe0   : > { %v2221_v35 = vmul.f32 0.35355338, %v443_v33  ;;  %v2223_v36 = vmul.f32 0.35355338, %v400_v34 }
  0xe1   : > { %v1901_v37 = vpop.f32.mrf.mxu0  ;;  %v1907_v38 = vpop.f32.mrf.mxu1 }
  0xe2   : > { %v642_v39 = vsel %vm635_vm2, %v2223_v36, -inf  ;;  %v645_v42 = vsel %vm635_vm2, %v2221_v35, -inf }
  0xe3   : > { %v446_v40 = vpop.f32.mrf.mxu1  ;;  %643 = vmax.xlane.f32.xlu1 %v642_v39  ;;  %v403_v41 = vpop.f32.mrf.mxu0 }
  0xe5   : > { %v1902_v43 = vpop.f32.mrf.mxu0  ;;  %v1908_v44 = vpop.f32.mrf.mxu1 }
  0xe7   : > { %v532_v45 = vpop.f32.mrf.mxu1  ;;  %646 = vmax.xlane.f32.xlu1 %v645_v42  ;;  %v489_v46 = vpop.f32.mrf.mxu0 }
  0xe8   : > { %v2229_v47 = vmul.f32 0.35355338, %v532_v45  ;;  %v2231_v48 = vmul.f32 0.35355338, %v489_v46 }
  0xe9   : > { %v1913_v49 = vpop.f32.mrf.mxu0  ;;  %v1919_v50 = vpop.f32.mrf.mxu1 }
  0xea   : > { %v651_v51 = vsel %vm635_vm2, %v2229_v47, -inf  ;;  %v648_v52 = vsel %vm635_vm2, %v2231_v48, -inf }
  0xeb   : > { %v535_v53 = vpop.f32.mrf.mxu1  ;;  %652 = vmax.xlane.f32.xlu1 %v651_v51  ;;  %649 = vmax.xlane.f32.xlu0 %v648_v52  ;;  %v492_v54 = vpop.f32.mrf.mxu0  ;;  %v1197_v52 = vsel %vm1193_vm3, %v2215_v24, -inf }
  0xec   : > { %v1194_v53 = vsel %vm1193_vm3, %v2213_v23, -inf  ;;  %v262_v54 = vld [vmem:[%s2293_s26] sm:$0x3] }
  0xed   : > { %v1914_v55 = vpop.f32.mrf.mxu0  ;;  %v1920_v56 = vpop.f32.mrf.mxu1 }
  0xee   : > { %v1203_v55 = vsel %vm1193_vm3, %v2221_v35, -inf  ;;  %v2299_v56 = vsel %vm743_vm4, %v262_v54, 0 }
  0xef   : > { %v578_v57 = vpop.f32.mrf.mxu0  ;;  %v621_v58 = vpop.f32.mrf.mxu1  ;;  %1934 = vmatpush3.bf16.msra.mxu0 %v2299_v56 }
  0xf0   : > { %v2237_v59 = vmul.f32 0.35355338, %v578_v57  ;;  %v2239_v60 = vmul.f32 0.35355338, %v621_v58  ;;  %v1200_v57 = vsel %vm1193_vm3, %v2223_v36, -inf  ;;  %1945 = vmatprep.subr.bf16.mxu0 %v2103_v0 }
  0xf1   : > { %v1925_v61 = vpop.f32.mrf.mxu0  ;;  %v1931_v62 = vpop.f32.mrf.mxu1  ;;  %v263_v58 = vld [vmem:[%s2293_s26 + $0x2] sm:$0x3] }
  0xf2   : > { %v657_v63 = vsel %vm635_vm2, %v2239_v60, -inf  ;;  %v654_v1 = vsel %vm635_vm2, %v2237_v59, -inf  ;;  %v1209_v61 = vsel %vm1193_vm3, %v2229_v47, -inf  ;;  %v2309_v62 = vsel %vm743_vm4, %v263_v58, 0 }
  0xf3   : > { %v624_v2 = vpop.f32.mrf.mxu1  ;;  %658 = vmax.xlane.f32.xlu1 %v657_v63  ;;  %655 = vmax.xlane.f32.xlu0 %v654_v1  ;;  %v581_v3 = vpop.f32.mrf.mxu0  ;;  %v1206_v63 = vsel %vm1193_vm3, %v2231_v48, -inf  ;;  %v1215_v1 = vsel %vm1193_vm3, %v2239_v60, -inf }
  0xf4   : > { %1940 = vmatpush3.bf16.msra.mxu1 %v2309_v62  ;;  %v264_v2 = vld [vmem:[%s2293_s26 + $0x4] sm:$0x3]  ;;  %v1212_v3 = vsel %vm1193_vm3, %v2237_v59, -inf }
  0xf5   : > { %v1926_v4 = vpop.f32.mrf.mxu0  ;;  %v1932_v5 = vpop.f32.mrf.mxu1  ;;  %1951 = vmatprep.subr.bf16.mxu1 %v2103_v0 }
  0xf6   : > { %v2321_v4 = vsel %vm743_vm4, %v264_v2, 0  ;;  %v265_v5 = vld [vmem:[%s2293_s26 + $0x6] sm:$0x3] }
 0x164   : > { %v638_v6 = vpop.xlane.xlu0 %637 }
 0x165   : > { %v660_v7 = vsub.f32 %v2213_v23, %v638_v6  ;;  %v2325_v6 = vsel %vm743_vm4, %v265_v5, 0 }
 0x167   : > { %v668_v8 = vmul.f32 1.442695, %v660_v7  ;;  %v266_v7 = vld [vmem:[%s2293_s26 + $0x8] sm:$0x3] }
 0x168   : > { %v641_v9 = vpop.xlane.xlu0 %640 }
 0x169   : > { %2039 = vpow2.f32 %v668_v8  ;;  %v661_v10 = vsub.f32 %v2215_v24, %v641_v9  ;;  %v2329_v8 = vsel %vm743_vm4, %v266_v7, 0  ;;  %v267_v9 = vld [vmem:[%s2293_s26 + $0xa] sm:$0x3] }
 0x16b   : > { %v670_v11 = vmul.f32 1.442695, %v661_v10  ;;  %v2333_v10 = vsel %vm743_vm4, %v267_v9, 0 }
 0x16c   : > { %v644_v12 = vpop.xlane.xlu1 %643 }
 0x16d   : > { %2041 = vpow2.f32 %v670_v11  ;;  %v662_v13 = vsub.f32 %v2223_v36, %v644_v12  ;;  %v268_v11 = vld [vmem:[%s2293_s26 + $0xc] sm:$0x3] }
 0x16e   : > { %v2337_v12 = vsel %vm743_vm4, %v268_v11, 0 }
 0x16f   : > { %v672_v14 = vmul.f32 1.442695, %v662_v13  ;;  %v269_v13 = vld [vmem:[%s2293_s26 + $0xe] sm:$0x3] }
 0x170   : > { %v647_v15 = vpop.xlane.xlu1 %646 }
 0x171   : > { %2043 = vpow2.f32 %v672_v14  ;;  %v663_v16 = vsub.f32 %v2221_v35, %v647_v15  ;;  %v2341_v14 = vsel %vm743_vm4, %v269_v13, 0 }
 0x173   : > { %v674_v17 = vmul.f32 1.442695, %v663_v16 }
 0x174   : > { %v653_v18 = vpop.xlane.xlu1 %652  ;;  %v650_v19 = vpop.xlane.xlu0 %649 }
 0x175   : > { %2045 = vpow2.f32 %v674_v17  ;;  %v665_v20 = vsub.f32 %v2229_v47, %v653_v18  ;;  %v664_v21 = vsub.f32 %v2231_v48, %v650_v19 }
 0x176   : > { %v2251_v22 = vpop.eup %2039 }
 0x177   : > { %v678_v25 = vmul.f32 1.442695, %v665_v20  ;;  %v676_v26 = vmul.f32 1.442695, %v664_v21  ;;  %v684_v27 = vsel %vm635_vm2, %v2251_v22, 0.0 }
 0x178   : > { %685 = vadd.xlane.f32.xlu0 %v684_v27 }
 0x179   : > { %2047 = vpow2.f32 %v678_v25 }
 0x17a   : > { %v2255_v28 = vpop.eup %2041  ;;  %2049 = vpow2.f32 %v676_v26 }
 0x17b   : > { %v687_v29 = vsel %vm635_vm2, %v2255_v28, 0.0 }
 0x17c   : > { %688 = vadd.xlane.f32.xlu1 %v687_v29  ;;  %v659_v30 = vpop.xlane.xlu1 %658  ;;  %v656_v31 = vpop.xlane.xlu0 %655 }
 0x17d   : > { %v667_v32 = vsub.f32 %v2239_v60, %v659_v30  ;;  %v666_v33 = vsub.f32 %v2237_v59, %v656_v31 }
 0x17e   : > { %v2261_v34 = vpop.eup %2043 }
 0x17f   : > { %v682_v37 = vmul.f32 1.442695, %v667_v32  ;;  %v680_v38 = vmul.f32 1.442695, %v666_v33  ;;  %v690_v39 = vsel %vm635_vm2, %v2261_v34, 0.0 }
 0x180   : > { %691 = vadd.xlane.f32.xlu0 %v690_v39 }
 0x181   : > { %2051 = vpow2.f32 %v682_v37 }
 0x182   : > { %v2265_v40 = vpop.eup %2045  ;;  %2053 = vpow2.f32 %v680_v38 }
 0x183   : > { %v693_v41 = vsel %vm635_vm2, %v2265_v40, 0.0 }
 0x184   : > { %694 = vadd.xlane.f32.xlu1 %v693_v41 }
 0x186   : > { %v2269_v42 = vpop.eup %2047 }
 0x187   : > { %v2271_v43 = vpop.eup %2049  ;;  %v699_v44 = vsel %vm635_vm2, %v2269_v42, 0.0 }
 0x188   : > { %700 = vadd.xlane.f32.xlu1 %v699_v44  ;;  %v696_v45 = vsel %vm635_vm2, %v2271_v43, 0.0 }
 0x189   : > { %697 = vadd.xlane.f32.xlu0 %v696_v45 }
 0x18e   : > { %v2277_v46 = vpop.eup %2051 }
 0x18f   : > { %v2279_v49 = vpop.eup %2053  ;;  %v705_v50 = vsel %vm635_vm2, %v2277_v46, 0.0 }
 0x190   : > { %706 = vadd.xlane.f32.xlu1 %v705_v50  ;;  %v702_v51 = vsel %vm635_vm2, %v2279_v49, 0.0 }
 0x191   : > { %703 = vadd.xlane.f32.xlu0 %v702_v51 }
 0x194   : > { %1198 = vmax.xlane.f32.xlu1 %v1197_v52 }
 0x195   : > { %1195 = vmax.xlane.f32.xlu0 %v1194_v53 }
 0x198   : > { %1204 = vmax.xlane.f32.xlu1 %v1203_v55 }
 0x199   : > { %1201 = vmax.xlane.f32.xlu0 %v1200_v57 }
 0x19c   : > { %1210 = vmax.xlane.f32.xlu1 %v1209_v61 }
 0x19d   : > { %1207 = vmax.xlane.f32.xlu0 %v1206_v63 }
 0x1a0   : > { %1216 = vmax.xlane.f32.xlu1 %v1215_v1 }
 0x1a1   : > { %1213 = vmax.xlane.f32.xlu0 %v1212_v3 }
 0x201   : > { %v686_v15 = vpop.xlane.xlu0 %685 }
 0x202   : > { %2055 = vrcp.f32 %v686_v15 }
 0x205   : > { %v689_v16 = vpop.xlane.xlu1 %688 }
 0x206   : > { %2057 = vrcp.f32 %v689_v16 }
 0x209   : > { %v692_v17 = vpop.xlane.xlu0 %691 }
 0x20a   : > { %2059 = vrcp.f32 %v692_v17 }
 0x20d   : > { %v695_v18 = vpop.xlane.xlu1 %694 }
 0x20e   : > { %2061 = vrcp.f32 %v695_v18 }
 0x20f   : > { %v2056_v19 = vpop.eup %2055 }
 0x210   : > { %v716_v20 = vmul.f32 %v2056_v19, %v2251_v22 }
 0x211   : > { %v701_v21 = vpop.xlane.xlu1 %700 }
 0x212   : > { %v724_v25 = vpack.c.bf16 %v716_v20, %v716_v20  ;;  %2063 = vrcp.f32 %v701_v21  ;;  %v698_v26 = vpop.xlane.xlu0 %697 }
 0x213   : > { %v2058_v27 = vpop.eup %2057  ;;  %2065 = vrcp.f32 %v698_v26 }
 0x214   : > { %v717_v29 = vmul.f32 %v2058_v27, %v2255_v28  ;;  %v735_v30 = vshll.u32 %v724_v25, 16  ;;  %v733_v32 = vshrl.u32 %v724_v25, 16 }
 0x216   : > { %v725_v31 = vpack.c.bf16 %v717_v29, %v717_v29  ;;  %v737_v33 = vrot.slane %v735_v30, 1 }
 0x217   : > { %v2060_v37 = vpop.eup %2059 }
 0x218   : > { %v718_v38 = vmul.f32 %v2060_v37, %v2261_v34  ;;  %v738_v39 = vor.u32 %v737_v33, %v733_v32  ;;  %v790_v41 = vshll.u32 %v725_v31, 16  ;;  %v788_v50 = vshrl.u32 %v725_v31, 16 }
 0x219   : > { %v707_v44 = vpop.xlane.xlu1 %706 }
 0x21a   : > { %v726_v22 = vpack.c.bf16 %v718_v38, %v718_v38  ;;  %2067 = vrcp.f32 %v707_v44  ;;  %v704_v45 = vpop.xlane.xlu0 %703  ;;  %1936 = vmatmul.mubr.msk.bf16.vlgmr.msra.gmra.mxu0 %vm739_vm5, %v738_v39  ;;  %v792_v51 = vrot.slane %v790_v41, 1 }
 0x21b   : > { %v2062_v52 = vpop.eup %2061  ;;  %2069 = vrcp.f32 %v704_v45  ;;  %1946 = vmatpush3.bf16.msra.mxu0 %v2321_v4  ;;  %1947 = vmatprep.mubr.msk.bf16.mxu0 %vm2104_vm0, %v2103_v0 }
 0x21c   : > { %v719_v28 = vmul.f32 %v2062_v52, %v2265_v40  ;;  %v793_v34 = vor.u32 %v792_v51, %v788_v50  ;;  %v843_v53 = vshll.u32 %v726_v22, 16  ;;  %1957 = vmatprep.subr.bf16.mxu0 %v2103_v0  ;;  %v841_v61 = vshrl.u32 %v726_v22, 16 }
 0x21d   : > { %v1199_v54 = vpop.xlane.xlu1 %1198 }
 0x21e   : > { %v727_v55 = vpack.c.bf16 %v719_v28, %v719_v28  ;;  %v1220_v57 = vsel %vm1218_vm6, %v1199_v54, -inf  ;;  %v1196_v58 = vpop.xlane.xlu0 %1195  ;;  %1942 = vmatmul.mubr.msk.bf16.vlgmr.msra.gmra.mxu1 %vm739_vm5, %v793_v34  ;;  %v845_v63 = vrot.slane %v843_v53, 1 }
 0x21f   : > { %v2064_v1 = vpop.eup %2063  ;;  %v1219_v2 = vsel %vm1218_vm6, %v1196_v58, -inf  ;;  %1952 = vmatpush3.bf16.msra.mxu1 %v2325_v6  ;;  %1953 = vmatprep.mubr.msk.bf16.mxu1 %vm2104_vm0, %v2103_v0 }
 0x220   : > { %v2066_v40 = vpop.eup %2065  ;;  %v721_v3 = vmul.f32 %v2064_v1, %v2269_v42  ;;  %v1221_v5 = vmax.f32 %v1219_v2, %v1220_v57  ;;  %v846_v7 = vor.u32 %v845_v63, %v841_v61  ;;  %1963 = vmatprep.subr.bf16.mxu1 %v2103_v0  ;;  %v896_v13 = vshll.u32 %v727_v55, 16 }
 0x221   : > { %v720_v9 = vmul.f32 %v2066_v40, %v2271_v43  ;;  %v1205_v11 = vpop.xlane.xlu1 %1204  ;;  %v894_v21 = vshrl.u32 %v727_v55, 16 }
 0x222   : > { %v729_v15 = vpack.c.bf16 %v721_v3, %v721_v3  ;;  %v1231_v16 = vsub.f32 %v2213_v23, %v1221_v5  ;;  %v1232_v17 = vsub.f32 %v2215_v24, %v1221_v5  ;;  %v1223_v18 = vsel %vm1218_vm6, %v1205_v11, -inf  ;;  %v1202_v19 = vpop.xlane.xlu0 %1201  ;;  %1948 = vmatmul.mubr.msk.bf16.vlgmr.msra.gmra.mxu0 %vm739_vm5, %v846_v7 }
 0x223   : > { %v728_v20 = vpack.c.bf16 %v720_v9, %v720_v9  ;;  %v1222_v42 = vsel %vm1218_vm6, %v1202_v19, -inf  ;;  %v898_v25 = vrot.slane %v896_v13, 1  ;;  %1958 = vmatpush3.bf16.msra.mxu0 %v2329_v8  ;;  %1959 = vmatprep.mubr.msk.bf16.mxu0 %vm2104_vm0, %v2103_v0 }
 0x224   : > { %v1239_v43 = vmul.f32 1.442695, %v1231_v16  ;;  %v1241_v26 = vmul.f32 1.442695, %v1232_v17  ;;  %v1224_v23 = vmax.f32 %v1222_v42, %v1223_v18  ;;  %1969 = vmatprep.subr.bf16.mxu0 %v2103_v0  ;;  %v1002_v30 = vshll.u32 %v729_v15, 16 }
 0x225   : > { %v1211_v24 = vpop.xlane.xlu1 %1210  ;;  %v899_v27 = vor.u32 %v898_v25, %v894_v21  ;;  %v949_v29 = vshll.u32 %v728_v20, 16  ;;  %v947_v41 = vshrl.u32 %v728_v20, 16  ;;  %v1000_v34 = vshrl.u32 %v729_v15, 16 }
 0x226   : > { %2071 = vpow2.f32 %v1239_v43  ;;  %v1233_v31 = vsub.f32 %v2223_v36, %v1224_v23  ;;  %v1234_v32 = vsub.f32 %v2221_v35, %v1224_v23  ;;  %v1226_v33 = vsel %vm1218_vm6, %v1211_v24, -inf  ;;  %v1208_v37 = vpop.xlane.xlu0 %1207 }
 0x227   : > { %v2068_v38 = vpop.eup %2067  ;;  %2073 = vpow2.f32 %v1241_v26  ;;  %v1225_v39 = vsel %vm1218_vm6, %v1208_v37, -inf  ;;  %1954 = vmatmul.mubr.msk.bf16.vlgmr.msra.gmra.mxu1 %vm739_vm5, %v899_v27  ;;  %v951_v44 = vrot.slane %v949_v29, 1  ;;  %v1004_v53 = vrot.slane %v1002_v30, 1 }
 0x228   : > { %v2070_v22 = vpop.eup %2069  ;;  %v723_v45 = vmul.f32 %v2068_v38, %v2277_v46  ;;  %v1243_v50 = vmul.f32 1.442695, %v1233_v31  ;;  %v1245_v51 = vmul.f32 1.442695, %v1234_v32  ;;  %v1227_v52 = vmax.f32 %v1225_v39, %v1226_v33  ;;  %1964 = vmatpush3.bf16.msra.mxu1 %v2333_v10  ;;  %1965 = vmatprep.mubr.msk.bf16.mxu1 %vm2104_vm0, %v2103_v0 }
 0x229   : > { %v722_v35 = vmul.f32 %v2070_v22, %v2279_v49  ;;  %v1217_v36 = vpop.xlane.xlu1 %1216  ;;  %v952_v28 = vor.u32 %v951_v44, %v947_v41  ;;  %1975 = vmatprep.subr.bf16.mxu1 %v2103_v0 }
 0x22a   : > { %v731_v54 = vpack.c.bf16 %v723_v45, %v723_v45  ;;  %2075 = vpow2.f32 %v1243_v50  ;;  %v1235_v46 = vsub.f32 %v2231_v48, %v1227_v52  ;;  %v1236_v55 = vsub.f32 %v2229_v47, %v1227_v52  ;;  %v1214_v57 = vpop.xlane.xlu0 %1213  ;;  %v1172_v45 = vld [vmem:[%s2449_s30 + $0x4] sm:$0xf] }
 0x22b   : > { %v730_v58 = vpack.c.bf16 %v722_v35, %v722_v35  ;;  %2077 = vpow2.f32 %v1245_v51  ;;  %v1229_v61 = vsel %vm1218_vm6, %v1217_v36, -inf  ;;  %v1228_v63 = vsel %vm1218_vm6, %v1214_v57, -inf  ;;  %1960 = vmatmul.mubr.msk.bf16.vlgmr.msra.gmra.mxu0 %vm739_vm5, %v952_v28 }
 0x22c   : > { %v1247_v49 = vmul.f32 1.442695, %v1235_v46  ;;  %v1249_v1 = vmul.f32 1.442695, %v1236_v55  ;;  %v1230_v2 = vmax.f32 %v1228_v63, %v1229_v61  ;;  %1970 = vmatpush3.bf16.msra.mxu0 %v2337_v12  ;;  %1971 = vmatprep.mubr.msk.bf16.mxu0 %vm2104_vm0, %v2103_v0  ;;  %v1005_v48 = vor.u32 %v1004_v53, %v1000_v34  ;;  %v1175_v34 = vld [vmem:[%s2449_s30 + $0x8] sm:$0xf] }
 0x22d   : > { %v1055_v40 = vshll.u32 %v730_v58, 16  ;;  %v1108_v47 = vshll.u32 %v731_v54, 16  ;;  %1981 = vmatprep.subr.bf16.mxu0 %v2103_v0  ;;  %v1053_v7 = vshrl.u32 %v730_v58, 16  ;;  %v1178_v61 = vld [vmem:[%s2449_s30 + $0xc] sm:$0xf] }
 0x22e   : > { %2079 = vpow2.f32 %v1247_v49  ;;  %v1237_v3 = vsub.f32 %v2237_v59, %v1230_v2  ;;  %v1238_v5 = vsub.f32 %v2239_v60, %v1230_v2  ;;  %v1106_v60 = vshrl.u32 %v731_v54, 16 }
 0x22f   : > { %2081 = vpow2.f32 %v1249_v1  ;;  %1966 = vmatmul.mubr.msk.bf16.vlgmr.msra.gmra.mxu1 %vm739_vm5, %v1005_v48  ;;  %v1057_v9 = vrot.slane %v1055_v40, 1  ;;  %v1110_v16 = vrot.slane %v1108_v47, 1 }
 0x230   : > { %v1251_v11 = vmul.f32 1.442695, %v1237_v3  ;;  %v1253_v13 = vmul.f32 1.442695, %v1238_v5  ;;  %1976 = vmatpush3.bf16.msra.mxu1 %v2341_v14  ;;  %1977 = vmatprep.mubr.msk.bf16.mxu1 %vm2104_vm0, %v2103_v0  ;;  %v1181_v5 = vld [vmem:[%s2449_s30 + $0x10] sm:$0xf] }
 0x231   : > { %v1058_v15 = vor.u32 %v1057_v9, %v1053_v7  ;;  %1987 = vmatprep.subr.bf16.mxu1 %v2103_v0  ;;  %v1111_v20 = vor.u32 %v1110_v16, %v1106_v60 }
 0x232   : > { %2083 = vpow2.f32 %v1251_v11 }
 0x233   : > { %v2072_v59 = vpop.eup %2071  ;;  %2085 = vpow2.f32 %v1253_v13  ;;  %1972 = vmatmul.mubr.msk.bf16.vlgmr.msra.gmra.mxu0 %vm739_vm5, %v1058_v15 }
 0x234   : > { %v2074_v17 = vpop.eup %2073  ;;  %v1255_v18 = vsel %vm1193_vm3, %v2072_v59, 0.0  ;;  %1982 = vmatpush3.bf16.msra.mxu0 %v2299_v56  ;;  %1983 = vmatprep.mubr.msk.bf16.mxu0 %vm2104_vm0, %v2103_v0  ;;  %v1291_v43 = vpack.c.bf16 %v2072_v59, %v2072_v59 }
 0x235   : > { %v1258_v19 = vsel %vm1193_vm3, %v2074_v17, 0.0  ;;  %1256 = vadd.xlane.f32.xlu0 %v1255_v18  ;;  %1993 = vmatprep.subr.bf16.mxu0 %v2103_v0  ;;  %v1292_v27 = vpack.c.bf16 %v2074_v17, %v2074_v17  ;;  %v1184_v17 = vld [vmem:[%s2449_s30 + $0x14] sm:$0xf] }
 0x236   : > { %1259 = vadd.xlane.f32.xlu1 %v1258_v19 }
 0x237   : > { %v2076_v42 = vpop.eup %2075  ;;  %1978 = vmatmul.mubr.msk.bf16.vlgmr.msra.gmra.mxu1 %vm739_vm5, %v1111_v20 }
 0x238   : > { %v2078_v21 = vpop.eup %2077  ;;  %1988 = vmatpush3.bf16.msra.mxu1 %v2309_v62  ;;  %v1261_v25 = vsel %vm1193_vm3, %v2076_v42, 0.0  ;;  %1989 = vmatprep.mubr.msk.bf16.mxu1 %vm2104_vm0, %v2103_v0  ;;  %v1293_v32 = vpack.c.bf16 %v2076_v42, %v2076_v42 }
 0x239   : > { %v1264_v56 = vsel %vm1193_vm3, %v2078_v21, 0.0  ;;  %1262 = vadd.xlane.f32.xlu0 %v1261_v25  ;;  %1999 = vmatprep.subr.bf16.mxu1 %v2103_v0 }
 0x23a   : > { %1265 = vadd.xlane.f32.xlu1 %v1264_v56 }
 0x23b   : > { %v2080_v26 = vpop.eup %2079  ;;  %1984 = vmatmul.mubr.msk.bf16.vlgmr.msra.gmra.mxu0 %vm739_vm5, %v1291_v43 }
 0x23c   : > { %v2082_v23 = vpop.eup %2081  ;;  %v1267_v24 = vsel %vm1193_vm3, %v2080_v26, 0.0  ;;  %1994 = vmatpush3.bf16.msra.mxu0 %v2321_v4  ;;  %1995 = vmatprep.mubr.msk.bf16.mxu0 %vm2104_vm0, %v2103_v0  ;;  %v1295_v33 = vpack.c.bf16 %v2080_v26, %v2080_v26 }
 0x23d   : > { %v1270_v62 = vsel %vm1193_vm3, %v2082_v23, 0.0  ;;  %1268 = vadd.xlane.f32.xlu0 %v1267_v24  ;;  %2005 = vmatprep.subr.bf16.mxu0 %v2103_v0 }
 0x23e   : > { %1271 = vadd.xlane.f32.xlu1 %v1270_v62 }
 0x23f   : > { %v2084_v29 = vpop.eup %2083  ;;  %1990 = vmatmul.mubr.msk.bf16.vlgmr.msra.gmra.mxu1 %vm739_vm5, %v1292_v27 }
 0x240   : > { %v2086_v30 = vpop.eup %2085  ;;  %2000 = vmatpush3.bf16.msra.mxu1 %v2325_v6  ;;  %v1273_v31 = vsel %vm1193_vm3, %v2084_v29, 0.0  ;;  %2001 = vmatprep.mubr.msk.bf16.mxu1 %vm2104_vm0, %v2103_v0  ;;  %v1294_v6 = vpack.c.bf16 %v2078_v21, %v2078_v21 }
 0x241   : > { %v1276_v4 = vsel %vm1193_vm3, %v2086_v30, 0.0  ;;  %1274 = vadd.xlane.f32.xlu0 %v1273_v31  ;;  %2011 = vmatprep.subr.bf16.mxu1 %v2103_v0  ;;  %v1298_v37 = vpack.c.bf16 %v2086_v30, %v2086_v30 }
 0x242   : > { %1277 = vadd.xlane.f32.xlu1 %v1276_v4 }
 0x243   : > { %1996 = vmatmul.mubr.msk.bf16.vlgmr.msra.gmra.mxu0 %vm739_vm5, %v1293_v32 }
 0x244   : > { %2006 = vmatpush3.bf16.msra.mxu0 %v2329_v8  ;;  %2007 = vmatprep.mubr.msk.bf16.mxu0 %vm2104_vm0, %v2103_v0  ;;  %v1296_v8 = vpack.c.bf16 %v2082_v23, %v2082_v23  ;;  %v1187_v23 = vld [vmem:[%s2449_s30 + $0x18] sm:$0xf] }
 0x245   : > { %2017 = vmatprep.subr.bf16.mxu0 %v2103_v0 }
 0x247   : > { %2002 = vmatmul.mubr.msk.bf16.vlgmr.msra.gmra.mxu1 %vm739_vm5, %v1294_v6  ;;  %v1190_v6 = vld [vmem:[%s2449_s30 + $0x1c] sm:$0xf] }
 0x248   : > { %2012 = vmatpush3.bf16.msra.mxu1 %v2333_v10  ;;  %2013 = vmatprep.mubr.msk.bf16.mxu1 %vm2104_vm0, %v2103_v0  ;;  %v1297_v10 = vpack.c.bf16 %v2084_v29, %v2084_v29 }
 0x249   : > { %2023 = vmatprep.subr.bf16.mxu1 %v2103_v0 }
 0x24b   : > { %2008 = vmatmul.mubr.msk.bf16.vlgmr.msra.gmra.mxu0 %vm739_vm5, %v1295_v33 }
 0x24c   : > { %2018 = vmatpush3.bf16.msra.mxu0 %v2337_v12  ;;  %2019 = vmatprep.mubr.msk.bf16.mxu0 %vm2104_vm0, %v2103_v0 }
 0x24f   : > { %2014 = vmatmul.mubr.msk.bf16.vlgmr.msra.gmra.mxu1 %vm739_vm5, %v1296_v8 }
 0x250   : > { %2024 = vmatpush3.bf16.msra.mxu1 %v2341_v14  ;;  %2025 = vmatprep.mubr.msk.bf16.mxu1 %vm2104_vm0, %v2103_v0  ;;  %v1169_v14 = vld [vmem:[%s2449_s30] sm:$0xf] }
 0x253   : > { %2020 = vmatmul.mubr.msk.bf16.vlgmr.msra.gmra.mxu0 %vm739_vm5, %v1297_v10 }
 0x257   : > { %2026 = vmatmul.mubr.msk.bf16.vlgmr.msra.gmra.mxu1 %vm739_vm5, %v1298_v37 }
 0x2be   : > { %v1257_v48 = vpop.xlane.xlu0 %1256 }
 0x2bf   : > { %v1260_v2 = vpop.xlane.xlu1 %1259  ;;  %v1279_v15 = vsel %vm1218_vm6, %v1257_v48, 0.0 }
 0x2c0   : > { %v1280_v13 = vsel %vm1218_vm6, %v1260_v2, 0.0 }
 0x2c1   : > { %v1281_v19 = vadd.f32 %v1280_v13, %v1279_v15 }
 0x2c2   : > { %v1263_v25 = vpop.xlane.xlu0 %1262 }
 0x2c3   : > { %v1266_v21 = vpop.xlane.xlu1 %1265  ;;  %2087 = vrcp.f32 %v1281_v19  ;;  %v1282_v30 = vsel %vm1218_vm6, %v1263_v25, 0.0 }
 0x2c4   : > { %v1283_v29 = vsel %vm1218_vm6, %v1266_v21, 0.0 }
 0x2c5   : > { %v1284_v8 = vadd.f32 %v1283_v29, %v1282_v30 }
 0x2c7   : > { %2089 = vrcp.f32 %v1284_v8 }
 0x2da   : > { %v781_v12 = vpop.f32.mrf.mxu0 }
 0x2db   : > { %v1158_v38 = vpack.c.bf16 %v781_v12, %v781_v12  ;;  %v1272_v12 = vpop.xlane.xlu1 %1271 }
 0x2dc   : > { %v1937_v39 = vpop.f32.mrf.mxu0 }
 0x2dd   : > { %v1170_v41 = vsel %vm2451_vm9, %v1158_v38, %v1169_v14  ;;  %v1269_v14 = vpop.xlane.xlu0 %1268 }
 0x2de   : > { %1171 = vst [vmem:[%s2449_s30] sm:$0xf] %v1170_v41  ;;  %v784_v44 = vpop.f32.mrf.mxu0  ;;  %v834_v22 = vpop.f32.mrf.mxu1 }
 0x2df   : > { %v1159_v50 = vpack.c.bf16 %v834_v22, %v834_v22 }
 0x2e0   : > { %v1938_v51 = vpop.f32.mrf.mxu0  ;;  %v1943_v52 = vpop.f32.mrf.mxu1 }
 0x2e1   : > { %v1173_v35 = vsel %vm2451_vm9, %v1159_v50, %v1172_v45  ;;  %v1286_v45 = vsel %vm1218_vm6, %v1272_v12, 0.0  ;;  %v1285_v50 = vsel %vm1218_vm6, %v1269_v14, 0.0 }
 0x2e2   : > { %1174 = vst [vmem:[%s2449_s30 + $0x4] sm:$0xf] %v1173_v35  ;;  %v837_v36 = vpop.f32.mrf.mxu1  ;;  %v887_v28 = vpop.f32.mrf.mxu0  ;;  %v1287_v0 = vadd.f32 %v1286_v45, %v1285_v50 }
 0x2e3   : > { %v1160_v53 = vpack.c.bf16 %v887_v28, %v887_v28 }
 0x2e4   : > { %v1944_v54 = vpop.f32.mrf.mxu1  ;;  %v1949_v46 = vpop.f32.mrf.mxu0  ;;  %2091 = vrcp.f32 %v1287_v0 }
 0x2e5   : > { %v1176_v55 = vsel %vm2451_vm9, %v1160_v53, %v1175_v34  ;;  %v2088_v54 = vpop.eup %2087  ;;  %v1278_v46 = vpop.xlane.xlu1 %1277 }
 0x2e6   : > { %1177 = vst [vmem:[%s2449_s30 + $0x8] sm:$0xf] %v1176_v55  ;;  %v890_v57 = vpop.f32.mrf.mxu0  ;;  %v1275_v55 = vpop.xlane.xlu0 %1274 }
 0x2e7   : > { %v940_v58 = vpop.f32.mrf.mxu1 }
 0x2e8   : > { %v1161_v63 = vpack.c.bf16 %v940_v58, %v940_v58  ;;  %v1950_v49 = vpop.f32.mrf.mxu0 }
 0x2e9   : > { %v1955_v1 = vpop.f32.mrf.mxu1  ;;  %v1671_v49 = vld [vmem:[%s2499_s8] sm:$0x1] }
 0x2ea   : > { %v1179_v40 = vsel %vm2451_vm9, %v1161_v63, %v1178_v61 }
 0x2eb   : > { %1180 = vst [vmem:[%s2449_s30 + $0xc] sm:$0xf] %v1179_v40  ;;  %v943_v47 = vpop.f32.mrf.mxu1  ;;  %v993_v3 = vpop.f32.mrf.mxu0  ;;  %v1289_v40 = vsel %vm1218_vm6, %v1278_v46, 0.0 }
 0x2ec   : > { %v1162_v7 = vpack.c.bf16 %v993_v3, %v993_v3  ;;  %v1288_v47 = vsel %vm1218_vm6, %v1275_v55, 0.0 }
 0x2ed   : > { %v1956_v9 = vpop.f32.mrf.mxu1  ;;  %v1961_v11 = vpop.f32.mrf.mxu0  ;;  %v1290_v13 = vadd.f32 %v1289_v40, %v1288_v47 }
 0x2ee   : > { %v1182_v16 = vsel %vm2451_vm9, %v1162_v7, %v1181_v5 }
 0x2ef   : > { %1183 = vst [vmem:[%s2449_s30 + $0x10] sm:$0xf] %v1182_v16  ;;  %v996_v59 = vpop.f32.mrf.mxu0  ;;  %v1046_v60 = vpop.f32.mrf.mxu1  ;;  %2093 = vrcp.f32 %v1290_v13 }
 0x2f0   : > { %v1163_v18 = vpack.c.bf16 %v1046_v60, %v1046_v60  ;;  %v2090_v60 = vpop.eup %2089 }
 0x2f1   : > { %v1962_v20 = vpop.f32.mrf.mxu0  ;;  %v1967_v42 = vpop.f32.mrf.mxu1 }
 0x2f2   : > { %v1185_v56 = vsel %vm2451_vm9, %v1163_v18, %v1184_v17  ;;  %v1674_v20 = vld [vmem:[%s2499_s8 + $0x1] sm:$0x1]  ;;  %v2092_v30 = vpop.eup %2091 }
 0x2f3   : > { %1186 = vst [vmem:[%s2449_s30 + $0x14] sm:$0xf] %v1185_v56  ;;  %v1049_v43 = vpop.f32.mrf.mxu1  ;;  %v1099_v26 = vpop.f32.mrf.mxu0 }
 0x2f4   : > { %v1164_v24 = vpack.c.bf16 %v1099_v26, %v1099_v26 }
 0x2f5   : > { %v1968_v62 = vpop.f32.mrf.mxu1  ;;  %v1973_v27 = vpop.f32.mrf.mxu0 }
 0x2f6   : > { %v1188_v31 = vsel %vm2451_vm9, %v1164_v24, %v1187_v23 }
 0x2f7   : > { %1189 = vst [vmem:[%s2449_s30 + $0x18] sm:$0xf] %v1188_v31  ;;  %v1102_v4 = vpop.f32.mrf.mxu0  ;;  %v1152_v32 = vpop.f32.mrf.mxu1 }
 0x2f8   : > { %v1165_v33 = vpack.c.bf16 %v1152_v32, %v1152_v32 }
 0x2f9   : > { %v1974_v10 = vpop.f32.mrf.mxu0  ;;  %v1979_v37 = vpop.f32.mrf.mxu1 }
 0x2fa   : > { %v1191_v38 = vsel %vm2451_vm9, %v1165_v33, %v1190_v6  ;;  %v1677_v6 = vld [vmem:[%s2499_s8 + $0x2] sm:$0x1] }
 0x2fb   : > { %1192 = vst [vmem:[%s2449_s30 + $0x1c] sm:$0xf] %v1191_v38  ;;  %v1155_v39 = vpop.f32.mrf.mxu1  ;;  %v1336_v41 = vpop.f32.mrf.mxu0 }
 0x2fc   : > { %v1644_v35 = vsel %vm1643_vm10, %v1336_v41, 0.0  ;;  %v2094_v45 = vpop.eup %2093 }
 0x2fd   : > { %v1980_v44 = vpop.f32.mrf.mxu1  ;;  %v1985_v22 = vpop.f32.mrf.mxu0 }
 0x2ff   : > { %v1339_v51 = vpop.f32.mrf.mxu0  ;;  %v1379_v52 = vpop.f32.mrf.mxu1 }
 0x300   : > { %v1645_v36 = vsel %vm1643_vm10, %v1379_v52, 0.0  ;;  %v1680_v52 = vld [vmem:[%s2499_s8 + $0x3] sm:$0x1] }
 0x301   : > { %v1646_v28 = vadd.f32 %v1645_v36, %v1644_v35  ;;  %v1986_v34 = vpop.f32.mrf.mxu0  ;;  %v1991_v53 = vpop.f32.mrf.mxu1 }
 0x303   : > { %v1660_v57 = vmul.f32 %v2088_v54, %v1646_v28  ;;  %v1382_v58 = vpop.f32.mrf.mxu1  ;;  %v1422_v61 = vpop.f32.mrf.mxu0 }
 0x304   : > { %v1647_v9 = vsel %vm1643_vm10, %v1422_v61, 0.0 }
 0x305   : > { %v1664_v1 = vpack.c.bf16 %v1660_v57, %v1660_v57  ;;  %v1992_v2 = vpop.f32.mrf.mxu1  ;;  %v1997_v48 = vpop.f32.mrf.mxu0 }
 0x307   : > { %v1672_v3 = vsel %vm2502_vm12, %v1664_v1, %v1671_v49  ;;  %v1425_v5 = vpop.f32.mrf.mxu0  ;;  %v1465_v7 = vpop.f32.mrf.mxu1 }
 0x308   : > { %1673 = vst [vmem:[%s2499_s8] sm:$0x1] %v1672_v3  ;;  %v1648_v11 = vsel %vm1643_vm10, %v1465_v7, 0.0 }
 0x309   : > { %v1649_v15 = vadd.f32 %v1648_v11, %v1647_v9  ;;  %v1998_v16 = vpop.f32.mrf.mxu0  ;;  %v2003_v59 = vpop.f32.mrf.mxu1 }
 0x30b   : > { %v1661_v17 = vmul.f32 %v2090_v60, %v1649_v15  ;;  %v1468_v18 = vpop.f32.mrf.mxu1  ;;  %v1508_v19 = vpop.f32.mrf.mxu0 }
 0x30c   : > { %v1650_v23 = vsel %vm1643_vm10, %v1508_v19, 0.0 }
 0x30d   : > { %v1665_v42 = vpack.c.bf16 %v1661_v17, %v1661_v17  ;;  %v2004_v21 = vpop.f32.mrf.mxu1  ;;  %v2009_v25 = vpop.f32.mrf.mxu0 }
 0x30f   : > { %v1675_v56 = vsel %vm2502_vm12, %v1665_v42, %v1674_v20  ;;  %v1511_v43 = vpop.f32.mrf.mxu0  ;;  %v1551_v26 = vpop.f32.mrf.mxu1 }
 0x310   : > { %1676 = vst [vmem:[%s2499_s8 + $0x1] sm:$0x1] %v1675_v56  ;;  %v1651_v24 = vsel %vm1643_vm10, %v1551_v26, 0.0 }
 0x311   : > { %v1652_v62 = vadd.f32 %v1651_v24, %v1650_v23  ;;  %v2010_v27 = vpop.f32.mrf.mxu0  ;;  %v2015_v29 = vpop.f32.mrf.mxu1 }
 0x313   : > { %v1662_v31 = vmul.f32 %v2092_v30, %v1652_v62  ;;  %v1554_v4 = vpop.f32.mrf.mxu1  ;;  %v1594_v32 = vpop.f32.mrf.mxu0 }
 0x314   : > { %v1653_v38 = vsel %vm1643_vm10, %v1594_v32, 0.0 }
 0x315   : > { %v1666_v33 = vpack.c.bf16 %v1662_v31, %v1662_v31  ;;  %v2016_v8 = vpop.f32.mrf.mxu1  ;;  %v2021_v10 = vpop.f32.mrf.mxu0 }
 0x317   : > { %v1678_v37 = vsel %vm2502_vm12, %v1666_v33, %v1677_v6  ;;  %v1597_v12 = vpop.f32.mrf.mxu0  ;;  %v1637_v14 = vpop.f32.mrf.mxu1 }
 0x318   : > { %1679 = vst [vmem:[%s2499_s8 + $0x2] sm:$0x1] %v1678_v37  ;;  %v1654_v39 = vsel %vm1643_vm10, %v1637_v14, 0.0 }
 0x319   : > { %v1655_v41 = vadd.f32 %v1654_v39, %v1653_v38  ;;  %v2022_v44 = vpop.f32.mrf.mxu0  ;;  %v2027_v22 = vpop.f32.mrf.mxu1 }
 0x31b   : > { %v1663_v50 = vmul.f32 %v2094_v45, %v1655_v41  ;;  %v1640_v51 = vpop.f32.mrf.mxu1 }
 0x31d   : > { %v1667_v35 = vpack.c.bf16 %v1663_v50, %v1663_v50  ;;  %v2028_v36 = vpop.f32.mrf.mxu1 }
 0x31f   : > { %v1681_v0 = vsel %vm2502_vm12, %v1667_v35, %v1680_v52 }
 0x320   : > { %1682 = vst [vmem:[%s2499_s8 + $0x3] sm:$0x1] %v1681_v0 }
 0x321 PF: > { %s15_s15 = sadd.s32 1, %s2101_s15  }
 0x322   : > { %p12_p4 = scmp.ge.s32.totalorder %s15_s15, 4  }
 0x324   :  { %14 = sbr.rel (!%p12_p4) target bundleno = 1 (0x1), region = 80 }

// kernel: video_bridge_block.17
= control target key start
LH: loop header
LB: loop body
LE: loop exit
PB: predicated region body
PF: predicated region fallthrough
CT: control target
= control target key end

     0   :  { %vm162_vm0 = vcmask 261120   ;;  %vm166_vm1 = vcmask 259072   ;;  %s308_s1 = inlined_call_operand.vmem [shape: bf16[128,32], index: 1, kind: input, shape index: {}]   ;;  %s309_s0 = inlined_call_operand.vmem [shape: bf16[30,128], index: 0, kind: input, shape index: {}]   ;;  %s310_s2 = inlined_call_operand.vmem [shape: f32[1,32], index: 2, kind: input, shape index: {}]   ;;  %s311_s3 = inlined_call_operand.vmem [shape: f32[30,32], index: 3, kind: input, shape index: {}]   ;;  %s312_s4 = inlined_call_operand.vmem [shape: f32[30,32], index: 4, kind: output, shape index: {}]  }
   0x1   :  { %v213_v0 = vld [vmem:[%s308_s1 + $0x38] sm:$0xff]   ;;  %v214_v1 = vld [vmem:[%s308_s1 + $0x30] sm:$0xff]   ;;  %v215_v2 = vld [vmem:[%s308_s1 + $0x28] sm:$0xff]  }
   0x2   :  { %193 = vmatprep.subr.bf16.mxu0 %v213_v0  ;;  %v216_v3 = vld [vmem:[%s308_s1 + $0x20] sm:$0xff]   ;;  %v217_v5 = vld [vmem:[%s308_s1 + $0x18] sm:$0xff]   ;;  %v218_v6 = vld [vmem:[%s308_s1 + $0x10] sm:$0xff]  }
   0x3   :  { %194 = vmatpush3.bf16.msra.mxu0 %v213_v0  ;;  %v221_v4 = vld [vmem:[%s309_s0] sm:$0xff]   ;;  %v219_v7 = vld [vmem:[%s308_s1 + $0x8] sm:$0xff]   ;;  %v156_v12 = vld [vmem:[%s311_s3 + $0x10] sm:$0xff] }
   0x4   :  { %195 = vmatprep.subr.bf16.mxu0 %v214_v1  ;;  %209 = vmatprep.mubr.bf16.mxu0 %v221_v4  ;;  %v220_v8 = vld [vmem:[%s308_s1] sm:$0xff]   ;;  %v222_v9 = vld [vmem:[%s309_s0 + $0x8] sm:$0x7f]   ;;  %v157_v19 = vld [vmem:[%s311_s3 + $0x18] sm:$0x3f] }
   0x5   :  { %v172_v10 = vld [vmem:[%s310_s2] ss:$0 sm:$0xff]  ;;  %v155_v23 = vld [vmem:[%s311_s3 + $0x8] sm:$0xff] }
   0x6   :  { %v154_v15 = vld [vmem:[%s311_s3] sm:$0xff] }
   0x7   :  { %196 = vmatpush3.bf16.msra.mxu0 %v214_v1 }
   0x8   :  { %197 = vmatprep.subr.bf16.mxu0 %v215_v2 }
   0xb   :  { %198 = vmatpush3.bf16.msra.mxu0 %v215_v2 }
   0xc   :  { %199 = vmatprep.subr.bf16.mxu0 %v216_v3 }
   0xf   :  { %200 = vmatpush3.bf16.msra.mxu0 %v216_v3 }
  0x10   :  { %201 = vmatprep.subr.bf16.mxu0 %v217_v5 }
  0x13   :  { %202 = vmatpush3.bf16.msra.mxu0 %v217_v5 }
  0x14   :  { %203 = vmatprep.subr.bf16.mxu0 %v218_v6 }
  0x17   :  { %204 = vmatpush3.bf16.msra.mxu0 %v218_v6 }
  0x18   :  { %205 = vmatprep.subr.bf16.mxu0 %v219_v7 }
  0x1b   :  { %206 = vmatpush3.bf16.msra.mxu0 %v219_v7 }
  0x1c   :  { %207 = vmatprep.subr.bf16.mxu0 %v220_v8 }
  0x1f   :  { %208 = vmatpush3.bf16.msra.mxu0 %v220_v8 }
  0x22   :  { %210 = vmatmul.mubr.bf16.vlgmr.msra.gmra.mxu0 %v222_v9 }
  0xe2   :  { %v211_v11 = vpop.f32.mrf.mxu0 }
  0xe3   :  { %v148_v13 = vadd.f32 %v211_v11, %v172_v10 }
  0xe4   :  { %v139_v14 = vpop.f32.mrf.mxu0 }
  0xe5   :  { %v160_v16 = vadd.f32 %v156_v12, %v148_v13  ;;  %v140_v17 = vadd.f32 %v172_v10, %v139_v14 }
  0xe6   :  { %v212_v18 = vpop.f32.mrf.mxu0 }
  0xe7   :  { %165 = vst.msk [vmem:[%s312_s4 + $0x10] sm:$0xff] %vm162_vm0, %v160_v16  ;;  %v158_v20 = vadd.f32 %v154_v15, %v140_v17  ;;  %v151_v21 = vadd.f32 %v212_v18, %v172_v10 }
  0xe8   :  { %v142_v22 = vpop.f32.mrf.mxu0 }
  0xe9   :  { %163 = vst.msk [vmem:[%s312_s4] sm:$0xff] %vm162_vm0, %v158_v20  ;;  %v161_v24 = vadd.f32 %v157_v19, %v151_v21  ;;  %v143_v25 = vadd.f32 %v172_v10, %v142_v22 }
  0xeb   :  { %167 = vst.msk [vmem:[%s312_s4 + $0x18] sm:$0x3f] %vm166_vm1, %v161_v24  ;;  %v159_v26 = vadd.f32 %v155_v23, %v143_v25 }
  0xed   :  { %164 = vst.msk [vmem:[%s312_s4 + $0x8] sm:$0xff] %vm162_vm0, %v159_v26 }

// kernel: video_bridge_block.16
= control target key start
LH: loop header
LB: loop body
LE: loop exit
PB: predicated region body
PF: predicated region fallthrough
CT: control target
= control target key end

     0   :  { %vm25_vm0 = vcmask 261120   ;;  %vm35_vm1 = vcmask 259072   ;;  %s352_s0 = inlined_call_operand.vmem [shape: f32[30,32], index: 0, kind: input, shape index: {}]   ;;  %s353_s3 = inlined_call_operand.vmem [shape: bf16[32,128], index: 3, kind: input, shape index: {}]   ;;  %s354_s1 = inlined_call_operand.vmem [shape: f32[1,32], index: 1, kind: input, shape index: {}]   ;;  %s355_s2 = inlined_call_operand.vmem [shape: f32[1,32], index: 2, kind: input, shape index: {}]   ;;  %s356_s4 = inlined_call_operand.vmem [shape: f32[1,128], index: 4, kind: input, shape index: {}]   ;;  %s357_s5 = inlined_call_operand.vmem [shape: bf16[30,128], index: 5, kind: output, shape index: {}]  }
   0x1   :  { %v21_v0 = vld [vmem:[%s352_s0] sm:$0xff]  ;;  %v23_v1 = vld [vmem:[%s352_s0 + $0x10] sm:$0xff]  ;;  %v22_v2 = vld [vmem:[%s352_s0 + $0x8] sm:$0xff] }
   0x2   :  { %v26_v3 = vsel %vm25_vm0, %v21_v0, 0.0  ;;  %v32_v4 = vsel %vm25_vm0, %v23_v1, 0.0  ;;  %v24_v5 = vld [vmem:[%s352_s0 + $0x18] sm:$0x3f]  ;;  %v29_v6 = vsel %vm25_vm0, %v22_v2, 0.0  ;;  %v258_v28 = vld [vmem:[%s353_s3 + $0x8] sm:$0xff]  }
   0x3   :  { %27 = vadd.xlane.f32.xlu0 %v26_v3  ;;  %33 = vadd.xlane.f32.xlu1 %v32_v4  ;;  %v36_v7 = vsel %vm35_vm1, %v24_v5, 0.0  ;;  %v259_v29 = vld [vmem:[%s353_s3] sm:$0xff]  }
   0x4   :  { %250 = vmatprep.subr.bf16.mxu0 %v258_v28  ;;  %v226_v44 = vld [vmem:[%s354_s1] ss:$0 sm:$0xff] }
   0x5   :  { %251 = vmatpush3.bf16.msra.mxu0 %v258_v28  ;;  %v227_v49 = vld [vmem:[%s355_s2] ss:$0 sm:$0xff] }
   0x6   :  { %252 = vmatprep.subr.bf16.mxu0 %v259_v29  ;;  %v228_v62 = vld [vmem:[%s356_s4] ss:$0 sm:$0xff] }
   0x7   :  { %30 = vadd.xlane.f32.xlu0 %v29_v6  ;;  %37 = vadd.xlane.f32.xlu1 %v36_v7 }
   0x9   :  { %253 = vmatpush3.bf16.msra.mxu0 %v259_v29 }
  0x8c   :  { %v28_v8 = vpop.xlane.xlu0 %27  ;;  %v34_v9 = vpop.xlane.xlu1 %33 }
  0x8d   :  { %v40_v10 = vmul.f32 0.03125, %v28_v8  ;;  %v42_v11 = vmul.f32 0.03125, %v34_v9 }
  0x8f   :  { %v44_v12 = vsub.f32 %v21_v0, %v40_v10  ;;  %v46_v13 = vsub.f32 %v23_v1, %v42_v11 }
  0x90   :  { %v31_v14 = vpop.xlane.xlu0 %30  ;;  %v38_v15 = vpop.xlane.xlu1 %37 }
  0x91   :  { %v41_v16 = vmul.f32 0.03125, %v31_v14  ;;  %v43_v17 = vmul.f32 0.03125, %v38_v15  ;;  %v48_v18 = vmul.f32 %v44_v12, %v44_v12  ;;  %v50_v19 = vmul.f32 %v46_v13, %v46_v13 }
  0x93   :  { %v45_v20 = vsub.f32 %v22_v2, %v41_v16  ;;  %v47_v21 = vsub.f32 %v24_v5, %v43_v17  ;;  %v52_v22 = vsel %vm25_vm0, %v48_v18, 0.0  ;;  %v58_v23 = vsel %vm25_vm0, %v50_v19, 0.0 }
  0x94   :  { %53 = vadd.xlane.f32.xlu0 %v52_v22 }
  0x95   :  { %v49_v24 = vmul.f32 %v45_v20, %v45_v20  ;;  %v51_v25 = vmul.f32 %v47_v21, %v47_v21 }
  0x97   :  { %v55_v26 = vsel %vm25_vm0, %v49_v24, 0.0  ;;  %v61_v27 = vsel %vm35_vm1, %v51_v25, 0.0 }
  0x98   :  { %59 = vadd.xlane.f32.xlu0 %v58_v23  ;;  %56 = vadd.xlane.f32.xlu1 %v55_v26 }
  0x9c   :  { %62 = vadd.xlane.f32.xlu1 %v61_v27 }
 0x11d   :  { %v54_v30 = vpop.xlane.xlu0 %53 }
 0x11e   :  { %v64_v31 = vmul.f32 0.03125, %v54_v30 }
 0x120   :  { %v68_v32 = vadd.f32 1e-05, %v64_v31 }
 0x121   :  { %v57_v33 = vpop.xlane.xlu1 %56  ;;  %v60_v34 = vpop.xlane.xlu0 %59 }
 0x122   :  { %260 = vrsqrt.f32 %v68_v32  ;;  %v65_v35 = vmul.f32 0.03125, %v57_v33  ;;  %v66_v36 = vmul.f32 0.03125, %v60_v34 }
 0x124   :  { %v69_v37 = vadd.f32 1e-05, %v65_v35  ;;  %v70_v38 = vadd.f32 1e-05, %v66_v36 }
 0x125   :  { %v63_v39 = vpop.xlane.xlu1 %62 }
 0x126   :  { %262 = vrsqrt.f32 %v69_v37  ;;  %v67_v40 = vmul.f32 0.03125, %v63_v39 }
 0x127   :  { %264 = vrsqrt.f32 %v70_v38 }
 0x128   :  { %v71_v41 = vadd.f32 1e-05, %v67_v40 }
 0x12a   :  { %266 = vrsqrt.f32 %v71_v41 }
 0x12f   :  { %v261_v42 = vpop.eup %260 }
 0x130   :  { %v76_v43 = vmul.f32 %v261_v42, %v44_v12 }
 0x132   :  { %v87_v48 = vmul.f32 %v226_v44, %v76_v43 }
 0x133   :  { %v263_v45 = vpop.eup %262 }
 0x134   :  { %v265_v46 = vpop.eup %264  ;;  %v77_v47 = vmul.f32 %v263_v45, %v45_v20  ;;  %v98_v53 = vadd.f32 %v227_v49, %v87_v48 }
 0x135   :  { %v78_v50 = vmul.f32 %v265_v46, %v46_v13 }
 0x136   :  { %v88_v51 = vmul.f32 %v226_v44, %v77_v47 }
 0x137   :  { %v267_v52 = vpop.eup %266  ;;  %v89_v56 = vmul.f32 %v226_v44, %v78_v50 }
 0x138   :  { %v99_v54 = vadd.f32 %v227_v49, %v88_v51  ;;  %v79_v55 = vmul.f32 %v267_v52, %v47_v21 }
 0x139   :  { %v100_v59 = vadd.f32 %v227_v49, %v89_v56 }
 0x13a   :  { %v102_v57 = vpack.c.bf16 %v99_v54, %v98_v53  ;;  %v90_v58 = vmul.f32 %v226_v44, %v79_v55 }
 0x13c   :  { %254 = vmatprep.mubr.msk.bf16.mxu0 %vm25_vm0, %v102_v57  ;;  %v101_v60 = vadd.f32 %v227_v49, %v90_v58 }
 0x13e   :  { %v103_v61 = vpack.c.bf16 %v101_v60, %v100_v59 }
 0x140   :  { %255 = vmatmul.mubr.msk.bf16.vlgmr.msra.gmra.mxu0 %vm25_vm0, %v103_v61 }
 0x200   :  { %v256_v63 = vpop.f32.mrf.mxu0 }
 0x201   :  { %v176_v0 = vadd.f32 %v256_v63, %v228_v62 }
 0x202   :  { %v167_v1 = vpop.f32.mrf.mxu0 }
 0x203   :  { %v188_v2 = vmul.f32 0.70710677, %v176_v0  ;;  %v168_v3 = vadd.f32 %v228_v62, %v167_v1  ;;  %v184_v12 = vmul.f32 0.5, %v176_v0 }
 0x204   :  { %v257_v4 = vpop.f32.mrf.mxu0 }
 0x205   :  { %268 = verf.f32 %v188_v2  ;;  %v186_v5 = vmul.f32 0.70710677, %v168_v3  ;;  %v179_v6 = vadd.f32 %v257_v4, %v228_v62  ;;  %v182_v22 = vmul.f32 0.5, %v168_v3 }
 0x206   :  { %v170_v7 = vpop.f32.mrf.mxu0 }
 0x207   :  { %270 = verf.f32 %v186_v5  ;;  %v189_v8 = vmul.f32 0.70710677, %v179_v6  ;;  %v171_v9 = vadd.f32 %v228_v62, %v170_v7  ;;  %v185_v19 = vmul.f32 0.5, %v179_v6 }
 0x209   :  { %272 = verf.f32 %v189_v8  ;;  %v187_v10 = vmul.f32 0.70710677, %v171_v9  ;;  %v183_v24 = vmul.f32 0.5, %v171_v9 }
 0x20b   :  { %274 = verf.f32 %v187_v10 }
 0x212   :  { %v269_v11 = vpop.eup %268 }
 0x213   :  { %v196_v13 = vadd.f32 1.0, %v269_v11 }
 0x214   :  { %v271_v14 = vpop.eup %270 }
 0x215   :  { %v200_v15 = vmul.f32 %v196_v13, %v184_v12  ;;  %v194_v18 = vadd.f32 1.0, %v271_v14 }
 0x216   :  { %v273_v16 = vpop.eup %272 }
 0x217   :  { %v239_v17 = vpack.c.bf16 %v200_v15, %v200_v15  ;;  %v197_v20 = vadd.f32 1.0, %v273_v16  ;;  %v198_v26 = vmul.f32 %v194_v18, %v182_v22 }
 0x218   :  { %v275_v21 = vpop.eup %274 }
 0x219   :  { %220 = vst [vmem:[%s357_s5 + $0x8] sm:$0xf] %v239_v17  ;;  %v201_v23 = vmul.f32 %v197_v20, %v185_v19  ;;  %v195_v25 = vadd.f32 1.0, %v275_v21 }
 0x21b   :  { %v240_v27 = vpack.c.bf16 %v201_v23, %v201_v23  ;;  %v199_v28 = vmul.f32 %v195_v25, %v183_v24 }
 0x21d   :  { %221 = vst [vmem:[%s357_s5 + $0xc] sm:$0x7] %v240_v27  ;;  %v244_v29 = vpack.c.bf16 %v199_v28, %v198_v26 }
 0x21f   :  { %245 = vst [vmem:[%s357_s5] sm:$0xff] %v244_v29  }

// kernel: video_bridge_block.14
= control target key start
LH: loop header
LB: loop body
LE: loop exit
PB: predicated region body
PF: predicated region fallthrough
CT: control target
= control target key end

     0   :  { %s2967_s15 = smov 0   ;;  %s3797_s0 = inlined_call_operand.vmem [shape: bf16[2,3,4,1,8], index: 0, kind: input, shape index: {}]   ;;  %s3798_s1 = inlined_call_operand.vmem [shape: bf16[2,3,8,7,8], index: 1, kind: input, shape index: {}]   ;;  %s3799_s2 = inlined_call_operand.vmem [shape: f32[2,1,8], index: 2, kind: input, shape index: {}]   ;;  %s3800_s3 = inlined_call_operand.vmem [shape: bf16[2,4,1,8], index: 3, kind: output, shape index: {0}]   ;;  %s3801_s4 = inlined_call_operand.vmem [shape: bf16[2,8,7,8], index: 4, kind: output, shape index: {1}]  }
   0x1 LB: > { %s2507_s16 = sadd.s32 4294967295, %s2935_s15   ;;  %p2511_p0 = scmp.ge.s32.totalorder %s2935_s15, 1  ;;  %s2935_s15 = sphi %s2967_s15, %s15_s15  }
   0x2   : > { %p182_p1 = scmp.lt.s32.totalorder %s2935_s15, 3 }
   0x4   : > { %p183_p2 = pnand %p2511_p0, %p182_p1 }
   0x6   : > { %186 = sbr.rel (%p183_p2) target bundleno = 1343 (0x53f), region = 32 }
   0xb   : > { %p219_p3 = scmp.lt.s32.totalorder %s2507_s16, 1  ;;  %v294_v0 = vlaneseq  ;;  %v3802_v1 = vmov 0.0   ;;  %vm2938_vm0 = vmmov 0   ;;  %vm365_vm1 = vcmask 64512   ;;  %s2939_s25 = smov 127  }
   0xc   : > { %2639 = vmatprep.subr.bf16.mxu0 %v3802_v1  ;;  %2645 = vmatprep.subr.bf16.mxu1 %v3802_v1  ;;  %vm318_vm2 = vcmask 63488   ;;  %vm753_vm3 = vcmask 55296   ;;  %vm986_vm4 = vcmask 1042432   ;;  %vm987_vm5 = vcmask 1043456  }
   0xd   : > { %s3824_s16 = smov (!%p219_p3, %s2507_s16), 1  ;;  %2641 = vmatprep.mubr.msk.bf16.mxu0 %vm2938_vm0, %v3802_v1  ;;  %2647 = vmatprep.mubr.msk.bf16.mxu1 %vm2938_vm0, %v3802_v1  ;;  %v295_v2 = vshrl.u32 %v294_v0, 7  ;;  %vm982_vm6 = vcmask 56320   ;;  %vm1454_vm7 = vcmask 57344   ;;  %vm1823_vm8 = vcmask 49152  }
   0xe   : > { %s2832_s17 = smul.u32 96, %s3824_s16  ;;  %s2988_s20 = scalar_lea.vmem %s3799_s2, %s3824_s16  ;;  %vm1848_vm9 = vcmask 1040384   ;;  %vm1419_vm10 = vcmask 60416   ;;  %vm1420_vm11 = vsmask.f32 3328 }
   0xf   : > { %v2990_v3 = vsub.s32 0, %v295_v2  ;;  %v2993_v4 = vld [vmem:[%s2988_s20] sm:$0x1]  ;;  %s2831_s24 = smul.u32 12, %s3824_s16  ;;  %s2574_s29 = sshll.u32 %s3824_s16, 5  ;;  %vm3707_vm12 = vmand %vm1419_vm10, %vm1420_vm11 }
  0x10   : > { %s2998_s23 = scalar_lea.vmem %s3798_s1, %s2832_s17  ;;  %s3701_s6 = scalar_lea.vmem %s3801_s4, %s2574_s29  ;;  %vm2386_vm13 = vsmask.f32 256 }
  0x11   : > { %v3002_v5 = vrot.slane %v2993_v4, %v2990_v3  ;;  %v2524_v6 = vld [vmem:[%s2998_s23 + $0x20] sm:$0xf]  ;;  %v2525_v7 = vld [vmem:[%s2998_s23 + $0x24] sm:$0xf]  ;;  %v2526_v10 = vld [vmem:[%s2998_s23 + $0x28] sm:$0xf]  ;;  %s3023_s28 = scalar_lea.vmem %s3797_s0, %s2831_s24 }
  0x12   : > { %v3008_v8 = vsel %vm365_vm1, %v2524_v6, 0  ;;  %v3011_v9 = vsel %vm365_vm1, %v2525_v7, 0  ;;  %v2527_v11 = vld [vmem:[%s2998_s23 + $0x2c] sm:$0xf]  ;;  %v3026_v12 = vld [vmem:[%s2998_s23] sm:$0xf]  ;;  %vm3781_vm14 = vmand %vm1454_vm7, %vm2386_vm13 }
  0x13   : > { %742 = vrot.lane.b32.xlu0 %v3002_v5, %s2939_s25  ;;  %2640 = vmatpush3.bf16.xpose.msra.mxu0 %v3008_v8  ;;  %v256_v13 = vld [vmem:[%s2998_s23 + $0x4] sm:$0xf]  ;;  %v3030_v14 = vsel %vm365_vm1, %v2526_v10, 0  ;;  %v3033_v15 = vsel %vm365_vm1, %v2527_v11, 0  ;;  %v257_v20 = vld [vmem:[%s2998_s23 + $0x8] sm:$0xf]  ;;  %v282_v49 = vunpack.c.l.bf16 %v3026_v12 }
  0x14   : > { %2646 = vmatpush3.bf16.xpose.msra.mxu1 %v3011_v9  ;;  %2651 = vmatprep.subr.bf16.mxu0 %v3802_v1  ;;  %v3036_v16 = vld [vmem:[%s3023_s28 + $0x4] sm:$0x1]  ;;  %v283_v17 = vunpack.c.l.bf16 %v256_v13  ;;  %v3040_v19 = vld [vmem:[%s3023_s28 + $0x5] sm:$0x1]  ;;  %v284_v23 = vunpack.c.l.bf16 %v257_v20  ;;  %v2528_v25 = vld [vmem:[%s2998_s23 + $0x30] sm:$0xf] }
  0x15   : > { %2657 = vmatprep.subr.bf16.mxu1 %v3802_v1  ;;  %v290_v18 = vunpack.c.l.bf16 %v3036_v16  ;;  %v291_v21 = vunpack.c.l.bf16 %v3040_v19  ;;  %v2529_v26 = vld [vmem:[%s2998_s23 + $0x34] sm:$0xf]  ;;  %v258_v28 = vld [vmem:[%s2998_s23 + $0xc] sm:$0xf]  ;;  %v3066_v31 = vsel %vm365_vm1, %v2528_v25, 0  ;;  %s2513_s7 = sshll.u32 %s3824_s16, 2 }
  0x16   : > { %v3069_v32 = vsel %vm365_vm1, %v2529_v26, 0  ;;  %v285_v33 = vunpack.c.l.bf16 %v258_v28  ;;  %v2530_v35 = vld [vmem:[%s2998_s23 + $0x38] sm:$0xf]  ;;  %v2531_v36 = vld [vmem:[%s2998_s23 + $0x3c] sm:$0xf]  ;;  %s234_s10 = scalar_lea.vmem %s3800_s3, %s2513_s7 }
  0x17   : > { %v297_v22 = vrot.slane %v290_v18, %v2990_v3  ;;  %v301_v24 = vrot.slane %v291_v21, %v2990_v3  ;;  %v259_v38 = vld [vmem:[%s2998_s23 + $0x10] sm:$0xf]  ;;  %v3086_v39 = vld [vmem:[%s2998_s23 + $0x14] sm:$0xf]  ;;  %v3089_v40 = vsel %vm365_vm1, %v2530_v35, 0  ;;  %v3092_v41 = vsel %vm365_vm1, %v2531_v36, 0 }
  0x18   : > { %v3107_v43 = vld [vmem:[%s2998_s23 + $0x18] sm:$0xf]  ;;  %v3110_v44 = vld [vmem:[%s2998_s23 + $0x1c] sm:$0xf]  ;;  %v3121_v45 = vld [vmem:[%s3023_s28 + $0x6] sm:$0x1]  ;;  %v286_v47 = vunpack.c.l.bf16 %v259_v38  ;;  %v287_v25 = vunpack.c.l.bf16 %v3086_v39 }
  0x19   : > { %v311_v27 = vmul.f32 %v297_v22, %v283_v17  ;;  %v312_v30 = vmul.f32 %v301_v24, %v284_v23  ;;  %v313_v37 = vmul.f32 %v301_v24, %v285_v33  ;;  %v292_v46 = vunpack.c.l.bf16 %v3121_v45 }
  0x1a   : > { %2642 = vmatmul.mubr.msk.bf16.vlgmr.msra.gmra.mxu0 %vm365_vm1, %v3026_v12  ;;  %v310_v51 = vmul.f32 %v297_v22, %v282_v49  ;;  %v3141_v12 = vld [vmem:[%s3023_s28 + $0x7] sm:$0x1]  ;;  %v288_v36 = vunpack.c.l.bf16 %v3107_v43 }
  0x1b   : > { %2648 = vmatmul.mubr.msk.bf16.vlgmr.msra.gmra.mxu1 %vm365_vm1, %v256_v13  ;;  %2652 = vmatpush3.bf16.xpose.msra.mxu0 %v3030_v14  ;;  %v322_v29 = vsel %vm318_vm2, %v311_v27, 0.0  ;;  %v325_v34 = vsel %vm318_vm2, %v312_v30, 0.0  ;;  %v328_v42 = vsel %vm318_vm2, %v313_v37, 0.0  ;;  %v305_v48 = vrot.slane %v292_v46, %v2990_v3 }
  0x1c   : > { %2658 = vmatpush3.bf16.xpose.msra.mxu1 %v3033_v15  ;;  %2653 = vmatprep.mubr.msk.bf16.mxu0 %vm2938_vm0, %v3802_v1  ;;  %v319_v53 = vsel %vm318_vm2, %v310_v51, 0.0  ;;  %v293_v26 = vunpack.c.l.bf16 %v3141_v12 }
  0x1d   : > { %2659 = vmatprep.mubr.msk.bf16.mxu1 %vm2938_vm0, %v3802_v1  ;;  %2663 = vmatprep.subr.bf16.mxu0 %v3802_v1  ;;  %v314_v50 = vmul.f32 %v305_v48, %v286_v47  ;;  %v315_v35 = vmul.f32 %v305_v48, %v287_v25 }
  0x1e   : > { %2669 = vmatprep.subr.bf16.mxu1 %v3802_v1  ;;  %323 = vadd.xlane.f32.xlu1 %v322_v29  ;;  %v309_v37 = vrot.slane %v293_v26, %v2990_v3 }
  0x1f   : > { %v331_v52 = vsel %vm318_vm2, %v314_v50, 0.0  ;;  %v2940_v50 = vmov 0   ;;  %v334_v48 = vsel %vm318_vm2, %v315_v35, 0.0 }
  0x20   : > { %2846 = vset.pattern.permute.xlu0 %v2940_v50  ;;  %2847 = vset.pattern.permute.xlu1 %v2940_v50 }
  0x22   : > { %2654 = vmatmul.mubr.msk.bf16.vlgmr.msra.gmra.mxu0 %vm365_vm1, %v257_v20  ;;  %326 = vadd.xlane.f32.xlu1 %v325_v34 }
  0x23   : > { %2660 = vmatmul.mubr.msk.bf16.vlgmr.msra.gmra.mxu1 %vm365_vm1, %v258_v28  ;;  %2664 = vmatpush3.bf16.xpose.msra.mxu0 %v3066_v31 }
  0x24   : > { %2670 = vmatpush3.bf16.xpose.msra.mxu1 %v3069_v32  ;;  %2665 = vmatprep.mubr.msk.bf16.mxu0 %vm2938_vm0, %v3802_v1 }
  0x25   : > { %2671 = vmatprep.mubr.msk.bf16.mxu1 %vm2938_vm0, %v3802_v1  ;;  %2675 = vmatprep.subr.bf16.mxu0 %v3802_v1 }
  0x26   : > { %2681 = vmatprep.subr.bf16.mxu1 %v3802_v1  ;;  %329 = vadd.xlane.f32.xlu1 %v328_v42 }
  0x2a   : > { %2666 = vmatmul.mubr.msk.bf16.vlgmr.msra.gmra.mxu0 %vm365_vm1, %v259_v38  ;;  %332 = vadd.xlane.f32.xlu1 %v331_v52 }
  0x2b   : > { %2672 = vmatmul.mubr.msk.bf16.vlgmr.msra.gmra.mxu1 %vm365_vm1, %v3086_v39  ;;  %2676 = vmatpush3.bf16.xpose.msra.mxu0 %v3089_v40 }
  0x2c   : > { %2682 = vmatpush3.bf16.xpose.msra.mxu1 %v3092_v41  ;;  %2677 = vmatprep.mubr.msk.bf16.mxu0 %vm2938_vm0, %v3802_v1 }
  0x2d   : > { %2683 = vmatprep.mubr.msk.bf16.mxu1 %vm2938_vm0, %v3802_v1  ;;  %2687 = vmatprep.subr.bf16.mxu0 %v3802_v1 }
  0x2e   : > { %2693 = vmatprep.subr.bf16.mxu1 %v3802_v1 }
  0x32   : > { %2678 = vmatmul.mubr.msk.bf16.vlgmr.msra.gmra.mxu0 %vm365_vm1, %v3107_v43  ;;  %320 = vadd.xlane.f32.xlu0 %v319_v53  ;;  %v316_v53 = vmul.f32 %v309_v37, %v288_v36 }
  0x33   : > { %2684 = vmatmul.mubr.msk.bf16.vlgmr.msra.gmra.mxu1 %vm365_vm1, %v3110_v44  ;;  %2689 = vmatprep.mubr.msk.bf16.mxu0 %vm2938_vm0, %v3802_v1 }
  0x34   : > { %2695 = vmatprep.mubr.msk.bf16.mxu1 %vm2938_vm0, %v3802_v1 }
  0x85   : > { %v3130_v54 = vpop.permute.xlu0 %742 }
  0xa7   : > { %v324_v35 = vpop.xlane.xlu1 %323 }
  0xab   : > { %v327_v36 = vpop.xlane.xlu1 %326 }
  0xda   : > { %v406_v55 = vpop.f32.mrf.mxu0 }
  0xdb   : > { %v452_v56 = vpop.f32.mrf.mxu1  ;;  %v734_v57 = vmul.f32 0.35355338, %v406_v55  ;;  %v289_v55 = vunpack.c.l.bf16 %v3110_v44 }
  0xdc   : > { %v735_v58 = vmul.f32 0.35355338, %v452_v56  ;;  %v2643_v59 = vpop.f32.mrf.mxu0 }
  0xdd   : > { %v2649_v60 = vpop.f32.mrf.mxu1  ;;  %v3133_v61 = vadd.f32 %v3130_v54, %v734_v57 }
  0xde   : > { %v409_v62 = vpop.f32.mrf.mxu0  ;;  %v3138_v2 = vadd.f32 %v3130_v54, %v735_v58 }
  0xdf   : > { %v455_v63 = vpop.f32.mrf.mxu1  ;;  %v754_v0 = vsel %vm753_vm3, %v3133_v61, -inf }
  0xe0   : > { %v2644_v6 = vpop.f32.mrf.mxu0  ;;  %755 = vmax.xlane.f32.xlu1 %v754_v0  ;;  %v757_v20 = vsel %vm753_vm3, %v3138_v2, -inf  ;;  %v337_v63 = vsel %vm318_vm2, %v316_v53, 0.0  ;;  %v317_v0 = vmul.f32 %v309_v37, %v289_v55  ;;  %v330_v37 = vpop.xlane.xlu1 %329 }
  0xe1   : > { %v2650_v7 = vpop.f32.mrf.mxu1 }
  0xe2   : > { %v498_v10 = vpop.f32.mrf.mxu0 }
  0xe3   : > { %v544_v11 = vpop.f32.mrf.mxu1  ;;  %v736_v13 = vmul.f32 0.35355338, %v498_v10 }
  0xe4   : > { %v737_v17 = vmul.f32 0.35355338, %v544_v11  ;;  %v2655_v22 = vpop.f32.mrf.mxu0  ;;  %758 = vmax.xlane.f32.xlu1 %v757_v20  ;;  %v340_v20 = vsel %vm318_vm2, %v317_v0, 0.0 }
  0xe5   : > { %v2661_v23 = vpop.f32.mrf.mxu1  ;;  %v3146_v24 = vadd.f32 %v3130_v54, %v736_v13 }
  0xe6   : > { %v501_v27 = vpop.f32.mrf.mxu0  ;;  %v3153_v30 = vadd.f32 %v3130_v54, %v737_v17 }
  0xe7   : > { %v547_v28 = vpop.f32.mrf.mxu1  ;;  %v760_v29 = vsel %vm753_vm3, %v3146_v24, -inf }
  0xe8   : > { %v2656_v33 = vpop.f32.mrf.mxu0  ;;  %761 = vmax.xlane.f32.xlu1 %v760_v29  ;;  %v763_v49 = vsel %vm753_vm3, %v3153_v30, -inf }
  0xe9   : > { %v2662_v34 = vpop.f32.mrf.mxu1 }
  0xea   : > { %v590_v38 = vpop.f32.mrf.mxu0 }
  0xeb   : > { %v636_v39 = vpop.f32.mrf.mxu1  ;;  %v738_v42 = vmul.f32 0.35355338, %v590_v38  ;;  %v321_v38 = vpop.xlane.xlu0 %320 }
  0xec   : > { %v739_v47 = vmul.f32 0.35355338, %v636_v39  ;;  %v2667_v51 = vpop.f32.mrf.mxu0  ;;  %764 = vmax.xlane.f32.xlu1 %v763_v49  ;;  %v343_v39 = vmul.f32 0.35355338, %v321_v38  ;;  %v344_v49 = vmul.f32 0.35355338, %v324_v35 }
  0xed   : > { %v2673_v52 = vpop.f32.mrf.mxu1  ;;  %v3163_v43 = vadd.f32 %v3130_v54, %v738_v42  ;;  %v333_v42 = vpop.xlane.xlu1 %332 }
  0xee   : > { %v593_v56 = vpop.f32.mrf.mxu0  ;;  %v3169_v59 = vadd.f32 %v3130_v54, %v739_v47  ;;  %v3186_v47 = vadd.f32 %v3002_v5, %v343_v39  ;;  %v345_v52 = vmul.f32 0.35355338, %v327_v36  ;;  %v3195_v53 = vadd.f32 %v3002_v5, %v344_v49  ;;  %v2533_v36 = vld [vmem:[%s2998_s23 + $0x44] sm:$0xf] }
  0xef   : > { %v639_v57 = vpop.f32.mrf.mxu1  ;;  %v766_v58 = vsel %vm753_vm3, %v3163_v43, -inf }
  0xf0   : > { %v2668_v60 = vpop.f32.mrf.mxu0  ;;  %335 = vadd.xlane.f32.xlu1 %v334_v48  ;;  %767 = vmax.xlane.f32.xlu0 %v766_v58  ;;  %v769_v44 = vsel %vm753_vm3, %v3169_v59, -inf  ;;  %v346_v57 = vmul.f32 0.35355338, %v330_v37  ;;  %v2928_v48 = vld [vmem:[%s2988_s20] sm:$0x1] }
  0xf1   : > { %v2674_v62 = vpop.f32.mrf.mxu1  ;;  %v3204_v60 = vadd.f32 %v3002_v5, %v345_v52 }
  0xf2   : > { %v682_v6 = vpop.f32.mrf.mxu0  ;;  %v3210_v0 = vadd.f32 %v3002_v5, %v346_v57 }
  0xf3   : > { %v728_v7 = vpop.f32.mrf.mxu1  ;;  %v740_v10 = vmul.f32 0.35355338, %v682_v6  ;;  %v347_v6 = vmul.f32 0.35355338, %v333_v42 }
  0xf4   : > { %v741_v11 = vmul.f32 0.35355338, %v728_v7  ;;  %v2679_v13 = vpop.f32.mrf.mxu0  ;;  %770 = vmax.xlane.f32.xlu1 %v769_v44  ;;  %338 = vadd.xlane.f32.xlu0 %v337_v63 }
  0xf5   : > { %v2685_v17 = vpop.f32.mrf.mxu1  ;;  %v3176_v22 = vadd.f32 %v3130_v54, %v740_v10 }
  0xf6   : > { %v685_v23 = vpop.f32.mrf.mxu0  ;;  %v3181_v28 = vadd.f32 %v3130_v54, %v741_v11  ;;  %v2941_v11 = vmov 65535   ;;  %v2532_v17 = vld [vmem:[%s2998_s23 + $0x40] sm:$0xf] }
  0xf7   : > { %v731_v25 = vpop.f32.mrf.mxu1  ;;  %v772_v27 = vsel %vm753_vm3, %v3176_v22, -inf  ;;  %v988_v44 = vsel %vm986_vm4, 4294967295, %v2941_v11 }
  0xf8   : > { %v2680_v29 = vpop.f32.mrf.mxu0  ;;  %341 = vadd.xlane.f32.xlu1 %v340_v20  ;;  %773 = vmax.xlane.f32.xlu0 %v772_v27  ;;  %v775_v34 = vsel %vm753_vm3, %v3181_v28, -inf  ;;  %v3219_v20 = vsel %vm987_vm5, %v988_v44, 0  ;;  %v3228_v27 = vadd.f32 %v3002_v5, %v347_v6  ;;  %v2534_v25 = vld [vmem:[%s2998_s23 + $0x48] sm:$0xf] }
  0xf9   : > { %v2686_v33 = vpop.f32.mrf.mxu1  ;;  %v3222_v23 = vand.u32 %v2532_v17, %v3219_v20  ;;  %v3237_v37 = vand.u32 %v2533_v36, %v3219_v20 }
  0xfb   : > { %2688 = vmatpush3.bf16.msra.mxu0 %v3222_v23  ;;  %2694 = vmatpush3.bf16.msra.mxu1 %v3237_v37 }
  0xfc   : > { %776 = vmax.xlane.f32.xlu1 %v775_v34  ;;  %2699 = vmatprep.subr.bf16.mxu0 %v3802_v1 }
  0xfd   : > { %2705 = vmatprep.subr.bf16.mxu1 %v3802_v1 }
 0x169   : > { %v756_v50 = vpop.xlane.xlu1 %755 }
 0x16a   : > { %v3189_v51 = vmax.f32 %v756_v50, %v3186_v47 }
 0x16c   : > { %788 = vperm.xlu0 %2846, %v3189_v51  }
 0x16d   : > { %v759_v55 = vpop.xlane.xlu1 %758 }
 0x16e   : > { %v3198_v56 = vmax.f32 %v759_v55, %v3195_v53 }
 0x170   : > { %793 = vperm.xlu1 %2847, %v3198_v56  }
 0x171   : > { %v762_v62 = vpop.xlane.xlu1 %761 }
 0x172   : > { %v3207_v63 = vmax.f32 %v762_v62, %v3204_v60 }
 0x174   : > { %798 = vperm.xlu1 %2847, %v3207_v63  }
 0x175   : > { %v765_v10 = vpop.xlane.xlu1 %764 }
 0x176   : > { %v3216_v13 = vmax.f32 %v765_v10, %v3210_v0 }
 0x178   : > { %803 = vperm.xlu1 %2847, %v3216_v13  }
 0x179   : > { %v336_v29 = vpop.xlane.xlu1 %335  ;;  %v768_v33 = vpop.xlane.xlu0 %767 }
 0x17a   : > { %v348_v34 = vmul.f32 0.35355338, %v336_v29  ;;  %v3232_v35 = vmax.f32 %v768_v33, %v3228_v27 }
 0x17c   : > { %808 = vperm.xlu1 %2847, %v3232_v35   ;;  %v3243_v39 = vadd.f32 %v3002_v5, %v348_v34 }
 0x17d   : > { %v771_v42 = vpop.xlane.xlu1 %770  ;;  %v339_v49 = vpop.xlane.xlu0 %338 }
 0x17e   : > { %v3247_v50 = vmax.f32 %v771_v42, %v3243_v39  ;;  %v349_v52 = vmul.f32 0.35355338, %v339_v49 }
 0x180   : > { %813 = vperm.xlu1 %2847, %v3247_v50   ;;  %v3254_v57 = vadd.f32 %v3002_v5, %v349_v52 }
 0x181   : > { %v342_v62 = vpop.xlane.xlu1 %341  ;;  %v774_v6 = vpop.xlane.xlu0 %773 }
 0x182   : > { %v350_v10 = vmul.f32 0.35355338, %v342_v62  ;;  %v3257_v11 = vmax.f32 %v774_v6, %v3254_v57 }
 0x184   : > { %818 = vperm.xlu1 %2847, %v3257_v11   ;;  %v3263_v17 = vadd.f32 %v3002_v5, %v350_v10 }
 0x185   : > { %v777_v29 = vpop.xlane.xlu1 %776 }
 0x186   : > { %v3266_v33 = vmax.f32 %v777_v29, %v3263_v17 }
 0x188   : > { %823 = vperm.xlu1 %2847, %v3266_v33  }
 0x1e7   : > { %v789_v36 = vpop.permute.xlu0 %788 }
 0x1e8   : > { %v826_v42 = vsub.f32 %v3133_v61, %v789_v36 }
 0x1ea   : > { %v834_v49 = vmul.f32 1.442695, %v826_v42 }
 0x1eb   : > { %v794_v52 = vpop.permute.xlu1 %793 }
 0x1ec   : > { %2848 = vpow2.f32 %v834_v49  ;;  %v827_v62 = vsub.f32 %v3138_v2, %v794_v52  ;;  %v3280_v2 = vand.u32 %v2534_v25, %v3219_v20  ;;  %v2535_v49 = vld [vmem:[%s2998_s23 + $0x4c] sm:$0xf] }
 0x1ee   : > { %v836_v5 = vmul.f32 1.442695, %v827_v62 }
 0x1ef   : > { %v799_v6 = vpop.permute.xlu1 %798 }
 0x1f0   : > { %2850 = vpow2.f32 %v836_v5  ;;  %v828_v10 = vsub.f32 %v3146_v24, %v799_v6 }
 0x1f2   : > { %v838_v29 = vmul.f32 1.442695, %v828_v10 }
 0x1f3   : > { %v804_v44 = vpop.permute.xlu1 %803 }
 0x1f4   : > { %2852 = vpow2.f32 %v838_v29  ;;  %v829_v34 = vsub.f32 %v3153_v30, %v804_v44 }
 0x1f6   : > { %v840_v55 = vmul.f32 1.442695, %v829_v34 }
 0x1f7   : > { %v809_v7 = vpop.permute.xlu1 %808 }
 0x1f8   : > { %2854 = vpow2.f32 %v840_v55  ;;  %v830_v61 = vsub.f32 %v3163_v43, %v809_v7  ;;  %v3291_v43 = vand.u32 %v2535_v49, %v3219_v20 }
 0x1f9   : > { %v3277_v36 = vpop.eup %2848 }
 0x1fa   : > { %v842_v42 = vmul.f32 1.442695, %v830_v61  ;;  %v906_v24 = vpack.c.bf16 %v3277_v36, %v3277_v36 }
 0x1fb   : > { %v814_v52 = vpop.permute.xlu1 %813 }
 0x1fc   : > { %2856 = vpow2.f32 %v842_v42  ;;  %v831_v30 = vsub.f32 %v3169_v59, %v814_v52  ;;  %2690 = vmatmul.mubr.msk.bf16.vlgmr.msra.gmra.mxu0 %vm982_vm6, %v906_v24  ;;  %v2536_v59 = vld [vmem:[%s2998_s23 + $0x50] sm:$0xf] }
 0x1fd   : > { %v3287_v55 = vpop.eup %2850  ;;  %2700 = vmatpush3.bf16.msra.mxu0 %v3280_v2  ;;  %2701 = vmatprep.mubr.msk.bf16.mxu0 %vm2938_vm0, %v3802_v1  ;;  %v3307_v5 = vand.u32 %v2536_v59, %v3219_v20  ;;  %v2539_v59 = vld [vmem:[%s2998_s23 + $0x5c] sm:$0xf] }
 0x1fe   : > { %v844_v7 = vmul.f32 1.442695, %v831_v30  ;;  %v907_v25 = vpack.c.bf16 %v3287_v55, %v3287_v55  ;;  %2711 = vmatprep.subr.bf16.mxu0 %v3802_v1 }
 0x1ff   : > { %v819_v44 = vpop.permute.xlu1 %818 }
 0x200   : > { %2858 = vpow2.f32 %v844_v7  ;;  %v832_v34 = vsub.f32 %v3176_v22, %v819_v44  ;;  %2696 = vmatmul.mubr.msk.bf16.vlgmr.msra.gmra.mxu1 %vm982_vm6, %v907_v25  ;;  %v2537_v22 = vld [vmem:[%s2998_s23 + $0x54] sm:$0xf] }
 0x201   : > { %v3301_v62 = vpop.eup %2852  ;;  %2706 = vmatpush3.bf16.msra.mxu1 %v3291_v43  ;;  %2707 = vmatprep.mubr.msk.bf16.mxu1 %vm2938_vm0, %v3802_v1  ;;  %v3319_v24 = vand.u32 %v2537_v22, %v3219_v20 }
 0x202   : > { %v846_v6 = vmul.f32 1.442695, %v832_v34  ;;  %v908_v10 = vpack.c.bf16 %v3301_v62, %v3301_v62  ;;  %2717 = vmatprep.subr.bf16.mxu1 %v3802_v1  ;;  %v3345_v34 = vand.u32 %v2539_v59, %v3219_v20 }
 0x203   : > { %v824_v29 = vpop.permute.xlu1 %823 }
 0x204   : > { %2860 = vpow2.f32 %v846_v6  ;;  %v833_v61 = vsub.f32 %v3181_v28, %v824_v29  ;;  %2702 = vmatmul.mubr.msk.bf16.vlgmr.msra.gmra.mxu0 %vm982_vm6, %v908_v10  ;;  %v2538_v28 = vld [vmem:[%s2998_s23 + $0x58] sm:$0xf] }
 0x205   : > { %v3315_v42 = vpop.eup %2854  ;;  %2712 = vmatpush3.bf16.msra.mxu0 %v3307_v5  ;;  %2713 = vmatprep.mubr.msk.bf16.mxu0 %vm2938_vm0, %v3802_v1  ;;  %v3334_v7 = vand.u32 %v2538_v28, %v3219_v20 }
 0x206   : > { %v848_v49 = vmul.f32 1.442695, %v833_v61  ;;  %v909_v52 = vpack.c.bf16 %v3315_v42, %v3315_v42  ;;  %2723 = vmatprep.subr.bf16.mxu0 %v3802_v1  ;;  %v241_v61 = vld [vmem:[%s3023_s28] sm:$0x1] }
 0x208   : > { %2862 = vpow2.f32 %v848_v49  ;;  %2708 = vmatmul.mubr.msk.bf16.vlgmr.msra.gmra.mxu1 %vm982_vm6, %v909_v52 }
 0x209   : > { %v3328_v30 = vpop.eup %2856  ;;  %2718 = vmatpush3.bf16.msra.mxu1 %v3319_v24  ;;  %2719 = vmatprep.mubr.msk.bf16.mxu1 %vm2938_vm0, %v3802_v1 }
 0x20a   : > { %v910_v25 = vpack.c.bf16 %v3328_v30, %v3328_v30  ;;  %2729 = vmatprep.subr.bf16.mxu1 %v3802_v1 }
 0x20c   : > { %2714 = vmatmul.mubr.msk.bf16.vlgmr.msra.gmra.mxu0 %vm982_vm6, %v910_v25 }
 0x20d   : > { %v3341_v44 = vpop.eup %2858  ;;  %2724 = vmatpush3.bf16.msra.mxu0 %v3334_v7  ;;  %2725 = vmatprep.mubr.msk.bf16.mxu0 %vm2938_vm0, %v3802_v1 }
 0x20e   : > { %v911_v6 = vpack.c.bf16 %v3341_v44, %v3341_v44  ;;  %2735 = vmatprep.subr.bf16.mxu0 %v3802_v1 }
 0x210   : > { %2720 = vmatmul.mubr.msk.bf16.vlgmr.msra.gmra.mxu1 %vm982_vm6, %v911_v6 }
 0x211   : > { %v3353_v10 = vpop.eup %2860  ;;  %2730 = vmatpush3.bf16.msra.mxu1 %v3345_v34  ;;  %2731 = vmatprep.mubr.msk.bf16.mxu1 %vm2938_vm0, %v3802_v1 }
 0x212   : > { %v912_v20 = vpack.c.bf16 %v3353_v10, %v3353_v10  ;;  %2741 = vmatprep.subr.bf16.mxu1 %v3802_v1 }
 0x214   : > { %2726 = vmatmul.mubr.msk.bf16.vlgmr.msra.gmra.mxu0 %vm982_vm6, %v912_v20 }
 0x215   : > { %v3362_v22 = vpop.eup %2862  ;;  %2736 = vmatpush3.bf16.xpose.msra.mxu0 %v3008_v8  ;;  %2737 = vmatprep.mubr.msk.bf16.mxu0 %vm2938_vm0, %v3802_v1  ;;  %v242_v8 = vld [vmem:[%s3023_s28 + $0x1] sm:$0x1] }
 0x216   : > { %v913_v29 = vpack.c.bf16 %v3362_v22, %v3362_v22  ;;  %2747 = vmatprep.subr.bf16.mxu0 %v3802_v1 }
 0x218   : > { %2732 = vmatmul.mubr.msk.bf16.vlgmr.msra.gmra.mxu1 %vm982_vm6, %v913_v29 }
 0x219   : > { %2742 = vmatpush3.bf16.xpose.msra.mxu1 %v3011_v9  ;;  %2743 = vmatprep.mubr.msk.bf16.mxu1 %vm2938_vm0, %v3802_v1  ;;  %v3395_v9 = vld [vmem:[%s3023_s28 + $0x2] sm:$0x1] }
 0x21a   : > { %2753 = vmatprep.subr.bf16.mxu1 %v3802_v1 }
 0x21c   : > { %2738 = vmatmul.mubr.msk.bf16.vlgmr.msra.gmra.mxu0 %vm365_vm1, %v241_v61 }
 0x21d   : > { %2748 = vmatpush3.bf16.xpose.msra.mxu0 %v3030_v14  ;;  %2749 = vmatprep.mubr.msk.bf16.mxu0 %vm2938_vm0, %v3802_v1  ;;  %v3410_v14 = vld [vmem:[%s3023_s28 + $0x3] sm:$0x1] }
 0x21e   : > { %2759 = vmatprep.subr.bf16.mxu0 %v3802_v1 }
 0x220   : > { %2744 = vmatmul.mubr.msk.bf16.vlgmr.msra.gmra.mxu1 %vm365_vm1, %v241_v61 }
 0x221   : > { %2754 = vmatpush3.bf16.xpose.msra.mxu1 %v3033_v15  ;;  %2755 = vmatprep.mubr.msk.bf16.mxu1 %vm2938_vm0, %v3802_v1  ;;  %v1446_v15 = vunpack.c.l.bf16 %v241_v61 }
 0x222   : > { %2765 = vmatprep.subr.bf16.mxu1 %v3802_v1 }
 0x224   : > { %2750 = vmatmul.mubr.msk.bf16.vlgmr.msra.gmra.mxu0 %vm365_vm1, %v242_v8 }
 0x225   : > { %2760 = vmatpush3.bf16.xpose.msra.mxu0 %v3066_v31  ;;  %2761 = vmatprep.mubr.msk.bf16.mxu0 %vm2938_vm0, %v3802_v1  ;;  %v1450_v31 = vmul.f32 %v1446_v15, %v290_v18 }
 0x226   : > { %2771 = vmatprep.subr.bf16.mxu0 %v3802_v1 }
 0x228   : > { %2756 = vmatmul.mubr.msk.bf16.vlgmr.msra.gmra.mxu1 %vm365_vm1, %v242_v8 }
 0x229   : > { %2766 = vmatpush3.bf16.xpose.msra.mxu1 %v3069_v32  ;;  %2767 = vmatprep.mubr.msk.bf16.mxu1 %vm2938_vm0, %v3802_v1  ;;  %v1455_v32 = vsel %vm1454_vm7, %v1450_v31, 0.0 }
 0x22a   : > { %2777 = vmatprep.subr.bf16.mxu1 %v3802_v1  ;;  %1456 = vadd.xlane.f32.xlu1 %v1455_v32 }
 0x22c   : > { %2762 = vmatmul.mubr.msk.bf16.vlgmr.msra.gmra.mxu0 %vm365_vm1, %v3395_v9 }
 0x22d   : > { %2772 = vmatpush3.bf16.xpose.msra.mxu0 %v3089_v40  ;;  %2773 = vmatprep.mubr.msk.bf16.mxu0 %vm2938_vm0, %v3802_v1  ;;  %v1447_v40 = vunpack.c.l.bf16 %v242_v8 }
 0x22e   : > { %2783 = vmatprep.subr.bf16.mxu0 %v3802_v1 }
 0x230   : > { %2768 = vmatmul.mubr.msk.bf16.vlgmr.msra.gmra.mxu1 %vm365_vm1, %v3395_v9 }
 0x231   : > { %2778 = vmatpush3.bf16.xpose.msra.mxu1 %v3092_v41  ;;  %2779 = vmatprep.mubr.msk.bf16.mxu1 %vm2938_vm0, %v3802_v1  ;;  %v1451_v41 = vmul.f32 %v1447_v40, %v291_v21 }
 0x232   : > { %2789 = vmatprep.subr.bf16.mxu1 %v3802_v1 }
 0x234   : > { %2774 = vmatmul.mubr.msk.bf16.vlgmr.msra.gmra.mxu0 %vm365_vm1, %v3410_v14 }
 0x235   : > { %2784 = vmatpush3.bf16.msra.mxu0 %v3222_v23  ;;  %2785 = vmatprep.mubr.msk.bf16.mxu0 %vm2938_vm0, %v3802_v1  ;;  %v1458_v23 = vsel %vm1454_vm7, %v1451_v41, 0.0 }
 0x236   : > { %2795 = vmatprep.subr.bf16.mxu0 %v3802_v1  ;;  %1459 = vadd.xlane.f32.xlu1 %v1458_v23 }
 0x238   : > { %2780 = vmatmul.mubr.msk.bf16.vlgmr.msra.gmra.mxu1 %vm365_vm1, %v3410_v14 }
 0x239   : > { %2790 = vmatpush3.bf16.msra.mxu1 %v3237_v37  ;;  %2791 = vmatprep.mubr.msk.bf16.mxu1 %vm2938_vm0, %v3802_v1 }
 0x23a   : > { %2801 = vmatprep.subr.bf16.mxu1 %v3802_v1 }
 0x2bc   : > { %v3433_v37 = vpop.f32.mrf.mxu0 }
 0x2be   : > { %v2691_v49 = vpop.f32.mrf.mxu0 }
 0x2c0   : > { %v1030_v52 = vpop.f32.mrf.mxu0  ;;  %v3435_v28 = vpop.f32.mrf.mxu1 }
 0x2c2   : > { %v2692_v25 = vpop.f32.mrf.mxu0  ;;  %v2697_v16 = vpop.f32.mrf.mxu1 }
 0x2c4   : > { %v1076_v18 = vpop.f32.mrf.mxu1  ;;  %v3437_v59 = vpop.f32.mrf.mxu0 }
 0x2c6   : > { %v2698_v6 = vpop.f32.mrf.mxu1  ;;  %v2703_v20 = vpop.f32.mrf.mxu0 }
 0x2c8   : > { %v1122_v29 = vpop.f32.mrf.mxu0  ;;  %v3439_v61 = vpop.f32.mrf.mxu1 }
 0x2ca   : > { %v2704_v19 = vpop.f32.mrf.mxu0  ;;  %v2709_v21 = vpop.f32.mrf.mxu1 }
 0x2cc   : > { %v1168_v8 = vpop.f32.mrf.mxu1  ;;  %v3441_v15 = vpop.f32.mrf.mxu0 }
 0x2ce   : > { %v2710_v31 = vpop.f32.mrf.mxu1  ;;  %v2715_v32 = vpop.f32.mrf.mxu0 }
 0x2d0   : > { %v1214_v40 = vpop.f32.mrf.mxu0  ;;  %v3443_v41 = vpop.f32.mrf.mxu1 }
 0x2d1   : > { %3804 = vst [vmem:[#allocation2_spill] sm:$0xff] %v3443_v41 }
 0x2d2   : > { %v2716_v23 = vpop.f32.mrf.mxu0  ;;  %v2721_v49 = vpop.f32.mrf.mxu1 }
 0x2d4   : > { %v1260_v52 = vpop.f32.mrf.mxu1  ;;  %v3445_v25 = vpop.f32.mrf.mxu0 }
 0x2d6   : > { %v2722_v16 = vpop.f32.mrf.mxu1  ;;  %v2727_v18 = vpop.f32.mrf.mxu0 }
 0x2d8   : > { %v1306_v6 = vpop.f32.mrf.mxu0  ;;  %v3447_v20 = vpop.f32.mrf.mxu1 }
 0x2d9   : > { %3805 = vst [vmem:[#allocation3_spill] sm:$0xff] %v3447_v20 }
 0x2da   : > { %v2728_v29 = vpop.f32.mrf.mxu0  ;;  %v2733_v19 = vpop.f32.mrf.mxu1 }
 0x2db   : > { %v1448_v19 = vunpack.c.l.bf16 %v3395_v9 }
 0x2dc   : > { %v1352_v21 = vpop.f32.mrf.mxu1  ;;  %v1512_v8 = vpop.f32.mrf.mxu0 }
 0x2dd   : > { %v1807_v58 = vmul.f32 0.35355338, %v1512_v8 }
 0x2de   : > { %v2734_v31 = vpop.f32.mrf.mxu1  ;;  %v2739_v32 = vpop.f32.mrf.mxu0 }
 0x2df   : > { %v3450_v40 = vadd.f32 %v1807_v58, %v3130_v54 }
 0x2e0   : > { %v1515_v23 = vpop.f32.mrf.mxu0  ;;  %v1552_v49 = vpop.f32.mrf.mxu1 }
 0x2e1   : > { %v1808_v52 = vmul.f32 0.35355338, %v1552_v49  ;;  %v1824_v16 = vsel %vm1823_vm8, %v3450_v40, -inf }
 0x2e2   : > { %v2745_v18 = vpop.f32.mrf.mxu1  ;;  %1825 = vmax.xlane.f32.xlu0 %v1824_v16  ;;  %v2740_v6 = vpop.f32.mrf.mxu0  ;;  %v1452_v16 = vmul.f32 %v1448_v19, %v292_v46 }
 0x2e3   : > { %v3455_v29 = vadd.f32 %v1808_v52, %v3130_v54 }
 0x2e4   : > { %v1555_v21 = vpop.f32.mrf.mxu1  ;;  %v1595_v8 = vpop.f32.mrf.mxu0 }
 0x2e5   : > { %v1809_v31 = vmul.f32 0.35355338, %v1595_v8  ;;  %v1827_v58 = vsel %vm1823_vm8, %v3455_v29, -inf }
 0x2e6   : > { %v2746_v32 = vpop.f32.mrf.mxu1  ;;  %1828 = vmax.xlane.f32.xlu0 %v1827_v58  ;;  %v2751_v23 = vpop.f32.mrf.mxu0  ;;  %v1461_v58 = vsel %vm1454_vm7, %v1452_v16, 0.0 }
 0x2e7   : > { %v3461_v49 = vadd.f32 %v1809_v31, %v3130_v54  ;;  %v1449_v31 = vunpack.c.l.bf16 %v3410_v14 }
 0x2e8   : > { %v1598_v18 = vpop.f32.mrf.mxu0  ;;  %v1635_v52 = vpop.f32.mrf.mxu1 }
 0x2e9   : > { %v1810_v6 = vmul.f32 0.35355338, %v1635_v52  ;;  %v1830_v9 = vsel %vm1823_vm8, %v3461_v49, -inf }
 0x2ea   : > { %v2757_v21 = vpop.f32.mrf.mxu1  ;;  %1831 = vmax.xlane.f32.xlu0 %v1830_v9  ;;  %v2752_v8 = vpop.f32.mrf.mxu0 }
 0x2eb   : > { %v3468_v38 = vadd.f32 %v1810_v6, %v3130_v54  ;;  %v1453_v6 = vmul.f32 %v1449_v31, %v293_v26 }
 0x2ec   : > { %v1638_v32 = vpop.f32.mrf.mxu1  ;;  %v1678_v23 = vpop.f32.mrf.mxu0 }
 0x2ed   : > { %v1811_v45 = vmul.f32 0.35355338, %v1678_v23  ;;  %v1833_v46 = vsel %vm1823_vm8, %v3468_v38, -inf }
 0x2ee   : > { %v2758_v19 = vpop.f32.mrf.mxu1  ;;  %v2763_v18 = vpop.f32.mrf.mxu0  ;;  %1834 = vmax.xlane.f32.xlu1 %v1833_v46  ;;  %1462 = vadd.xlane.f32.xlu0 %v1461_v58  ;;  %v1464_v58 = vsel %vm1454_vm7, %v1453_v6, 0.0 }
 0x2ef   : > { %v3475_v52 = vadd.f32 %v1811_v45, %v3130_v54 }
 0x2f0   : > { %v1681_v9 = vpop.f32.mrf.mxu0  ;;  %v1718_v16 = vpop.f32.mrf.mxu1 }
 0x2f1   : > { %v1812_v21 = vmul.f32 0.35355338, %v1718_v16  ;;  %v1836_v14 = vsel %vm1823_vm8, %v3475_v52, -inf }
 0x2f2   : > { %v2769_v8 = vpop.f32.mrf.mxu1  ;;  %v2764_v32 = vpop.f32.mrf.mxu0  ;;  %1837 = vmax.xlane.f32.xlu1 %v1836_v14 }
 0x2f3   : > { %v3482_v23 = vadd.f32 %v1812_v21, %v3130_v54 }
 0x2f4   : > { %v1721_v46 = vpop.f32.mrf.mxu1  ;;  %v1761_v45 = vpop.f32.mrf.mxu0 }
 0x2f5   : > { %v1813_v19 = vmul.f32 0.35355338, %v1761_v45  ;;  %v1839_v12 = vsel %vm1823_vm8, %v3482_v23, -inf }
 0x2f6   : > { %v2770_v26 = vpop.f32.mrf.mxu1  ;;  %1840 = vmax.xlane.f32.xlu0 %v1839_v12  ;;  %v2775_v31 = vpop.f32.mrf.mxu0  ;;  %1465 = vadd.xlane.f32.xlu1 %v1464_v58 }
 0x2f7   : > { %v3488_v18 = vadd.f32 %v1813_v19, %v3130_v54  ;;  %v1457_v19 = vpop.xlane.xlu1 %1456 }
 0x2f8   : > { %v1764_v9 = vpop.f32.mrf.mxu0  ;;  %v1801_v16 = vpop.f32.mrf.mxu1  ;;  %v1467_v26 = vmul.f32 0.35355338, %v1457_v19 }
 0x2f9   : > { %v1814_v14 = vmul.f32 0.35355338, %v1801_v16  ;;  %v1842_v21 = vsel %vm1823_vm8, %v3488_v18, -inf }
 0x2fa   : > { %v2781_v6 = vpop.f32.mrf.mxu1  ;;  %1843 = vmax.xlane.f32.xlu0 %v1842_v21  ;;  %v2776_v8 = vpop.f32.mrf.mxu0  ;;  %v3498_v31 = vadd.f32 %v1467_v26, %v2993_v4 }
 0x2fb   : > { %v3493_v32 = vadd.f32 %v1814_v14, %v3130_v54  ;;  %v1460_v14 = vpop.xlane.xlu1 %1459 }
 0x2fc   : > { %v1804_v46 = vpop.f32.mrf.mxu1  ;;  %v1468_v8 = vmul.f32 0.35355338, %v1460_v14 }
 0x2fd   : > { %v1845_v45 = vsel %vm1823_vm8, %v3493_v32, -inf }
 0x2fe   : > { %v2782_v58 = vpop.f32.mrf.mxu1  ;;  %1846 = vmax.xlane.f32.xlu1 %v1845_v45 }
 0x2ff   : > { %v3509_v58 = vadd.f32 %v1468_v8, %v2993_v4 }
 0x36b   : > { %v1826_v12 = vpop.xlane.xlu0 %1825 }
 0x36c   : > { %v1849_v16 = vsel %vm1848_vm9, %v1826_v12, -inf }
 0x36f   : > { %v1829_v9 = vpop.xlane.xlu0 %1828 }
 0x370   : > { %v1850_v21 = vsel %vm1848_vm9, %v1829_v9, -inf }
 0x371   : > { %v1851_v54 = vmax.f32 %v1849_v16, %v1850_v21 }
 0x373   : > { %v3503_v6 = vmax.f32 %v1851_v54, %v3498_v31  ;;  %v1832_v45 = vpop.xlane.xlu0 %1831 }
 0x374   : > { %v1852_v12 = vsel %vm1848_vm9, %v1832_v45, -inf }
 0x375   : > { %1867 = vperm.xlu0 %2846, %v3503_v6  }
 0x377   : > { %v1835_v19 = vpop.xlane.xlu1 %1834  ;;  %v1463_v16 = vpop.xlane.xlu0 %1462 }
 0x378   : > { %v1853_v26 = vsel %vm1848_vm9, %v1835_v19, -inf  ;;  %v1469_v54 = vmul.f32 0.35355338, %v1463_v16 }
 0x379   : > { %v1854_v9 = vmax.f32 %v1852_v12, %v1853_v26 }
 0x37a   : > { %v3520_v4 = vadd.f32 %v2928_v48, %v1469_v54 }
 0x37b   : > { %v3514_v21 = vmax.f32 %v1854_v9, %v3509_v58  ;;  %v1838_v46 = vpop.xlane.xlu1 %1837 }
 0x37c   : > { %v1855_v45 = vsel %vm1848_vm9, %v1838_v46, -inf }
 0x37d   : > { %1872 = vperm.xlu1 %2847, %v3514_v21  }
 0x37f   : > { %v1841_v8 = vpop.xlane.xlu0 %1840  ;;  %v1466_v26 = vpop.xlane.xlu1 %1465 }
 0x380   : > { %v1856_v19 = vsel %vm1848_vm9, %v1841_v8, -inf  ;;  %v1470_v1 = vmul.f32 0.35355338, %v1466_v26 }
 0x381   : > { %v1857_v12 = vmax.f32 %v1855_v45, %v1856_v19 }
 0x382   : > { %v3532_v46 = vadd.f32 %v2928_v48, %v1470_v1  ;;  %v883_v1 = vsel %vm753_vm3, %v3315_v42, 0.0  ;;  %v880_v48 = vsel %vm753_vm3, %v3301_v62, 0.0  ;;  %v892_v42 = vsel %vm753_vm3, %v3353_v10, 0.0 }
 0x383   : > { %v3525_v9 = vmax.f32 %v1857_v12, %v3520_v4  ;;  %v1844_v14 = vpop.xlane.xlu0 %1843  ;;  %v874_v12 = vsel %vm753_vm3, %v3277_v36, 0.0  ;;  %v886_v36 = vsel %vm753_vm3, %v3328_v30, 0.0 }
 0x384   : > { %v1858_v54 = vsel %vm1848_vm9, %v1844_v14, -inf  ;;  %v877_v14 = vsel %vm753_vm3, %v3287_v55, 0.0  ;;  %v895_v55 = vsel %vm753_vm3, %v3362_v22, 0.0 }
 0x385   : > { %v1911_v16 = vsub.f32 %v3520_v4, %v3525_v9  ;;  %1877 = vperm.xlu1 %2847, %v3525_v9  }
 0x387   : > { %v1847_v20 = vpop.xlane.xlu1 %1846 }
 0x388   : > { %v1859_v41 = vsel %vm1848_vm9, %v1847_v20, -inf }
 0x389   : > { %v1860_v8 = vmax.f32 %v1858_v54, %v1859_v41  ;;  %v889_v41 = vsel %vm753_vm3, %v3341_v44, 0.0 }
 0x38b   : > { %v3535_v45 = vmax.f32 %v1860_v8, %v3532_v46 }
 0x38d   : > { %v1912_v19 = vsub.f32 %v3532_v46, %v3535_v45  ;;  %1882 = vperm.xlu0 %2846, %v3535_v45  }
 0x3a9   : > { %875 = vadd.xlane.f32.xlu1 %v874_v12 }
 0x3ac   : > { %878 = vadd.xlane.f32.xlu0 %v877_v14 }
 0x3ad   : > { %884 = vadd.xlane.f32.xlu1 %v883_v1 }
 0x3b0   : > { %881 = vadd.xlane.f32.xlu0 %v880_v48 }
 0x3b1   : > { %890 = vadd.xlane.f32.xlu1 %v889_v41 }
 0x3b4   : > { %887 = vadd.xlane.f32.xlu0 %v886_v36 }
 0x3b5   : > { %896 = vadd.xlane.f32.xlu1 %v895_v55 }
 0x3b8   : > { %893 = vadd.xlane.f32.xlu0 %v892_v42 }
 0x3f0   : > { %v1868_v20 = vpop.permute.xlu0 %1867 }
 0x3f1   : > { %v1885_v62 = vsub.f32 %v3450_v40, %v1868_v20  ;;  %v1886_v26 = vsub.f32 %v3455_v29, %v1868_v20 }
 0x3f3   : > { %v1893_v54 = vmul.f32 1.442695, %v1885_v62  ;;  %v1895_v44 = vmul.f32 1.442695, %v1886_v26 }
 0x3f5   : > { %2864 = vpow2.f32 %v1893_v54 }
 0x3f6   : > { %2866 = vpow2.f32 %v1895_v44 }
 0x3f8   : > { %v1873_v8 = vpop.permute.xlu1 %1872 }
 0x3f9   : > { %v1887_v30 = vsub.f32 %v3461_v49, %v1873_v8  ;;  %v1888_v12 = vsub.f32 %v3468_v38, %v1873_v8 }
 0x3fb   : > { %v1897_v22 = vmul.f32 1.442695, %v1887_v30  ;;  %v1899_v14 = vmul.f32 1.442695, %v1888_v12 }
 0x3fd   : > { %2868 = vpow2.f32 %v1897_v22 }
 0x3fe   : > { %2870 = vpow2.f32 %v1899_v14 }
 0x400   : > { %v1878_v10 = vpop.permute.xlu1 %1877 }
 0x401   : > { %v1889_v1 = vsub.f32 %v3475_v52, %v1878_v10  ;;  %v1890_v40 = vsub.f32 %v3482_v23, %v1878_v10  ;;  %v3806_v52 = vmov 0.0   ;;  %v3807_v10 = vsub.f32 %v3186_v47, %v3189_v51 }
 0x402   : > { %v2865_v48 = vpop.eup %2864  ;;  %v3809_v47 = vsub.f32 %v3195_v53, %v3198_v56  ;;  %v3812_v53 = vsub.f32 %v3210_v0, %v3216_v13  ;;  %v3815_v0 = vsub.f32 %v3263_v17, %v3266_v33  ;;  %v3816_v17 = vsub.f32 %v3498_v31, %v3503_v6 }
 0x403   : > { %v2867_v29 = vpop.eup %2866  ;;  %v1901_v41 = vmul.f32 1.442695, %v1889_v1  ;;  %v1903_v36 = vmul.f32 1.442695, %v1890_v40  ;;  %v1921_v55 = vsel %vm1823_vm8, %v2865_v48, 0.0  ;;  %v1961_v42 = vpack.c.bf16 %v2865_v48, %v2865_v48 }
 0x404   : > { %1922 = vadd.xlane.f32.xlu1 %v1921_v55  ;;  %v1962_v49 = vpack.c.bf16 %v2867_v29, %v2867_v29  ;;  %v1924_v38 = vsel %vm1823_vm8, %v2867_v29, 0.0  ;;  %v858_v1 = vmul.f32 1.442695, %v3807_v10  ;;  %v860_v51 = vmul.f32 1.442695, %v3809_v47 }
 0x405   : > { %2872 = vpow2.f32 %v1901_v41  ;;  %2786 = vmatmul.mubr.msk.bf16.vlgmr.msra.gmra.mxu0 %vm982_vm6, %v1961_v42  ;;  %v3810_v42 = vsub.f32 %v3509_v58, %v3514_v21  ;;  %v864_v56 = vmul.f32 1.442695, %v3812_v53  ;;  %v3813_v58 = vsub.f32 %v3243_v39, %v3247_v50 }
 0x406   : > { %2874 = vpow2.f32 %v1903_v36  ;;  %2792 = vmatmul.mubr.msk.bf16.vlgmr.msra.gmra.mxu1 %vm982_vm6, %v1962_v49  ;;  %2796 = vmatpush3.bf16.msra.mxu0 %v3280_v2  ;;  %v872_v13 = vmul.f32 1.442695, %v3815_v0  ;;  %v1913_v33 = vmul.f32 1.442695, %v3816_v17 }
 0x407   : > { %2802 = vmatpush3.bf16.msra.mxu1 %v3291_v43  ;;  %2797 = vmatprep.mubr.msk.bf16.mxu0 %vm2938_vm0, %v3806_v52  ;;  %v1915_v49 = vmul.f32 1.442695, %v3810_v42  ;;  %v868_v21 = vmul.f32 1.442695, %v3813_v58 }
 0x408   : > { %1925 = vadd.xlane.f32.xlu1 %v1924_v38  ;;  %v1883_v23 = vpop.permute.xlu0 %1882  ;;  %2803 = vmatprep.mubr.msk.bf16.mxu1 %vm2938_vm0, %v3806_v52  ;;  %v1919_v38 = vmul.f32 1.442695, %v1912_v19 }
 0x409   : > { %v1891_v20 = vsub.f32 %v3488_v18, %v1883_v23  ;;  %v1892_v62 = vsub.f32 %v3493_v32, %v1883_v23  ;;  %2807 = vmatprep.subr.bf16.mxu0 %v3806_v52  ;;  %2813 = vmatprep.subr.bf16.mxu1 %v3806_v52 }
 0x40a   : > { %v2869_v2 = vpop.eup %2868 }
 0x40b   : > { %v2871_v26 = vpop.eup %2870  ;;  %v1905_v54 = vmul.f32 1.442695, %v1891_v20  ;;  %v1907_v43 = vmul.f32 1.442695, %v1892_v62  ;;  %v1927_v44 = vsel %vm1823_vm8, %v2869_v2, 0.0  ;;  %v1963_v8 = vpack.c.bf16 %v2869_v2, %v2869_v2 }
 0x40c   : > { %1928 = vadd.xlane.f32.xlu1 %v1927_v44  ;;  %v1964_v30 = vpack.c.bf16 %v2871_v26, %v2871_v26  ;;  %v1930_v18 = vsel %vm1823_vm8, %v2871_v26, 0.0  ;;  %v1917_v44 = vmul.f32 1.442695, %v1911_v16 }
 0x40d   : > { %2876 = vpow2.f32 %v1905_v54  ;;  %2798 = vmatmul.mubr.msk.bf16.vlgmr.msra.gmra.mxu0 %vm982_vm6, %v1963_v8 }
 0x40e   : > { %2878 = vpow2.f32 %v1907_v43  ;;  %2804 = vmatmul.mubr.msk.bf16.vlgmr.msra.gmra.mxu1 %vm982_vm6, %v1964_v30  ;;  %2808 = vmatpush3.bf16.msra.mxu0 %v3307_v5 }
 0x40f   : > { %2814 = vmatpush3.bf16.msra.mxu1 %v3319_v24  ;;  %2809 = vmatprep.mubr.msk.bf16.mxu0 %vm2938_vm0, %v3806_v52  ;;  %2880 = vpow2.f32 %v858_v1 }
 0x410   : > { %1931 = vadd.xlane.f32.xlu1 %v1930_v18  ;;  %2815 = vmatprep.mubr.msk.bf16.mxu1 %vm2938_vm0, %v3806_v52 }
 0x411   : > { %2819 = vmatprep.subr.bf16.mxu0 %v3806_v52  ;;  %2825 = vmatprep.subr.bf16.mxu1 %v3806_v52 }
 0x412   : > { %v2873_v32 = vpop.eup %2872 }
 0x413   : > { %v2875_v12 = vpop.eup %2874  ;;  %v1933_v22 = vsel %vm1823_vm8, %v2873_v32, 0.0  ;;  %v1965_v5 = vpack.c.bf16 %v2873_v32, %v2873_v32 }
 0x414   : > { %v1936_v14 = vsel %vm1823_vm8, %v2875_v12, 0.0  ;;  %1934 = vadd.xlane.f32.xlu1 %v1933_v22  ;;  %v1966_v24 = vpack.c.bf16 %v2875_v12, %v2875_v12 }
 0x415   : > { %1937 = vadd.xlane.f32.xlu0 %v1936_v14  ;;  %2810 = vmatmul.mubr.msk.bf16.vlgmr.msra.gmra.mxu0 %vm982_vm6, %v1965_v5 }
 0x416   : > { %2816 = vmatmul.mubr.msk.bf16.vlgmr.msra.gmra.mxu1 %vm982_vm6, %v1966_v24  ;;  %2820 = vmatpush3.bf16.msra.mxu0 %v3334_v7  ;;  %v3808_v7 = vsub.f32 %v3228_v27, %v3232_v35  ;;  %v3811_v27 = vsub.f32 %v3204_v60, %v3207_v63  ;;  %v3814_v63 = vsub.f32 %v3254_v57, %v3257_v11 }
 0x417   : > { %2826 = vmatpush3.bf16.msra.mxu1 %v3345_v34  ;;  %2821 = vmatprep.mubr.msk.bf16.mxu0 %vm2938_vm0, %v3806_v52 }
 0x418   : > { %2827 = vmatprep.mubr.msk.bf16.mxu1 %vm2938_vm0, %v3806_v52  ;;  %v866_v34 = vmul.f32 1.442695, %v3808_v7  ;;  %v862_v35 = vmul.f32 1.442695, %v3811_v27  ;;  %v870_v46 = vmul.f32 1.442695, %v3814_v63 }
 0x41a   : > { %v2877_v40 = vpop.eup %2876  ;;  %2882 = vpow2.f32 %v866_v34 }
 0x41b   : > { %v2879_v48 = vpop.eup %2878  ;;  %v1939_v29 = vsel %vm1823_vm8, %v2877_v40, 0.0  ;;  %v1967_v41 = vpack.c.bf16 %v2877_v40, %v2877_v40  ;;  %2884 = vpow2.f32 %v860_v51 }
 0x41c   : > { %1940 = vadd.xlane.f32.xlu1 %v1939_v29  ;;  %v1968_v36 = vpack.c.bf16 %v2879_v48, %v2879_v48  ;;  %v1942_v55 = vsel %vm1823_vm8, %v2879_v48, 0.0  ;;  %2886 = vpow2.f32 %v1915_v49  ;;  %v2881_v52 = vpop.eup %2880 }
 0x41d   : > { %2822 = vmatmul.mubr.msk.bf16.vlgmr.msra.gmra.mxu0 %vm982_vm6, %v1967_v41  ;;  %2888 = vpow2.f32 %v862_v35 }
 0x41e   : > { %2828 = vmatmul.mubr.msk.bf16.vlgmr.msra.gmra.mxu1 %vm982_vm6, %v1968_v36  ;;  %2890 = vpow2.f32 %v1919_v38 }
 0x41f   : > { %2892 = vpow2.f32 %v864_v56 }
 0x420   : > { %1943 = vadd.xlane.f32.xlu1 %v1942_v55  ;;  %2894 = vpow2.f32 %v868_v21 }
 0x421   : > { %2896 = vpow2.f32 %v870_v46 }
 0x422   : > { %2898 = vpow2.f32 %v872_v13 }
 0x427   : > { %v2883_v60 = vpop.eup %2882 }
 0x428   : > { %v2885_v45 = vpop.eup %2884 }
 0x429   : > { %v3629_v19 = vpop.eup %2886 }
 0x42a   : > { %v2889_v39 = vpop.eup %2888 }
 0x42b   : > { %920 = vperm.xlu0 %2846, %v2881_v52   ;;  %v3635_v20 = vpop.eup %2890 }
 0x42c   : > { %v2893_v11 = vpop.eup %2892 }
 0x42d   : > { %v2895_v26 = vpop.eup %2894 }
 0x42e   : > { %v2897_v8 = vpop.eup %2896 }
 0x42f   : > { %940 = vperm.xlu0 %2846, %v2883_v60   ;;  %v2899_v6 = vpop.eup %2898 }
 0x431   : > { %925 = vperm.xlu1 %2847, %v2885_v45  }
 0x432   : > { %v876_v50 = vpop.xlane.xlu1 %875 }
 0x433   : > { %2332 = vperm.xlu0 %2846, %v3629_v19   ;;  %v898_v57 = vadd.f32 %v2881_v52, %v876_v50 }
 0x435   : > { %v879_v23 = vpop.xlane.xlu0 %878  ;;  %930 = vperm.xlu1 %2847, %v2889_v39   ;;  %2900 = vrcp.f32 %v898_v57 }
 0x436   : > { %v885_v30 = vpop.xlane.xlu1 %884  ;;  %v899_v31 = vadd.f32 %v2885_v45, %v879_v23 }
 0x437   : > { %2342 = vperm.xlu0 %2846, %v3635_v20   ;;  %v901_v22 = vadd.f32 %v2893_v11, %v885_v30 }
 0x439   : > { %v882_v62 = vpop.xlane.xlu0 %881  ;;  %935 = vperm.xlu1 %2847, %v2893_v11  }
 0x43a   : > { %v900_v2 = vadd.f32 %v2889_v39, %v882_v62  ;;  %v891_v12 = vpop.xlane.xlu1 %890 }
 0x43b   : > { %v903_v4 = vadd.f32 %v2895_v26, %v891_v12 }
 0x43c   : > { %2902 = vrcp.f32 %v900_v2 }
 0x43d   : > { %v888_v54 = vpop.xlane.xlu0 %887  ;;  %945 = vperm.xlu1 %2847, %v2895_v26   ;;  %2904 = vpow2.f32 %v1913_v33 }
 0x43e   : > { %v902_v43 = vadd.f32 %v2883_v60, %v888_v54  ;;  %v897_v16 = vpop.xlane.xlu1 %896  ;;  %v2520_v54 = vld [vmem:[%s3023_s28 + $0x8] sm:$0x1] }
 0x43f   : > { %v905_v10 = vadd.f32 %v2899_v6, %v897_v16 }
 0x440   : > { %2906 = vrcp.f32 %v902_v43  ;;  %v3660_v43 = vld [vmem:[%s3023_s28 + $0x9] sm:$0x1] }
 0x441   : > { %v894_v18 = vpop.xlane.xlu0 %893  ;;  %950 = vperm.xlu1 %2847, %v2897_v8   ;;  %2908 = vpow2.f32 %v1917_v44  ;;  %v914_v44 = vunpack.c.l.bf16 %v2520_v54 }
 0x442   : > { %v904_v32 = vadd.f32 %v2897_v8, %v894_v18  ;;  %v2901_v5 = vpop.eup %2900  ;;  %v3663_v8 = vld [vmem:[%s3023_s28 + $0xa] sm:$0x1] }
 0x443   : > { %v961_v12 = vrot.slane %v914_v44, %v2990_v3 }
 0x444   : > { %2910 = vrcp.f32 %v904_v32 }
 0x445   : > { %955 = vperm.xlu1 %2847, %v2899_v6   ;;  %2912 = vrcp.f32 %v899_v31  ;;  %v916_v31 = vunpack.c.l.bf16 %v3663_v8 }
 0x446   : > { %2914 = vrcp.f32 %v901_v22 }
 0x447   : > { %2916 = vrcp.f32 %v903_v4 }
 0x448   : > { %2918 = vrcp.f32 %v905_v10 }
 0x449   : > { %v2903_v14 = vpop.eup %2902  ;;  %1365 = vperm.xlu1 %2847, %v2901_v5   ;;  %v3678_v5 = vld [vmem:[%s3023_s28 + $0xb] sm:$0x1] }
 0x44a   : > { %1375 = vperm.xlu0 %2846, %v2903_v14   ;;  %v2905_v9 = vpop.eup %2904  ;;  %v3683_v14 = vrot.slane %v916_v31, %v2990_v3  ;;  %v917_v16 = vunpack.c.l.bf16 %v3678_v5 }
 0x44d   : > { %v2907_v24 = vpop.eup %2906  ;;  %2327 = vperm.xlu1 %2847, %v2905_v9  }
 0x44e   : > { %1385 = vperm.xlu0 %2846, %v2907_v24   ;;  %v2909_v1 = vpop.eup %2908 }
 0x451   : > { %v2911_v40 = vpop.eup %2910  ;;  %2337 = vperm.xlu1 %2847, %v2909_v1  }
 0x452   : > { %1395 = vperm.xlu0 %2846, %v2911_v40   ;;  %v2913_v48 = vpop.eup %2912 }
 0x453   : > { %v2915_v29 = vpop.eup %2914 }
 0x454   : > { %v2917_v41 = vpop.eup %2916 }
 0x455   : > { %1370 = vperm.xlu1 %2847, %v2913_v48   ;;  %v2919_v36 = vpop.eup %2918 }
 0x459   : > { %1380 = vperm.xlu1 %2847, %v2915_v29  }
 0x45d   : > { %1390 = vperm.xlu1 %2847, %v2917_v41  }
 0x461   : > { %1400 = vperm.xlu1 %2847, %v2919_v36  }
 0x48d   : > { %v1923_v7 = vpop.xlane.xlu1 %1922 }
 0x48e   : > { %v1945_v47 = vsel %vm1848_vm9, %v1923_v7, 0.0 }
 0x491   : > { %v1926_v34 = vpop.xlane.xlu1 %1925 }
 0x492   : > { %v1946_v51 = vsel %vm1848_vm9, %v1926_v34, 0.0 }
 0x493   : > { %v1947_v55 = vadd.f32 %v1946_v51, %v1945_v47 }
 0x495   : > { %v1957_v42 = vadd.f32 %v2905_v9, %v1947_v55  ;;  %v1929_v49 = vpop.xlane.xlu1 %1928 }
 0x496   : > { %v1948_v35 = vsel %vm1848_vm9, %v1929_v49, 0.0 }
 0x497   : > { %2920 = vrcp.f32 %v1957_v42  ;;  %v1428_v42 = vld [vmem:[%s3701_s6 + $0x8] sm:$0xf] }
 0x499   : > { %v1932_v27 = vpop.xlane.xlu1 %1931 }
 0x49a   : > { %v1949_v38 = vsel %vm1848_vm9, %v1932_v27, 0.0 }
 0x49b   : > { %v1950_v53 = vadd.f32 %v1949_v38, %v1948_v35  ;;  %v1422_v38 = vld [vmem:[%s3701_s6] sm:$0xf] }
 0x49d   : > { %v1958_v56 = vadd.f32 %v3629_v19, %v1950_v53  ;;  %v1935_v52 = vpop.xlane.xlu1 %1934 }
 0x49e   : > { %v1938_v58 = vpop.xlane.xlu0 %1937  ;;  %v1951_v21 = vsel %vm1848_vm9, %v1935_v52, 0.0 }
 0x49f   : > { %2922 = vrcp.f32 %v1958_v56  ;;  %v1952_v60 = vsel %vm1848_vm9, %v1938_v58, 0.0 }
 0x4a0   : > { %v1953_v63 = vadd.f32 %v1952_v60, %v1951_v21 }
 0x4a2   : > { %v1959_v46 = vadd.f32 %v2909_v1, %v1953_v63  ;;  %v3695_v1 = vrot.slane %v917_v16, %v2990_v3 }
 0x4a4   : > { %v2921_v45 = vpop.eup %2920  ;;  %2924 = vrcp.f32 %v1959_v46 }
 0x4a5   : > { %2359 = vperm.xlu0 %2846, %v2921_v45   ;;  %v1941_v0 = vpop.xlane.xlu1 %1940 }
 0x4a6   : > { %v1954_v39 = vsel %vm1848_vm9, %v1941_v0, 0.0  ;;  %v921_v62 = vpop.permute.xlu0 %920 }
 0x4a7   : > { %v974_v9 = vmul.f32 %v961_v12, %v921_v62 }
 0x4a9   : > { %v1944_v13 = vpop.xlane.xlu1 %1943  ;;  %v1028_v36 = vadd.f32 %v3433_v37, %v974_v9  ;;  %v1440_v9 = vld [vmem:[%s3701_s6 + $0x18] sm:$0xf] }
 0x4aa   : > { %v1955_v19 = vsel %vm1848_vm9, %v1944_v13, 0.0  ;;  %v941_v33 = vpop.permute.xlu0 %940  ;;  %v1434_v13 = vld [vmem:[%s3701_s6 + $0x10] sm:$0xf] }
 0x4ab   : > { %v1956_v50 = vadd.f32 %v1955_v19, %v1954_v39  ;;  %v978_v40 = vmul.f32 %v3683_v14, %v941_v33 }
 0x4ac   : > { %v2923_v23 = vpop.eup %2922 }
 0x4ad   : > { %v1960_v57 = vadd.f32 %v3635_v20, %v1956_v50  ;;  %2364 = vperm.xlu1 %2847, %v2923_v23   ;;  %v3654_v11 = vpop.permute.xlu1 %925  ;;  %v915_v20 = vunpack.c.l.bf16 %v3660_v43  ;;  %v1212_v56 = vadd.f32 %v3441_v15, %v978_v40 }
 0x4ae   : > { %v3668_v18 = vpop.permute.xlu0 %2332 }
 0x4af   : > { %2926 = vrcp.f32 %v1960_v57  ;;  %v3674_v6 = vrot.slane %v915_v20, %v2990_v3  ;;  %v975_v57 = vmul.f32 %v961_v12, %v3654_v11  ;;  %v2346_v11 = vmul.f32 %v3668_v18, %v915_v20  ;;  %v1425_v18 = vld [vmem:[%s3701_s6 + $0x4] sm:$0xf] }
 0x4b1   : > { %v2925_v2 = vpop.eup %2924  ;;  %v931_v17 = vpop.permute.xlu1 %930 }
 0x4b2   : > { %2369 = vperm.xlu0 %2846, %v2925_v2   ;;  %v976_v4 = vmul.f32 %v3674_v6, %v931_v17  ;;  %v3687_v24 = vpop.permute.xlu0 %2342 }
 0x4b4   : > { %v1120_v48 = vadd.f32 %v3437_v59, %v976_v4 }
 0x4b5   : > { %v3656_v26 = vpop.permute.xlu1 %935 }
 0x4b9   : > { %v3665_v30 = vpop.permute.xlu1 %945 }
 0x4bc   : > { %v2927_v32 = vpop.eup %2926 }
 0x4bd   : > { %2374 = vperm.xlu1 %2847, %v2927_v32   ;;  %v951_v22 = vpop.permute.xlu1 %950 }
 0x4be   : > { %v980_v27 = vmul.f32 %v3695_v1, %v951_v22 }
 0x4c0   : > { %v1304_v23 = vadd.f32 %v3445_v25, %v980_v27 }
 0x4c1   : > { %v3689_v10 = vpop.permute.xlu1 %955 }
 0x4c5   : > { %v2006_v29 = vpop.f32.mrf.mxu0  ;;  %v1376_v41 = vpop.permute.xlu0 %1375 }
 0x4c6   : > { %v2313_v3 = vsel %vm1454_vm7, %v2006_v29, 0.0  ;;  %v2049_v7 = vpop.f32.mrf.mxu1  ;;  %v1405_v34 = vmul.f32 %v1376_v41, %v1120_v48  ;;  %v1366_v47 = vpop.permute.xlu1 %1365  ;;  %v977_v29 = vmul.f32 %v3674_v6, %v3656_v26  ;;  %v979_v26 = vmul.f32 %v3683_v14, %v3665_v30  ;;  %v1431_v14 = vld [vmem:[%s3701_s6 + $0xc] sm:$0xf] }
 0x4c7   : > { %v2314_v51 = vsel %vm1454_vm7, %v2049_v7, 0.0  ;;  %v1403_v49 = vmul.f32 %v1366_v47, %v1028_v36  ;;  %v2787_v59 = vpop.f32.mrf.mxu0  ;;  %v1074_v36 = vadd.f32 %v3435_v28, %v975_v57 }
 0x4c8   : > { %v2315_v35 = vadd.f32 %v2314_v51, %v2313_v3  ;;  %v1413_v37 = vpack.c.bf16 %v1405_v34, %v1405_v34  ;;  %v2793_v53 = vpop.f32.mrf.mxu1  ;;  %v1166_v28 = vadd.f32 %v3439_v61, %v977_v29 }
 0x4c9   : > { %v1411_v52 = vpack.c.bf16 %v1403_v49, %v1403_v49  ;;  %v2009_v58 = vpop.f32.mrf.mxu0  ;;  %v1386_v21 = vpop.permute.xlu0 %1385 }
 0x4ca   : > { %v1429_v60 = vsel %vm3707_vm12, %v1413_v37, %v1428_v42  ;;  %v2052_v63 = vpop.f32.mrf.mxu1  ;;  %v1407_v46 = vmul.f32 %v1386_v21, %v1212_v56  ;;  %v2328_v45 = vpop.permute.xlu1 %2327 }
 0x4cb   : > { %1430 = vst [vmem:[%s3701_s6 + $0x8] sm:$0xf] %v1429_v60  ;;  %v1423_v0 = vsel %vm3707_vm12, %v1411_v52, %v1422_v38  ;;  %v2345_v39 = vmul.f32 %v2328_v45, %v914_v44  ;;  %v2788_v19 = vpop.f32.mrf.mxu0  ;;  %v981_v52 = vmul.f32 %v3695_v1, %v3689_v10  ;;  %v3819_v60 = vld [vmem:[#allocation2_spill] sm:$0xff]  ;;  %v3820_v10 = vld [vmem:[#allocation3_spill] sm:$0xff] }
 0x4cc   : > { %1424 = vst [vmem:[%s3701_s6] sm:$0xf] %v1423_v0  ;;  %v1415_v15 = vpack.c.bf16 %v1407_v46, %v1407_v46  ;;  %v2794_v50 = vpop.f32.mrf.mxu1  ;;  %v1258_v63 = vadd.f32 %v3819_v60, %v979_v26  ;;  %v2394_v26 = vld [vmem:[%s234_s10 + $0x2] sm:$0x1] }
 0x4cd   : > { %v2092_v62 = vpop.f32.mrf.mxu0  ;;  %v1396_v2 = vpop.permute.xlu0 %1395  ;;  %v3724_v17 = vadd.f32 %v2345_v39, %v2315_v35  ;;  %v1437_v39 = vld [vmem:[%s3701_s6 + $0x14] sm:$0xf]  ;;  %v1350_v1 = vadd.f32 %v3820_v10, %v981_v52 }
 0x4ce   : > { %v1435_v33 = vsel %vm3707_vm12, %v1415_v15, %v1434_v13  ;;  %v2316_v54 = vsel %vm1454_vm7, %v2092_v62, 0.0  ;;  %v2135_v32 = vpop.f32.mrf.mxu1  ;;  %v1409_v44 = vmul.f32 %v1396_v2, %v1304_v23  ;;  %v2338_v22 = vpop.permute.xlu1 %2337 }
 0x4cf   : > { %1436 = vst [vmem:[%s3701_s6 + $0x10] sm:$0xf] %v1435_v33  ;;  %v2317_v4 = vsel %vm1454_vm7, %v2135_v32, 0.0  ;;  %v2799_v25 = vpop.f32.mrf.mxu0  ;;  %v2347_v56 = vmul.f32 %v2338_v22, %v916_v31 }
 0x4d0   : > { %v2318_v12 = vadd.f32 %v2317_v4, %v2316_v54  ;;  %v1417_v40 = vpack.c.bf16 %v1409_v44, %v1409_v44  ;;  %v2805_v48 = vpop.f32.mrf.mxu1  ;;  %v2348_v44 = vmul.f32 %v3687_v24, %v917_v16  ;;  %v1443_v4 = vld [vmem:[%s3701_s6 + $0x1c] sm:$0xf] }
 0x4d1   : > { %v2095_v41 = vpop.f32.mrf.mxu0 }
 0x4d2   : > { %v1441_v3 = vsel %vm3707_vm12, %v1417_v40, %v1440_v9  ;;  %v2138_v7 = vpop.f32.mrf.mxu1  ;;  %v1371_v34 = vpop.permute.xlu1 %1370  ;;  %v3740_v47 = vadd.f32 %v2346_v11, %v2318_v12 }
 0x4d3   : > { %1442 = vst [vmem:[%s3701_s6 + $0x18] sm:$0xf] %v1441_v3  ;;  %v1404_v43 = vmul.f32 %v1371_v34, %v1074_v36  ;;  %v2800_v20 = vpop.f32.mrf.mxu0  ;;  %v2388_v36 = vld [vmem:[%s234_s10] sm:$0x1] }
 0x4d4   : > { %v2806_v51 = vpop.f32.mrf.mxu1 }
 0x4d5   : > { %v1412_v6 = vpack.c.bf16 %v1404_v43, %v1404_v43  ;;  %v2178_v42 = vpop.f32.mrf.mxu0  ;;  %v2391_v43 = vld [vmem:[%s234_s10 + $0x1] sm:$0x1] }
 0x4d6   : > { %v2319_v49 = vsel %vm1454_vm7, %v2178_v42, 0.0  ;;  %v2221_v59 = vpop.f32.mrf.mxu1  ;;  %v1381_v27 = vpop.permute.xlu1 %1380 }
 0x4d7   : > { %v1426_v35 = vsel %vm3707_vm12, %v1412_v6, %v1425_v18  ;;  %v2320_v37 = vsel %vm1454_vm7, %v2221_v59, 0.0  ;;  %v1406_v38 = vmul.f32 %v1381_v27, %v1166_v28  ;;  %v2811_v53 = vpop.f32.mrf.mxu0  ;;  %v2397_v59 = vld [vmem:[%s234_s10 + $0x3] sm:$0x1] }
 0x4d8   : > { %1427 = vst [vmem:[%s3701_s6 + $0x4] sm:$0xf] %v1426_v35  ;;  %v2321_v30 = vadd.f32 %v2320_v37, %v2319_v49  ;;  %v2817_v61 = vpop.f32.mrf.mxu1 }
 0x4d9   : > { %v1414_v58 = vpack.c.bf16 %v1406_v38, %v1406_v38  ;;  %v2181_v21 = vpop.f32.mrf.mxu0 }
 0x4da   : > { %v2224_v46 = vpop.f32.mrf.mxu1  ;;  %v1391_v45 = vpop.permute.xlu1 %1390  ;;  %v2351_v0 = vadd.f32 %v2347_v56, %v2321_v30 }
 0x4db   : > { %v1432_v8 = vsel %vm3707_vm12, %v1414_v58, %v1431_v14  ;;  %v1408_v13 = vmul.f32 %v1391_v45, %v1258_v63  ;;  %v2812_v31 = vpop.f32.mrf.mxu0 }
 0x4dc   : > { %1433 = vst [vmem:[%s3701_s6 + $0xc] sm:$0xf] %v1432_v8  ;;  %v2818_v19 = vpop.f32.mrf.mxu1 }
 0x4dd   : > { %v1416_v15 = vpack.c.bf16 %v1408_v13, %v1408_v13  ;;  %v2264_v50 = vpop.f32.mrf.mxu0 }
 0x4de   : > { %v2322_v23 = vsel %vm1454_vm7, %v2264_v50, 0.0  ;;  %v2307_v57 = vpop.f32.mrf.mxu1  ;;  %v1401_v62 = vpop.permute.xlu1 %1400 }
 0x4df   : > { %v1438_v2 = vsel %vm3707_vm12, %v1416_v15, %v1437_v39  ;;  %v2323_v33 = vsel %vm1454_vm7, %v2307_v57, 0.0  ;;  %v1410_v54 = vmul.f32 %v1401_v62, %v1350_v1  ;;  %v2823_v32 = vpop.f32.mrf.mxu0 }
 0x4e0   : > { %1439 = vst [vmem:[%s3701_s6 + $0x14] sm:$0xf] %v1438_v2  ;;  %v2324_v22 = vadd.f32 %v2323_v33, %v2322_v23  ;;  %v2829_v9 = vpop.f32.mrf.mxu1 }
 0x4e1   : > { %v1418_v25 = vpack.c.bf16 %v1410_v54, %v1410_v54  ;;  %v2267_v11 = vpop.f32.mrf.mxu0 }
 0x4e2   : > { %v2310_v12 = vpop.f32.mrf.mxu1  ;;  %v2352_v40 = vadd.f32 %v2348_v44, %v2324_v22 }
 0x4e3   : > { %v1444_v48 = vsel %vm3707_vm12, %v1418_v25, %v1443_v4  ;;  %v2824_v29 = vpop.f32.mrf.mxu0 }
 0x4e4   : > { %1445 = vst [vmem:[%s3701_s6 + $0x1c] sm:$0xf] %v1444_v48  ;;  %v2830_v41 = vpop.f32.mrf.mxu1 }
 0x520   : > { %v2360_v5 = vpop.permute.xlu0 %2359 }
 0x521   : > { %v2377_v16 = vmul.f32 %v2360_v5, %v3724_v17 }
 0x523   : > { %v2381_v55 = vpack.c.bf16 %v2377_v16, %v2377_v16 }
 0x525   : > { %v2389_v3 = vsel %vm3781_vm14, %v2381_v55, %v2388_v36 }
 0x526   : > { %2390 = vst [vmem:[%s234_s10] sm:$0x1] %v2389_v3 }
 0x528   : > { %v2365_v7 = vpop.permute.xlu1 %2364 }
 0x529   : > { %v2378_v34 = vmul.f32 %v2365_v7, %v3740_v47 }
 0x52b   : > { %v2382_v20 = vpack.c.bf16 %v2378_v34, %v2378_v34 }
 0x52d   : > { %v2392_v18 = vsel %vm3781_vm14, %v2382_v20, %v2391_v43  ;;  %v2370_v17 = vpop.permute.xlu0 %2369 }
 0x52e   : > { %2393 = vst [vmem:[%s234_s10 + $0x1] sm:$0x1] %v2392_v18  ;;  %v2379_v51 = vmul.f32 %v2370_v17, %v2351_v0 }
 0x530   : > { %v2383_v6 = vpack.c.bf16 %v2379_v51, %v2379_v51 }
 0x532   : > { %v2395_v42 = vsel %vm3781_vm14, %v2383_v6, %v2394_v26 }
 0x533   : > { %2396 = vst [vmem:[%s234_s10 + $0x2] sm:$0x1] %v2395_v42 }
 0x538   : > { %v2375_v28 = vpop.permute.xlu1 %2374 }
 0x539   : > { %v2380_v49 = vmul.f32 %v2375_v28, %v2352_v40 }
 0x53b   : > { %v2384_v27 = vpack.c.bf16 %v2380_v49, %v2380_v49 }
 0x53d   : > { %v2398_v47 = vsel %vm3781_vm14, %v2384_v27, %v2397_v59 }
 0x53e   : > { %2399 = vst [vmem:[%s234_s10 + $0x3] sm:$0x1] %v2398_v47 }
 0x53f PF: > { %s15_s15 = sadd.s32 1, %s2935_s15  }
 0x540   : > { %p12_p4 = scmp.ge.s32.totalorder %s15_s15, 4  }
 0x542   :  { %14 = sbr.rel (!%p12_p4) target bundleno = 1 (0x1), region = 84 }

</bundles_post_ra>
